<compile_context>
chip_gen: v6e
topology: v6e:2x2x1
jax: 0.10.0
libtpu: 0.0.40
codegen_flags: <defaults>
</compile_context>

<pallas_src>
import functools

import jax
import jax.numpy as jnp
from jax import lax
from jax.experimental import pallas as pl
from jax.experimental.pallas import tpu as pltpu


def _fused_conv_kernel(x_ref, w_ref, b_ref, m_ref, o_ref, *,
                       stride, wprime, mp, inv_cnt, apply_norm, apply_act):
    """One batch element: conv(k=4) [+ InstanceNorm] [+ LeakyReLU(0.2)].

    x_ref: (1, P, R, Cin)   bf16  reflect-padded, phase-split, row-flattened input
    w_ref: (4, 4, Cin, Cout) bf16 conv weights
    b_ref: (1, Cout)        f32   conv bias
    m_ref: (mp, 1)          f32   1.0 on valid output columns, 0.0 on wrap columns
    o_ref: (1, mp, Cout)          fused output (flattened (OH, W') rows)
    """
    num_phases = x_ref.shape[1]
    cout = w_ref.shape[-1]

    # Load each phase once (full, aligned block reads -- no strided/offset loads).
    phases = [x_ref[0, p] for p in range(num_phases)]

    acc = jnp.zeros((mp, cout), jnp.float32)
    for kh in range(4):
        for kw in range(4):
            if stride == 2:
                p = (kh % 2) * 2 + (kw % 2)
                dh, dw = kh // 2, kw // 2
            else:
                p, dh, dw = 0, kh, kw
            off = dh * wprime + dw
            # Full-phase matmul on the MXU (bf16 x bf16 -> f32 accumulate); the
            # static row shift of the f32 partial product realises the im2col tap.
            y_full = jnp.dot(phases[p], w_ref[kh, kw],
                             preferred_element_type=jnp.float32)
            acc = acc + y_full[off:off + mp, :]

    acc = acc + b_ref[...]

    if apply_norm:
        # InstanceNorm2d: per-channel stats over the valid spatial positions only
        # (wrap columns are masked out), biased variance, eps=1e-5, no affine.
        maskf = m_ref[...]                                        # (mp, 1)
        mean = jnp.sum(acc * maskf, axis=0, keepdims=True) * inv_cnt
        yc = acc - mean
        var = jnp.sum((yc * yc) * maskf, axis=0, keepdims=True) * inv_cnt
        y = yc * lax.rsqrt(var + 1e-5)
    else:
        y = acc

    if apply_act:
        y = jnp.where(y > 0, y, 0.2 * y)                          # LeakyReLU(0.2)

    o_ref[0] = y.astype(o_ref.dtype)


def _conv_block(x_nhwc, weight, bias, *, stride, apply_norm, apply_act, out_dtype):
    """Fused Conv2d(k=4, stride, pad=1 reflect, bias) [+ IN] [+ LeakyReLU].

    x_nhwc: (N, H, W, Cin) bf16 (channels-last). weight: (Cout, Cin, 4, 4) f32.
    Returns (N, OH, OW, Cout) in `out_dtype` (channels-last).
    """
    N, H, W, cin = x_nhwc.shape
    cout, _, kh_, kw_ = weight.shape
    assert kh_ == 4 and kw_ == 4
    if stride == 2:
        assert H % 2 == 0 and W % 2 == 0

    # Keep the MXU N-dim and output stores lane-dense for the 1-channel head.
    cout_k = cout if cout >= 8 else 128
    if cout_k != cout:
        weight = jnp.pad(weight, ((0, cout_k - cout), (0, 0), (0, 0), (0, 0)))
        bias = jnp.pad(bias, ((0, cout_k - cout),))

    xp = jnp.pad(x_nhwc, ((0, 0), (1, 1), (1, 1), (0, 0)), mode="reflect")
    hp, wp = H + 2, W + 2
    oh = (hp - 4) // stride + 1
    ow = (wp - 4) // stride + 1

    if stride == 2:
        # Space-to-phase split (pure reshape/transpose, zero data duplication):
        #   xph[n, 2*a + b, i*wh + j, c] == xp[n, 2*i + a, 2*j + b, c]
        hh, wh = hp // 2, wp // 2                       # = oh+1, ow+1
        xph = xp.reshape(N, hh, 2, wh, 2, cin).transpose(0, 2, 4, 1, 3, 5)
        xph = xph.reshape(N, 4, hh * wh, cin)
        num_phases, wprime, nat_rows = 4, wh, hh * wh
    else:
        xph = xp.reshape(N, 1, hp * wp, cin)
        num_phases, wprime, nat_rows = 1, wp, hp * wp

    mp = oh * wprime                                    # rows of the accumulator
    dmax = 3 // stride
    rows = max(nat_rows, mp + dmax * wprime + dmax)     # keep shifted reads in-bounds
    if rows > nat_rows:
        xph = jnp.pad(xph, ((0, 0), (0, 0), (0, rows - nat_rows), (0, 0)))
    xph = xph.astype(jnp.bfloat16)

    w = jnp.transpose(weight, (2, 3, 1, 0)).astype(jnp.bfloat16)   # (4,4,Cin,Cout)
    b2 = bias.reshape(1, cout_k).astype(jnp.float32)
    maskf = ((jnp.arange(mp) % wprime) < ow).astype(jnp.float32).reshape(mp, 1)

    kernel = functools.partial(
        _fused_conv_kernel, stride=stride, wprime=wprime, mp=mp,
        inv_cnt=1.0 / float(oh * ow), apply_norm=apply_norm, apply_act=apply_act)

    out_flat = pl.pallas_call(
        kernel,
        out_shape=jax.ShapeDtypeStruct((N, mp, cout_k), out_dtype),
        grid_spec=pltpu.PrefetchScalarGridSpec(
            num_scalar_prefetch=0,
            grid=(N,),
            in_specs=[
                pl.BlockSpec((1, num_phases, rows, cin), lambda n: (n, 0, 0, 0)),
                pl.BlockSpec((4, 4, cin, cout_k), lambda n: (0, 0, 0, 0)),
                pl.BlockSpec((1, cout_k), lambda n: (0, 0)),
                pl.BlockSpec((mp, 1), lambda n: (0, 0)),
            ],
            out_specs=pl.BlockSpec((1, mp, cout_k), lambda n: (n, 0, 0)),
        ),
        compiler_params=pltpu.CompilerParams(
            dimension_semantics=("parallel",)),
    )(xph, w, b2, maskf)

    # (N, mp, Cout) -> (N, oh, wprime, Cout) -> drop wrap columns / pad channels.
    return out_flat.reshape(N, oh, wprime, cout_k)[:, :, :ow, :cout]


def build_discriminator_params(key, in_channels=3, features=(64, 128, 256, 512)):
    """(weight, bias, stride, use_instance_norm, use_leaky_relu) per conv layer,
    mirroring Discriminator(in_channels, features)."""
    cfg = [(in_channels, features[0], 2, False, True)]            # initial layer
    cin = features[0]
    for f in features[1:]:
        cfg.append((cin, f, 1 if f == features[-1] else 2, True, True))
        cin = f
    cfg.append((cin, 1, 1, False, False))                         # final 1-ch conv
    params = []
    for i, (ci, co, stride, norm, act) in enumerate(cfg):
        kw_key, kb_key = jax.random.split(jax.random.fold_in(key, i))
        wscale = 1.0 / float(ci * 16) ** 0.5
        wgt = wscale * jax.random.normal(kw_key, (co, ci, 4, 4), dtype=jnp.float32)
        bia = 0.1 * jax.random.normal(kb_key, (co,), dtype=jnp.float32)
        params.append((wgt, bia, stride, norm, act))
    return params


def discriminator_forward(x_nchw, params):
    """x_nchw: (N, C, H, W) f32 -> PatchGAN logits (N, 1, H', W') f32."""
    h = jnp.transpose(x_nchw, (0, 2, 3, 1)).astype(jnp.bfloat16)  # NCHW -> NHWC once
    for i, (w, b, stride, norm, act) in enumerate(params):
        last = i == len(params) - 1
        h = _conv_block(h, w, b, stride=stride, apply_norm=norm, apply_act=act,
                        out_dtype=jnp.float32 if last else jnp.bfloat16)
    return jnp.transpose(h, (0, 3, 1, 2))                          # back to NCHW


def _reference(x_nchw, params):
    """Pure-JAX reference with identical bf16 cast points (f32 accumulation)."""
    h = x_nchw.astype(jnp.bfloat16)
    for i, (w, b, stride, norm, act) in enumerate(params):
        hp = jnp.pad(h, ((0, 0), (0, 0), (1, 1), (1, 1)), mode="reflect")
        y = lax.conv_general_dilated(
            hp, w.astype(jnp.bfloat16), window_strides=(stride, stride),
            padding="VALID", dimension_numbers=("NCHW", "OIHW", "NCHW"),
            preferred_element_type=jnp.float32)
        y = y + b.reshape(1, -1, 1, 1)
        if norm:
            mean = jnp.mean(y, axis=(2, 3), keepdims=True)
            var = jnp.mean((y - mean) ** 2, axis=(2, 3), keepdims=True)
            y = (y - mean) * lax.rsqrt(var + 1e-5)
        if act:
            y = jnp.where(y > 0, y, 0.2 * y)
        h = y if i == len(params) - 1 else y.astype(jnp.bfloat16)
    return h


if __name__ == "__main__":
    key = jax.random.PRNGKey(0)
    k_x, k_p = jax.random.split(key)

    # Smallest spatial size that keeps all 5 layers (strides 2,2,2,1,1) valid.
    N, C, H, W = 2, 3, 32, 32
    x = jax.random.normal(k_x, (N, C, H, W), dtype=jnp.float32)
    params = build_discriminator_params(k_p, in_channels=C,
                                        features=(64, 128, 256, 512))

    out = discriminator_forward(x, params)
    out = jax.block_until_ready(out)

    ref = _reference(x, params)
    assert out.shape == ref.shape == (N, 1, 2, 2), (out.shape, ref.shape)
    err = float(jnp.max(jnp.abs(out - ref)))
    assert err < 2e-2, f"max abs err {err}"
    print("KERNEL_OK")
</pallas_src>

<mosaic_0001>
module attributes {stable_mosaic.version = 11 : i64} {
  func.func @_fused_conv_kernel(%arg0: i32, %arg1: memref<1x4x290x3xbf16, #tpu.memory_space<vmem>>, %arg2: memref<4x4x3x64xbf16, #tpu.memory_space<vmem>>, %arg3: memref<1x64xf32, #tpu.memory_space<vmem>>, %arg4: memref<272x1xf32, #tpu.memory_space<vmem>>, %arg5: memref<1x272x64xbf16, #tpu.memory_space<vmem>>) attributes {dimension_semantics = [#tpu.dimension_semantics<parallel>], iteration_bounds = array<i64: 2>, scalar_prefetch = 0 : i64, scratch_operands = 0 : i64, tpu.core_type = #tpu.core_type<tc>, window_params = [{transform_indices = @transform_0, window_bounds = array<i64: 1, 4, 290, 3>}, {pipeline_mode = #tpu.pipeline_mode<synchronous>, transform_indices = @transform_1, window_bounds = array<i64: 4, 4, 3, 64>}, {pipeline_mode = #tpu.pipeline_mode<synchronous>, transform_indices = @transform_2, window_bounds = array<i64: 1, 64>}, {pipeline_mode = #tpu.pipeline_mode<synchronous>, transform_indices = @transform_3, window_bounds = array<i64: 272, 1>}, {transform_indices = @transform_4, window_bounds = array<i64: 1, 272, 64>}]} {
    %c0 = arith.constant 0 : index
    %c0_0 = arith.constant 0 : index
    %c0_1 = arith.constant 0 : index
    %c0_2 = arith.constant 0 : index
    %0 = vector.load %arg1[%c0, %c0_0, %c0_1, %c0_2] : memref<1x4x290x3xbf16, #tpu.memory_space<vmem>>, vector<1x1x290x3xbf16>
    %1 = vector.shape_cast %0 : vector<1x1x290x3xbf16> to vector<290x3xbf16>
    %c0_3 = arith.constant 0 : index
    %c1 = arith.constant 1 : index
    %c0_4 = arith.constant 0 : index
    %c0_5 = arith.constant 0 : index
    %2 = vector.load %arg1[%c0_3, %c1, %c0_4, %c0_5] : memref<1x4x290x3xbf16, #tpu.memory_space<vmem>>, vector<1x1x290x3xbf16>
    %3 = vector.shape_cast %2 : vector<1x1x290x3xbf16> to vector<290x3xbf16>
    %c0_6 = arith.constant 0 : index
    %c2 = arith.constant 2 : index
    %c0_7 = arith.constant 0 : index
    %c0_8 = arith.constant 0 : index
    %4 = vector.load %arg1[%c0_6, %c2, %c0_7, %c0_8] : memref<1x4x290x3xbf16, #tpu.memory_space<vmem>>, vector<1x1x290x3xbf16>
    %5 = vector.shape_cast %4 : vector<1x1x290x3xbf16> to vector<290x3xbf16>
    %c0_9 = arith.constant 0 : index
    %c3 = arith.constant 3 : index
    %c0_10 = arith.constant 0 : index
    %c0_11 = arith.constant 0 : index
    %6 = vector.load %arg1[%c0_9, %c3, %c0_10, %c0_11] : memref<1x4x290x3xbf16, #tpu.memory_space<vmem>>, vector<1x1x290x3xbf16>
    %7 = vector.shape_cast %6 : vector<1x1x290x3xbf16> to vector<290x3xbf16>
    %cst = arith.constant 0.000000e+00 : f32
    %8 = vector.broadcast %cst : f32 to vector<272x64xf32>
    %c0_12 = arith.constant 0 : index
    %c0_13 = arith.constant 0 : index
    %c0_14 = arith.constant 0 : index
    %c0_15 = arith.constant 0 : index
    %9 = vector.load %arg2[%c0_12, %c0_13, %c0_14, %c0_15] : memref<4x4x3x64xbf16, #tpu.memory_space<vmem>>, vector<1x1x3x64xbf16>
    %10 = vector.shape_cast %9 : vector<1x1x3x64xbf16> to vector<3x64xbf16>
    %cst_16 = arith.constant dense<0.000000e+00> : vector<290x64xf32>
    %11 = tpu.matmul %1, %10, %cst_16 {dimension_numbers = #tpu.dot_dimension_numbers<[1], [0], [0], [1], [0, 0, 1, 1], [], []>} : vector<290x3xbf16>, vector<3x64xbf16>, vector<290x64xf32> -> vector<290x64xf32>
    %12 = vector.extract_strided_slice %11 {offsets = [0, 0], sizes = [272, 64], strides = [1, 1]} : vector<290x64xf32> to vector<272x64xf32>
    %13 = arith.addf %8, %12 : vector<272x64xf32>
    %c0_17 = arith.constant 0 : index
    %c1_18 = arith.constant 1 : index
    %c0_19 = arith.constant 0 : index
    %c0_20 = arith.constant 0 : index
    %14 = vector.load %arg2[%c0_17, %c1_18, %c0_19, %c0_20] : memref<4x4x3x64xbf16, #tpu.memory_space<vmem>>, vector<1x1x3x64xbf16>
    %15 = vector.shape_cast %14 : vector<1x1x3x64xbf16> to vector<3x64xbf16>
    %cst_21 = arith.constant dense<0.000000e+00> : vector<290x64xf32>
    %16 = tpu.matmul %3, %15, %cst_21 {dimension_numbers = #tpu.dot_dimension_numbers<[1], [0], [0], [1], [0, 0, 1, 1], [], []>} : vector<290x3xbf16>, vector<3x64xbf16>, vector<290x64xf32> -> vector<290x64xf32>
    %17 = vector.extract_strided_slice %16 {offsets = [0, 0], sizes = [272, 64], strides = [1, 1]} : vector<290x64xf32> to vector<272x64xf32>
    %18 = arith.addf %13, %17 : vector<272x64xf32>
    %c0_22 = arith.constant 0 : index
    %c2_23 = arith.constant 2 : index
    %c0_24 = arith.constant 0 : index
    %c0_25 = arith.constant 0 : index
    %19 = vector.load %arg2[%c0_22, %c2_23, %c0_24, %c0_25] : memref<4x4x3x64xbf16, #tpu.memory_space<vmem>>, vector<1x1x3x64xbf16>
    %20 = vector.shape_cast %19 : vector<1x1x3x64xbf16> to vector<3x64xbf16>
    %cst_26 = arith.constant dense<0.000000e+00> : vector<290x64xf32>
    %21 = tpu.matmul %1, %20, %cst_26 {dimension_numbers = #tpu.dot_dimension_numbers<[1], [0], [0], [1], [0, 0, 1, 1], [], []>} : vector<290x3xbf16>, vector<3x64xbf16>, vector<290x64xf32> -> vector<290x64xf32>
    %22 = vector.extract_strided_slice %21 {offsets = [1, 0], sizes = [272, 64], strides = [1, 1]} : vector<290x64xf32> to vector<272x64xf32>
    %23 = arith.addf %18, %22 : vector<272x64xf32>
    %c0_27 = arith.constant 0 : index
    %c3_28 = arith.constant 3 : index
    %c0_29 = arith.constant 0 : index
    %c0_30 = arith.constant 0 : index
    %24 = vector.load %arg2[%c0_27, %c3_28, %c0_29, %c0_30] : memref<4x4x3x64xbf16, #tpu.memory_space<vmem>>, vector<1x1x3x64xbf16>
    %25 = vector.shape_cast %24 : vector<1x1x3x64xbf16> to vector<3x64xbf16>
    %cst_31 = arith.constant dense<0.000000e+00> : vector<290x64xf32>
    %26 = tpu.matmul %3, %25, %cst_31 {dimension_numbers = #tpu.dot_dimension_numbers<[1], [0], [0], [1], [0, 0, 1, 1], [], []>} : vector<290x3xbf16>, vector<3x64xbf16>, vector<290x64xf32> -> vector<290x64xf32>
    %27 = vector.extract_strided_slice %26 {offsets = [1, 0], sizes = [272, 64], strides = [1, 1]} : vector<290x64xf32> to vector<272x64xf32>
    %28 = arith.addf %23, %27 : vector<272x64xf32>
    %c1_32 = arith.constant 1 : index
    %c0_33 = arith.constant 0 : index
    %c0_34 = arith.constant 0 : index
    %c0_35 = arith.constant 0 : index
    %29 = vector.load %arg2[%c1_32, %c0_33, %c0_34, %c0_35] : memref<4x4x3x64xbf16, #tpu.memory_space<vmem>>, vector<1x1x3x64xbf16>
    %30 = vector.shape_cast %29 : vector<1x1x3x64xbf16> to vector<3x64xbf16>
    %cst_36 = arith.constant dense<0.000000e+00> : vector<290x64xf32>
    %31 = tpu.matmul %5, %30, %cst_36 {dimension_numbers = #tpu.dot_dimension_numbers<[1], [0], [0], [1], [0, 0, 1, 1], [], []>} : vector<290x3xbf16>, vector<3x64xbf16>, vector<290x64xf32> -> vector<290x64xf32>
    %32 = vector.extract_strided_slice %31 {offsets = [0, 0], sizes = [272, 64], strides = [1, 1]} : vector<290x64xf32> to vector<272x64xf32>
    %33 = arith.addf %28, %32 : vector<272x64xf32>
    %c1_37 = arith.constant 1 : index
    %c1_38 = arith.constant 1 : index
    %c0_39 = arith.constant 0 : index
    %c0_40 = arith.constant 0 : index
    %34 = vector.load %arg2[%c1_37, %c1_38, %c0_39, %c0_40] : memref<4x4x3x64xbf16, #tpu.memory_space<vmem>>, vector<1x1x3x64xbf16>
    %35 = vector.shape_cast %34 : vector<1x1x3x64xbf16> to vector<3x64xbf16>
    %cst_41 = arith.constant dense<0.000000e+00> : vector<290x64xf32>
    %36 = tpu.matmul %7, %35, %cst_41 {dimension_numbers = #tpu.dot_dimension_numbers<[1], [0], [0], [1], [0, 0, 1, 1], [], []>} : vector<290x3xbf16>, vector<3x64xbf16>, vector<290x64xf32> -> vector<290x64xf32>
    %37 = vector.extract_strided_slice %36 {offsets = [0, 0], sizes = [272, 64], strides = [1, 1]} : vector<290x64xf32> to vector<272x64xf32>
    %38 = arith.addf %33, %37 : vector<272x64xf32>
    %c1_42 = arith.constant 1 : index
    %c2_43 = arith.constant 2 : index
    %c0_44 = arith.constant 0 : index
    %c0_45 = arith.constant 0 : index
    %39 = vector.load %arg2[%c1_42, %c2_43, %c0_44, %c0_45] : memref<4x4x3x64xbf16, #tpu.memory_space<vmem>>, vector<1x1x3x64xbf16>
    %40 = vector.shape_cast %39 : vector<1x1x3x64xbf16> to vector<3x64xbf16>
    %cst_46 = arith.constant dense<0.000000e+00> : vector<290x64xf32>
    %41 = tpu.matmul %5, %40, %cst_46 {dimension_numbers = #tpu.dot_dimension_numbers<[1], [0], [0], [1], [0, 0, 1, 1], [], []>} : vector<290x3xbf16>, vector<3x64xbf16>, vector<290x64xf32> -> vector<290x64xf32>
    %42 = vector.extract_strided_slice %41 {offsets = [1, 0], sizes = [272, 64], strides = [1, 1]} : vector<290x64xf32> to vector<272x64xf32>
    %43 = arith.addf %38, %42 : vector<272x64xf32>
    %c1_47 = arith.constant 1 : index
    %c3_48 = arith.constant 3 : index
    %c0_49 = arith.constant 0 : index
    %c0_50 = arith.constant 0 : index
    %44 = vector.load %arg2[%c1_47, %c3_48, %c0_49, %c0_50] : memref<4x4x3x64xbf16, #tpu.memory_space<vmem>>, vector<1x1x3x64xbf16>
    %45 = vector.shape_cast %44 : vector<1x1x3x64xbf16> to vector<3x64xbf16>
    %cst_51 = arith.constant dense<0.000000e+00> : vector<290x64xf32>
    %46 = tpu.matmul %7, %45, %cst_51 {dimension_numbers = #tpu.dot_dimension_numbers<[1], [0], [0], [1], [0, 0, 1, 1], [], []>} : vector<290x3xbf16>, vector<3x64xbf16>, vector<290x64xf32> -> vector<290x64xf32>
    %47 = vector.extract_strided_slice %46 {offsets = [1, 0], sizes = [272, 64], strides = [1, 1]} : vector<290x64xf32> to vector<272x64xf32>
    %48 = arith.addf %43, %47 : vector<272x64xf32>
    %c2_52 = arith.constant 2 : index
    %c0_53 = arith.constant 0 : index
    %c0_54 = arith.constant 0 : index
    %c0_55 = arith.constant 0 : index
    %49 = vector.load %arg2[%c2_52, %c0_53, %c0_54, %c0_55] : memref<4x4x3x64xbf16, #tpu.memory_space<vmem>>, vector<1x1x3x64xbf16>
    %50 = vector.shape_cast %49 : vector<1x1x3x64xbf16> to vector<3x64xbf16>
    %cst_56 = arith.constant dense<0.000000e+00> : vector<290x64xf32>
    %51 = tpu.matmul %1, %50, %cst_56 {dimension_numbers = #tpu.dot_dimension_numbers<[1], [0], [0], [1], [0, 0, 1, 1], [], []>} : vector<290x3xbf16>, vector<3x64xbf16>, vector<290x64xf32> -> vector<290x64xf32>
    %52 = vector.extract_strided_slice %51 {offsets = [17, 0], sizes = [272, 64], strides = [1, 1]} : vector<290x64xf32> to vector<272x64xf32>
    %53 = arith.addf %48, %52 : vector<272x64xf32>
    %c2_57 = arith.constant 2 : index
    %c1_58 = arith.constant 1 : index
    %c0_59 = arith.constant 0 : index
    %c0_60 = arith.constant 0 : index
    %54 = vector.load %arg2[%c2_57, %c1_58, %c0_59, %c0_60] : memref<4x4x3x64xbf16, #tpu.memory_space<vmem>>, vector<1x1x3x64xbf16>
    %55 = vector.shape_cast %54 : vector<1x1x3x64xbf16> to vector<3x64xbf16>
    %cst_61 = arith.constant dense<0.000000e+00> : vector<290x64xf32>
    %56 = tpu.matmul %3, %55, %cst_61 {dimension_numbers = #tpu.dot_dimension_numbers<[1], [0], [0], [1], [0, 0, 1, 1], [], []>} : vector<290x3xbf16>, vector<3x64xbf16>, vector<290x64xf32> -> vector<290x64xf32>
    %57 = vector.extract_strided_slice %56 {offsets = [17, 0], sizes = [272, 64], strides = [1, 1]} : vector<290x64xf32> to vector<272x64xf32>
    %58 = arith.addf %53, %57 : vector<272x64xf32>
    %c2_62 = arith.constant 2 : index
    %c2_63 = arith.constant 2 : index
    %c0_64 = arith.constant 0 : index
    %c0_65 = arith.constant 0 : index
    %59 = vector.load %arg2[%c2_62, %c2_63, %c0_64, %c0_65] : memref<4x4x3x64xbf16, #tpu.memory_space<vmem>>, vector<1x1x3x64xbf16>
    %60 = vector.shape_cast %59 : vector<1x1x3x64xbf16> to vector<3x64xbf16>
    %cst_66 = arith.constant dense<0.000000e+00> : vector<290x64xf32>
    %61 = tpu.matmul %1, %60, %cst_66 {dimension_numbers = #tpu.dot_dimension_numbers<[1], [0], [0], [1], [0, 0, 1, 1], [], []>} : vector<290x3xbf16>, vector<3x64xbf16>, vector<290x64xf32> -> vector<290x64xf32>
    %62 = vector.extract_strided_slice %61 {offsets = [18, 0], sizes = [272, 64], strides = [1, 1]} : vector<290x64xf32> to vector<272x64xf32>
    %63 = arith.addf %58, %62 : vector<272x64xf32>
    %c2_67 = arith.constant 2 : index
    %c3_68 = arith.constant 3 : index
    %c0_69 = arith.constant 0 : index
    %c0_70 = arith.constant 0 : index
    %64 = vector.load %arg2[%c2_67, %c3_68, %c0_69, %c0_70] : memref<4x4x3x64xbf16, #tpu.memory_space<vmem>>, vector<1x1x3x64xbf16>
    %65 = vector.shape_cast %64 : vector<1x1x3x64xbf16> to vector<3x64xbf16>
    %cst_71 = arith.constant dense<0.000000e+00> : vector<290x64xf32>
    %66 = tpu.matmul %3, %65, %cst_71 {dimension_numbers = #tpu.dot_dimension_numbers<[1], [0], [0], [1], [0, 0, 1, 1], [], []>} : vector<290x3xbf16>, vector<3x64xbf16>, vector<290x64xf32> -> vector<290x64xf32>
    %67 = vector.extract_strided_slice %66 {offsets = [18, 0], sizes = [272, 64], strides = [1, 1]} : vector<290x64xf32> to vector<272x64xf32>
    %68 = arith.addf %63, %67 : vector<272x64xf32>
    %c3_72 = arith.constant 3 : index
    %c0_73 = arith.constant 0 : index
    %c0_74 = arith.constant 0 : index
    %c0_75 = arith.constant 0 : index
    %69 = vector.load %arg2[%c3_72, %c0_73, %c0_74, %c0_75] : memref<4x4x3x64xbf16, #tpu.memory_space<vmem>>, vector<1x1x3x64xbf16>
    %70 = vector.shape_cast %69 : vector<1x1x3x64xbf16> to vector<3x64xbf16>
    %cst_76 = arith.constant dense<0.000000e+00> : vector<290x64xf32>
    %71 = tpu.matmul %5, %70, %cst_76 {dimension_numbers = #tpu.dot_dimension_numbers<[1], [0], [0], [1], [0, 0, 1, 1], [], []>} : vector<290x3xbf16>, vector<3x64xbf16>, vector<290x64xf32> -> vector<290x64xf32>
    %72 = vector.extract_strided_slice %71 {offsets = [17, 0], sizes = [272, 64], strides = [1, 1]} : vector<290x64xf32> to vector<272x64xf32>
    %73 = arith.addf %68, %72 : vector<272x64xf32>
    %c3_77 = arith.constant 3 : index
    %c1_78 = arith.constant 1 : index
    %c0_79 = arith.constant 0 : index
    %c0_80 = arith.constant 0 : index
    %74 = vector.load %arg2[%c3_77, %c1_78, %c0_79, %c0_80] : memref<4x4x3x64xbf16, #tpu.memory_space<vmem>>, vector<1x1x3x64xbf16>
    %75 = vector.shape_cast %74 : vector<1x1x3x64xbf16> to vector<3x64xbf16>
    %cst_81 = arith.constant dense<0.000000e+00> : vector<290x64xf32>
    %76 = tpu.matmul %7, %75, %cst_81 {dimension_numbers = #tpu.dot_dimension_numbers<[1], [0], [0], [1], [0, 0, 1, 1], [], []>} : vector<290x3xbf16>, vector<3x64xbf16>, vector<290x64xf32> -> vector<290x64xf32>
    %77 = vector.extract_strided_slice %76 {offsets = [17, 0], sizes = [272, 64], strides = [1, 1]} : vector<290x64xf32> to vector<272x64xf32>
    %78 = arith.addf %73, %77 : vector<272x64xf32>
    %c3_82 = arith.constant 3 : index
    %c2_83 = arith.constant 2 : index
    %c0_84 = arith.constant 0 : index
    %c0_85 = arith.constant 0 : index
    %79 = vector.load %arg2[%c3_82, %c2_83, %c0_84, %c0_85] : memref<4x4x3x64xbf16, #tpu.memory_space<vmem>>, vector<1x1x3x64xbf16>
    %80 = vector.shape_cast %79 : vector<1x1x3x64xbf16> to vector<3x64xbf16>
    %cst_86 = arith.constant dense<0.000000e+00> : vector<290x64xf32>
    %81 = tpu.matmul %5, %80, %cst_86 {dimension_numbers = #tpu.dot_dimension_numbers<[1], [0], [0], [1], [0, 0, 1, 1], [], []>} : vector<290x3xbf16>, vector<3x64xbf16>, vector<290x64xf32> -> vector<290x64xf32>
    %82 = vector.extract_strided_slice %81 {offsets = [18, 0], sizes = [272, 64], strides = [1, 1]} : vector<290x64xf32> to vector<272x64xf32>
    %83 = arith.addf %78, %82 : vector<272x64xf32>
    %c3_87 = arith.constant 3 : index
    %c3_88 = arith.constant 3 : index
    %c0_89 = arith.constant 0 : index
    %c0_90 = arith.constant 0 : index
    %84 = vector.load %arg2[%c3_87, %c3_88, %c0_89, %c0_90] : memref<4x4x3x64xbf16, #tpu.memory_space<vmem>>, vector<1x1x3x64xbf16>
    %85 = vector.shape_cast %84 : vector<1x1x3x64xbf16> to vector<3x64xbf16>
    %cst_91 = arith.constant dense<0.000000e+00> : vector<290x64xf32>
    %86 = tpu.matmul %7, %85, %cst_91 {dimension_numbers = #tpu.dot_dimension_numbers<[1], [0], [0], [1], [0, 0, 1, 1], [], []>} : vector<290x3xbf16>, vector<3x64xbf16>, vector<290x64xf32> -> vector<290x64xf32>
    %87 = vector.extract_strided_slice %86 {offsets = [18, 0], sizes = [272, 64], strides = [1, 1]} : vector<290x64xf32> to vector<272x64xf32>
    %88 = arith.addf %83, %87 : vector<272x64xf32>
    %c0_92 = arith.constant 0 : index
    %c0_93 = arith.constant 0 : index
    %89 = vector.load %arg3[%c0_92, %c0_93] : memref<1x64xf32, #tpu.memory_space<vmem>>, vector<1x64xf32>
    %90 = vector.broadcast %89 : vector<1x64xf32> to vector<272x64xf32>
    %91 = arith.addf %88, %90 : vector<272x64xf32>
    %cst_94 = arith.constant 0.000000e+00 : f32
    %92 = vector.broadcast %cst_94 : f32 to vector<272x64xf32>
    %93 = arith.cmpf ogt, %91, %92 : vector<272x64xf32>
    %cst_95 = arith.constant 2.000000e-01 : f32
    %94 = vector.broadcast %cst_95 : f32 to vector<272x64xf32>
    %95 = arith.mulf %94, %91 : vector<272x64xf32>
    %96 = arith.select %93, %91, %95 : vector<272x64xi1>, vector<272x64xf32>
    %97 = arith.truncf %96 : vector<272x64xf32> to vector<272x64xbf16>
    %c0_96 = arith.constant 0 : index
    %c0_97 = arith.constant 0 : index
    %c0_98 = arith.constant 0 : index
    %98 = vector.load %arg5[%c0_96, %c0_97, %c0_98] : memref<1x272x64xbf16, #tpu.memory_space<vmem>>, vector<1x272x64xbf16>
    %99 = vector.shape_cast %98 : vector<1x272x64xbf16> to vector<272x64xbf16>
    %100 = vector.shape_cast %97 : vector<272x64xbf16> to vector<1x272x64xbf16>
    tpu.vector_store %arg5[%c0_96, %c0_97, %c0_98], %100 {strides = array<i32>} : memref<1x272x64xbf16, #tpu.memory_space<vmem>>, vector<1x272x64xbf16>,
    return
  }
  func.func @transform_0(%arg0: i32) -> (i32, i32, i32, i32) {
    %c0_i32 = arith.constant 0 : i32
    %c0_i32_0 = arith.constant 0 : i32
    %c0_i32_1 = arith.constant 0 : i32
    %c0_i32_2 = arith.constant 0 : i32
    return %arg0, %c0_i32, %c0_i32_0, %c0_i32_1 : i32, i32, i32, i32
  }
  func.func @transform_1(%arg0: i32) -> (i32, i32, i32, i32) {
    %c0_i32 = arith.constant 0 : i32
    %c0_i32_0 = arith.constant 0 : i32
    %c0_i32_1 = arith.constant 0 : i32
    %c0_i32_2 = arith.constant 0 : i32
    %c0_i32_3 = arith.constant 0 : i32
    return %c0_i32, %c0_i32_0, %c0_i32_1, %c0_i32_2 : i32, i32, i32, i32
  }
  func.func @transform_2(%arg0: i32) -> (i32, i32) {
    %c0_i32 = arith.constant 0 : i32
    %c0_i32_0 = arith.constant 0 : i32
    %c0_i32_1 = arith.constant 0 : i32
    return %c0_i32, %c0_i32_0 : i32, i32
  }
  func.func @transform_3(%arg0: i32) -> (i32, i32) {
    %c0_i32 = arith.constant 0 : i32
    %c0_i32_0 = arith.constant 0 : i32
    %c0_i32_1 = arith.constant 0 : i32
    return %c0_i32, %c0_i32_0 : i32, i32
  }
  func.func @transform_4(%arg0: i32) -> (i32, i32, i32) {
    %c0_i32 = arith.constant 0 : i32
    %c0_i32_0 = arith.constant 0 : i32
    %c0_i32_1 = arith.constant 0 : i32
    return %arg0, %c0_i32, %c0_i32_0 : i32, i32, i32
  }
}

</mosaic_0001>

<bundles_post_ra>
// kernel: tpu_custom_call.1
= control target key start
LH: loop header
LB: loop body
LE: loop exit
PB: predicated region body
PF: predicated region fallthrough
CT: control target
= control target key end

     0   :  { %s8867_s15 = smov 0   ;;  %s11876_s0 = inlined_call_operand.vmem [shape: bf16[2,4,290,3], index: 0, kind: input, shape index: {}]   ;;  %s11877_s1 = inlined_call_operand.vmem [shape: bf16[4,4,3,64], index: 1, kind: input, shape index: {}]   ;;  %s11878_s2 = inlined_call_operand.vmem [shape: f32[1,64], index: 2, kind: input, shape index: {}]   ;;  %s11879_s3 = inlined_call_operand.vmem [shape: f32[272,1], index: 3, kind: input, shape index: {}]   ;;  %s11880_s4 = inlined_call_operand.vmem [shape: bf16[2,272,64], index: 4, kind: output, shape index: {}]  }
   0x1 LB: > { %s6513_s16 = sadd.s32 4294967295, %s8837_s15   ;;  %p6517_p0 = scmp.ge.s32.totalorder %s8837_s15, 1  ;;  %s8837_s15 = sphi %s8867_s15, %s14_s15  }
   0x2   : > { %p162_p1 = scmp.lt.s32.totalorder %s8837_s15, 3 }
   0x4   : > { %p163_p2 = pnand %p6517_p0, %p162_p1 }
   0x6   : > { %166 = sbr.rel (%p163_p2) target bundleno = 1435 (0x59b), region = 36 }
   0xb   : > { %v350_v0 = vld [vmem:[%s11877_s1] sm:$0x3]  ;;  %vm502_vm0 = vcmask 1040384   ;;  %vm503_vm1 = vcmask 1041408   ;;  %v11907_v1 = vmov 0.0   ;;  %v8840_v2 = vmov 65535  }
   0xc   : > { %7417 = vmatprep.subr.bf16.mxu0 %v11907_v1  ;;  %v504_v3 = vsel %vm502_vm0, 4294967295, %v8840_v2  ;;  %7495 = vmatprep.subr.bf16.mxu1 %v11907_v1  ;;  %v6669_v4 = vld [vmem:[%s11877_s1 + $0x2] sm:$0x3]  ;;  %p188_p3 = scmp.lt.s32.totalorder %s6513_s16, 1  ;;  %vm8841_vm2 = vmmov 0   ;;  %vm444_vm3 = vcmask 23552  }
   0xd   : > { %v8883_v5 = vsel %vm503_vm1, %v504_v3, 0  ;;  %7419 = vmatprep.mubr.msk.bf16.mxu0 %vm8841_vm2, %v11907_v1  ;;  %7497 = vmatprep.mubr.msk.bf16.mxu1 %vm8841_vm2, %v11907_v1  ;;  %v6708_v8 = vld [vmem:[%s11877_s1 + $0x4] sm:$0x3]  ;;  %v6728_v9 = vld [vmem:[%s11877_s1 + $0x6] sm:$0x3]  ;;  %vm1316_vm4 = vcmask 1046528  }
   0xe   : > { %v507_v6 = vand.u32 %v8883_v5, %v350_v0  ;;  %v877_v7 = vand.u32 %v6669_v4, %v8883_v5  ;;  %s12111_s16 = smov (!%p188_p3, %s6513_s16), 1  ;;  %v1097_v10 = vand.u32 %v6708_v8, %v8883_v5  ;;  %v1457_v12 = vand.u32 %v6728_v9, %v8883_v5  ;;  %v6748_v50 = vld [vmem:[%s11877_s1 + $0x8] sm:$0x3]  ;;  %v6787_v51 = vld [vmem:[%s11877_s1 + $0xa] sm:$0x3] }
   0xf   : > { %s8665_s22 = smul.u32 592, %s12111_s16  ;;  %v1966_v52 = vand.u32 %v6748_v50, %v8883_v5  ;;  %v2336_v53 = vand.u32 %v6787_v51, %v8883_v5  ;;  %vm4211_vm5 = vcmask 1045504   ;;  %vm6423_vm7 = vcmask 519168  }
  0x10   : > { %7418 = vmatpush3.bf16.msra.mxu0 %v507_v6  ;;  %7496 = vmatpush3.bf16.msra.mxu1 %v877_v7  ;;  %s8666_s29 = smul.u32 136, %s12111_s16 }
  0x11   : > { %7573 = vmatprep.subr.bf16.mxu0 %v11907_v1  ;;  %7651 = vmatprep.subr.bf16.mxu1 %v11907_v1  ;;  %s8905_s27 = scalar_lea.vmem %s11876_s0, %s8665_s22 }
  0x12   : > { %v8909_v11 = vld [vmem:[%s8905_s27] sm:$0xff]   ;;  %v8913_v13 = vld [vmem:[%s8905_s27 + $0x94] sm:$0xff]   ;;  %v8925_v14 = vld [vmem:[%s8905_s27 + $0x8] sm:$0xff]   ;;  %s11674_s16 = scalar_lea.vmem %s11880_s4, %s8666_s29 }
  0x13   : > { %7420 = vmatmul.mubr.msk.bf16.vlgmr.msra.gmra.mxu0 %vm444_vm3, %v8909_v11  ;;  %7498 = vmatmul.mubr.msk.bf16.vlgmr.msra.gmra.mxu1 %vm444_vm3, %v8913_v13  ;;  %v8929_v15 = vld [vmem:[%s8905_s27 + $0x9c] sm:$0xff]   ;;  %v8940_v16 = vld [vmem:[%s8905_s27 + $0x10] sm:$0xff]   ;;  %v8943_v17 = vld [vmem:[%s8905_s27 + $0xa4] sm:$0xff]  }
  0x14   : > { %7574 = vmatpush3.bf16.msra.mxu0 %v1097_v10  ;;  %7652 = vmatpush3.bf16.msra.mxu1 %v1457_v12  ;;  %v8954_v18 = vld [vmem:[%s8905_s27 + $0x18] sm:$0xff]   ;;  %v8957_v19 = vld [vmem:[%s8905_s27 + $0xac] sm:$0xff]   ;;  %v8968_v20 = vld [vmem:[%s8905_s27 + $0x20] sm:$0xff]  }
  0x15   : > { %7423 = vmatprep.mubr.msk.bf16.mxu0 %vm8841_vm2, %v11907_v1  ;;  %7501 = vmatprep.mubr.msk.bf16.mxu1 %vm8841_vm2, %v11907_v1  ;;  %v8971_v21 = vld [vmem:[%s8905_s27 + $0xb4] sm:$0xff]   ;;  %v8982_v22 = vld [vmem:[%s8905_s27 + $0x28] sm:$0xff]   ;;  %v8985_v23 = vld [vmem:[%s8905_s27 + $0xbc] sm:$0xff]  }
  0x16   : > { %7729 = vmatprep.subr.bf16.mxu0 %v11907_v1  ;;  %7807 = vmatprep.subr.bf16.mxu1 %v11907_v1  ;;  %v8996_v24 = vld [vmem:[%s8905_s27 + $0x30] sm:$0xff]   ;;  %v8999_v25 = vld [vmem:[%s8905_s27 + $0xc4] sm:$0xff]   ;;  %v9010_v26 = vld [vmem:[%s8905_s27 + $0x38] sm:$0xff]  }
  0x17   : > { %v9013_v27 = vld [vmem:[%s8905_s27 + $0xcc] sm:$0xff]   ;;  %v9024_v28 = vld [vmem:[%s8905_s27 + $0x40] sm:$0xff]   ;;  %v9027_v29 = vld [vmem:[%s8905_s27 + $0xd4] sm:$0xff]  }
  0x18   : > { %v9038_v30 = vld [vmem:[%s8905_s27 + $0x48] sm:$0xff]   ;;  %v9041_v31 = vld [vmem:[%s8905_s27 + $0xdc] sm:$0xff]   ;;  %v9052_v32 = vld [vmem:[%s8905_s27 + $0x50] sm:$0xff]  }
  0x19   : > { %v9055_v33 = vld [vmem:[%s8905_s27 + $0xe4] sm:$0xff]   ;;  %v9066_v34 = vld [vmem:[%s8905_s27 + $0x58] sm:$0xff]   ;;  %v9069_v35 = vld [vmem:[%s8905_s27 + $0xec] sm:$0xff]  }
  0x1a   : > { %v9080_v36 = vld [vmem:[%s8905_s27 + $0x60] sm:$0xff]   ;;  %v9083_v37 = vld [vmem:[%s8905_s27 + $0xf4] sm:$0xff]   ;;  %v9094_v38 = vld [vmem:[%s8905_s27 + $0x68] sm:$0xff]  }
  0x1b   : > { %7424 = vmatmul.mubr.msk.bf16.gmra.mxu0 %vm444_vm3, %v8925_v14  ;;  %7502 = vmatmul.mubr.msk.bf16.gmra.mxu1 %vm444_vm3, %v8929_v15  ;;  %v9097_v39 = vld [vmem:[%s8905_s27 + $0xfc] sm:$0xff]   ;;  %v9108_v40 = vld [vmem:[%s8905_s27 + $0x70] sm:$0xff]   ;;  %v9111_v41 = vld [vmem:[%s8905_s27 + $0x104] sm:$0xff]  }
  0x1c   : > { %7427 = vmatprep.mubr.msk.bf16.mxu0 %vm8841_vm2, %v11907_v1  ;;  %7505 = vmatprep.mubr.msk.bf16.mxu1 %vm8841_vm2, %v11907_v1  ;;  %v9122_v42 = vld [vmem:[%s8905_s27 + $0x78] sm:$0xff]   ;;  %v9125_v43 = vld [vmem:[%s8905_s27 + $0x10c] sm:$0xff]   ;;  %v9136_v44 = vld [vmem:[%s8905_s27 + $0x80] sm:$0xff]  }
  0x1d   : > { %v9139_v45 = vld [vmem:[%s8905_s27 + $0x114] sm:$0xff]   ;;  %v9150_v46 = vld [vmem:[%s8905_s27 + $0x88] sm:$0xff]   ;;  %v9153_v47 = vld [vmem:[%s8905_s27 + $0x11c] sm:$0xff]  }
  0x1e   : > { %v9164_v48 = vld [vmem:[%s8905_s27 + $0x90] ss:$0 sps:$4 sm:$0x11]   ;;  %v9167_v49 = vld [vmem:[%s8905_s27 + $0x124] ss:$0 sps:$4 sm:$0x11]  }
  0x23   : > { %7428 = vmatmul.mubr.msk.bf16.gmra.mxu0 %vm444_vm3, %v8940_v16  ;;  %7506 = vmatmul.mubr.msk.bf16.gmra.mxu1 %vm444_vm3, %v8943_v17 }
  0x24   : > { %7431 = vmatprep.mubr.msk.bf16.mxu0 %vm8841_vm2, %v11907_v1  ;;  %7509 = vmatprep.mubr.msk.bf16.mxu1 %vm8841_vm2, %v11907_v1 }
  0x2b   : > { %7432 = vmatmul.mubr.msk.bf16.gmra.mxu0 %vm444_vm3, %v8954_v18  ;;  %7510 = vmatmul.mubr.msk.bf16.gmra.mxu1 %vm444_vm3, %v8957_v19 }
  0x2c   : > { %7435 = vmatprep.mubr.msk.bf16.mxu0 %vm8841_vm2, %v11907_v1  ;;  %7513 = vmatprep.mubr.msk.bf16.mxu1 %vm8841_vm2, %v11907_v1 }
  0x33   : > { %7436 = vmatmul.mubr.msk.bf16.gmra.mxu0 %vm444_vm3, %v8968_v20  ;;  %7514 = vmatmul.mubr.msk.bf16.gmra.mxu1 %vm444_vm3, %v8971_v21 }
  0x34   : > { %7439 = vmatprep.mubr.msk.bf16.mxu0 %vm8841_vm2, %v11907_v1  ;;  %7517 = vmatprep.mubr.msk.bf16.mxu1 %vm8841_vm2, %v11907_v1 }
  0x3b   : > { %7440 = vmatmul.mubr.msk.bf16.gmra.mxu0 %vm444_vm3, %v8982_v22  ;;  %7518 = vmatmul.mubr.msk.bf16.gmra.mxu1 %vm444_vm3, %v8985_v23 }
  0x3c   : > { %7443 = vmatprep.mubr.msk.bf16.mxu0 %vm8841_vm2, %v11907_v1  ;;  %7521 = vmatprep.mubr.msk.bf16.mxu1 %vm8841_vm2, %v11907_v1 }
  0x43   : > { %7444 = vmatmul.mubr.msk.bf16.gmra.mxu0 %vm444_vm3, %v8996_v24  ;;  %7522 = vmatmul.mubr.msk.bf16.gmra.mxu1 %vm444_vm3, %v8999_v25 }
  0x44   : > { %7447 = vmatprep.mubr.msk.bf16.mxu0 %vm8841_vm2, %v11907_v1  ;;  %7525 = vmatprep.mubr.msk.bf16.mxu1 %vm8841_vm2, %v11907_v1 }
  0x4b   : > { %7448 = vmatmul.mubr.msk.bf16.gmra.mxu0 %vm444_vm3, %v9010_v26  ;;  %7526 = vmatmul.mubr.msk.bf16.gmra.mxu1 %vm444_vm3, %v9013_v27 }
  0x4c   : > { %7451 = vmatprep.mubr.msk.bf16.mxu0 %vm8841_vm2, %v11907_v1  ;;  %7529 = vmatprep.mubr.msk.bf16.mxu1 %vm8841_vm2, %v11907_v1 }
  0x53   : > { %7452 = vmatmul.mubr.msk.bf16.gmra.mxu0 %vm444_vm3, %v9024_v28  ;;  %7530 = vmatmul.mubr.msk.bf16.gmra.mxu1 %vm444_vm3, %v9027_v29 }
  0x54   : > { %7455 = vmatprep.mubr.msk.bf16.mxu0 %vm8841_vm2, %v11907_v1  ;;  %7533 = vmatprep.mubr.msk.bf16.mxu1 %vm8841_vm2, %v11907_v1 }
  0x5b   : > { %7456 = vmatmul.mubr.msk.bf16.gmra.mxu0 %vm444_vm3, %v9038_v30  ;;  %7534 = vmatmul.mubr.msk.bf16.gmra.mxu1 %vm444_vm3, %v9041_v31 }
  0x5c   : > { %7459 = vmatprep.mubr.msk.bf16.mxu0 %vm8841_vm2, %v11907_v1  ;;  %7537 = vmatprep.mubr.msk.bf16.mxu1 %vm8841_vm2, %v11907_v1 }
  0x63   : > { %7460 = vmatmul.mubr.msk.bf16.gmra.mxu0 %vm444_vm3, %v9052_v32  ;;  %7538 = vmatmul.mubr.msk.bf16.gmra.mxu1 %vm444_vm3, %v9055_v33 }
  0x64   : > { %7463 = vmatprep.mubr.msk.bf16.mxu0 %vm8841_vm2, %v11907_v1  ;;  %7541 = vmatprep.mubr.msk.bf16.mxu1 %vm8841_vm2, %v11907_v1 }
  0x6b   : > { %7464 = vmatmul.mubr.msk.bf16.gmra.mxu0 %vm444_vm3, %v9066_v34  ;;  %7542 = vmatmul.mubr.msk.bf16.gmra.mxu1 %vm444_vm3, %v9069_v35 }
  0x6c   : > { %7467 = vmatprep.mubr.msk.bf16.mxu0 %vm8841_vm2, %v11907_v1  ;;  %7545 = vmatprep.mubr.msk.bf16.mxu1 %vm8841_vm2, %v11907_v1 }
  0x73   : > { %7468 = vmatmul.mubr.msk.bf16.gmra.mxu0 %vm444_vm3, %v9080_v36  ;;  %7546 = vmatmul.mubr.msk.bf16.gmra.mxu1 %vm444_vm3, %v9083_v37 }
  0x74   : > { %7471 = vmatprep.mubr.msk.bf16.mxu0 %vm8841_vm2, %v11907_v1  ;;  %7549 = vmatprep.mubr.msk.bf16.mxu1 %vm8841_vm2, %v11907_v1 }
  0x7b   : > { %7472 = vmatmul.mubr.msk.bf16.gmra.mxu0 %vm444_vm3, %v9094_v38  ;;  %7550 = vmatmul.mubr.msk.bf16.gmra.mxu1 %vm444_vm3, %v9097_v39 }
  0x7c   : > { %7475 = vmatprep.mubr.msk.bf16.mxu0 %vm8841_vm2, %v11907_v1  ;;  %7553 = vmatprep.mubr.msk.bf16.mxu1 %vm8841_vm2, %v11907_v1 }
  0x83   : > { %7476 = vmatmul.mubr.msk.bf16.gmra.mxu0 %vm444_vm3, %v9108_v40  ;;  %7554 = vmatmul.mubr.msk.bf16.gmra.mxu1 %vm444_vm3, %v9111_v41 }
  0x84   : > { %7479 = vmatprep.mubr.msk.bf16.mxu0 %vm8841_vm2, %v11907_v1  ;;  %7557 = vmatprep.mubr.msk.bf16.mxu1 %vm8841_vm2, %v11907_v1 }
  0x8b   : > { %7480 = vmatmul.mubr.msk.bf16.gmra.mxu0 %vm444_vm3, %v9122_v42  ;;  %7558 = vmatmul.mubr.msk.bf16.gmra.mxu1 %vm444_vm3, %v9125_v43 }
  0x8c   : > { %7483 = vmatprep.mubr.msk.bf16.mxu0 %vm8841_vm2, %v11907_v1  ;;  %7561 = vmatprep.mubr.msk.bf16.mxu1 %vm8841_vm2, %v11907_v1 }
  0x93   : > { %7484 = vmatmul.mubr.msk.bf16.gmra.mxu0 %vm444_vm3, %v9136_v44  ;;  %7562 = vmatmul.mubr.msk.bf16.gmra.mxu1 %vm444_vm3, %v9139_v45 }
  0x94   : > { %7487 = vmatprep.mubr.msk.bf16.mxu0 %vm8841_vm2, %v11907_v1  ;;  %7565 = vmatprep.mubr.msk.bf16.mxu1 %vm8841_vm2, %v11907_v1 }
  0x9b   : > { %7488 = vmatmul.mubr.msk.bf16.gmra.mxu0 %vm444_vm3, %v9150_v46  ;;  %7566 = vmatmul.mubr.msk.bf16.gmra.mxu1 %vm444_vm3, %v9153_v47 }
  0x9c   : > { %7491 = vmatprep.mubr.msk.bf16.mxu0 %vm8841_vm2, %v11907_v1  ;;  %7569 = vmatprep.mubr.msk.bf16.mxu1 %vm8841_vm2, %v11907_v1 }
  0xa3   : > { %7492 = vmatmul.mubr.msk.bf16.gmra.mxu0 %vm444_vm3, %v9164_v48  ;;  %7570 = vmatmul.mubr.msk.bf16.gmra.mxu1 %vm444_vm3, %v9167_v49 }
  0xa4   : > { %7575 = vmatprep.mubr.msk.bf16.mxu0 %vm8841_vm2, %v11907_v1  ;;  %7653 = vmatprep.mubr.msk.bf16.mxu1 %vm8841_vm2, %v11907_v1 }
  0xab   : > { %7576 = vmatmul.mubr.msk.bf16.vlgmr.msra.gmra.mxu0 %vm444_vm3, %v8909_v11  ;;  %7654 = vmatmul.mubr.msk.bf16.vlgmr.msra.gmra.mxu1 %vm444_vm3, %v8913_v13 }
  0xac   : > { %7730 = vmatpush3.bf16.msra.mxu0 %v1966_v52  ;;  %7808 = vmatpush3.bf16.msra.mxu1 %v2336_v53 }
  0xad   : > { %7579 = vmatprep.mubr.msk.bf16.mxu0 %vm8841_vm2, %v11907_v1  ;;  %7657 = vmatprep.mubr.msk.bf16.mxu1 %vm8841_vm2, %v11907_v1 }
  0xae   : > { %7885 = vmatprep.subr.bf16.mxu0 %v11907_v1  ;;  %7963 = vmatprep.subr.bf16.mxu1 %v11907_v1 }
  0xb3   : > { %7580 = vmatmul.mubr.msk.bf16.gmra.mxu0 %vm444_vm3, %v8925_v14  ;;  %7658 = vmatmul.mubr.msk.bf16.gmra.mxu1 %vm444_vm3, %v8929_v15 }
  0xb4   : > { %7583 = vmatprep.mubr.msk.bf16.mxu0 %vm8841_vm2, %v11907_v1  ;;  %7661 = vmatprep.mubr.msk.bf16.mxu1 %vm8841_vm2, %v11907_v1 }
  0xbb   : > { %7584 = vmatmul.mubr.msk.bf16.gmra.mxu0 %vm444_vm3, %v8940_v16  ;;  %7662 = vmatmul.mubr.msk.bf16.gmra.mxu1 %vm444_vm3, %v8943_v17 }
  0xbc   : > { %7587 = vmatprep.mubr.msk.bf16.mxu0 %vm8841_vm2, %v11907_v1  ;;  %7665 = vmatprep.mubr.msk.bf16.mxu1 %vm8841_vm2, %v11907_v1 }
  0xc3   : > { %7588 = vmatmul.mubr.msk.bf16.gmra.mxu0 %vm444_vm3, %v8954_v18  ;;  %7666 = vmatmul.mubr.msk.bf16.gmra.mxu1 %vm444_vm3, %v8957_v19 }
  0xc4   : > { %7591 = vmatprep.mubr.msk.bf16.mxu0 %vm8841_vm2, %v11907_v1  ;;  %7669 = vmatprep.mubr.msk.bf16.mxu1 %vm8841_vm2, %v11907_v1 }
  0xcb   : > { %7592 = vmatmul.mubr.msk.bf16.gmra.mxu0 %vm444_vm3, %v8968_v20  ;;  %7670 = vmatmul.mubr.msk.bf16.gmra.mxu1 %vm444_vm3, %v8971_v21 }
  0xcc   : > { %7595 = vmatprep.mubr.msk.bf16.mxu0 %vm8841_vm2, %v11907_v1  ;;  %7673 = vmatprep.mubr.msk.bf16.mxu1 %vm8841_vm2, %v11907_v1 }
  0xd3   : > { %v543_v54 = vpop.f32.mrf.mxu0  ;;  %7596 = vmatmul.mubr.msk.bf16.gmra.mxu0 %vm444_vm3, %v8982_v22  ;;  %v913_v55 = vpop.f32.mrf.mxu1  ;;  %7674 = vmatmul.mubr.msk.bf16.gmra.mxu1 %vm444_vm3, %v8985_v23 }
  0xd4   : > { %7599 = vmatprep.mubr.msk.bf16.mxu0 %vm8841_vm2, %v11907_v1  ;;  %v9233_v56 = vadd.f32 %v913_v55, %v543_v54  ;;  %7677 = vmatprep.mubr.msk.bf16.mxu1 %vm8841_vm2, %v11907_v1 }
  0xd5   : > { %v7421_v57 = vpop.f32.mrf.mxu0  ;;  %v7499_v58 = vpop.f32.mrf.mxu1 }
  0xd7   : > { %v546_v59 = vpop.f32.mrf.mxu0  ;;  %v916_v60 = vpop.f32.mrf.mxu1 }
  0xd8   : > { %v9237_v61 = vadd.f32 %v916_v60, %v546_v59 }
  0xd9   : > { %v7422_v62 = vpop.f32.mrf.mxu0  ;;  %v7500_v63 = vpop.f32.mrf.mxu1 }
  0xdb   : > { %v551_v0 = vpop.f32.mrf.mxu0  ;;  %7600 = vmatmul.mubr.msk.bf16.gmra.mxu0 %vm444_vm3, %v8996_v24  ;;  %v921_v2 = vpop.f32.mrf.mxu1  ;;  %7678 = vmatmul.mubr.msk.bf16.gmra.mxu1 %vm444_vm3, %v8999_v25 }
  0xdc   : > { %7603 = vmatprep.mubr.msk.bf16.mxu0 %vm8841_vm2, %v11907_v1  ;;  %v9245_v3 = vadd.f32 %v921_v2, %v551_v0  ;;  %7681 = vmatprep.mubr.msk.bf16.mxu1 %vm8841_vm2, %v11907_v1 }
  0xdd   : > { %v7425_v4 = vpop.f32.mrf.mxu0  ;;  %v7503_v6 = vpop.f32.mrf.mxu1 }
  0xdf   : > { %v554_v7 = vpop.f32.mrf.mxu0  ;;  %v924_v8 = vpop.f32.mrf.mxu1 }
  0xe0   : > { %v9249_v9 = vadd.f32 %v924_v8, %v554_v7 }
  0xe1   : > { %v7426_v10 = vpop.f32.mrf.mxu0  ;;  %v7504_v11 = vpop.f32.mrf.mxu1 }
  0xe3   : > { %v559_v12 = vpop.f32.mrf.mxu0  ;;  %7604 = vmatmul.mubr.msk.bf16.gmra.mxu0 %vm444_vm3, %v9010_v26  ;;  %v929_v13 = vpop.f32.mrf.mxu1  ;;  %7682 = vmatmul.mubr.msk.bf16.gmra.mxu1 %vm444_vm3, %v9013_v27 }
  0xe4   : > { %7607 = vmatprep.mubr.msk.bf16.mxu0 %vm8841_vm2, %v11907_v1  ;;  %v9257_v14 = vadd.f32 %v929_v13, %v559_v12  ;;  %7685 = vmatprep.mubr.msk.bf16.mxu1 %vm8841_vm2, %v11907_v1 }
  0xe5   : > { %v7429_v15 = vpop.f32.mrf.mxu0  ;;  %v7507_v16 = vpop.f32.mrf.mxu1 }
  0xe7   : > { %v562_v17 = vpop.f32.mrf.mxu0  ;;  %v932_v18 = vpop.f32.mrf.mxu1 }
  0xe8   : > { %v9261_v19 = vadd.f32 %v932_v18, %v562_v17 }
  0xe9   : > { %v7430_v20 = vpop.f32.mrf.mxu0  ;;  %v7508_v21 = vpop.f32.mrf.mxu1 }
  0xeb   : > { %v567_v22 = vpop.f32.mrf.mxu0  ;;  %7608 = vmatmul.mubr.msk.bf16.gmra.mxu0 %vm444_vm3, %v9024_v28  ;;  %v937_v23 = vpop.f32.mrf.mxu1  ;;  %7686 = vmatmul.mubr.msk.bf16.gmra.mxu1 %vm444_vm3, %v9027_v29 }
  0xec   : > { %7611 = vmatprep.mubr.msk.bf16.mxu0 %vm8841_vm2, %v11907_v1  ;;  %v9269_v24 = vadd.f32 %v937_v23, %v567_v22  ;;  %7689 = vmatprep.mubr.msk.bf16.mxu1 %vm8841_vm2, %v11907_v1 }
  0xed   : > { %v7433_v25 = vpop.f32.mrf.mxu0  ;;  %v7511_v26 = vpop.f32.mrf.mxu1 }
  0xef   : > { %v570_v27 = vpop.f32.mrf.mxu0  ;;  %v940_v50 = vpop.f32.mrf.mxu1 }
  0xf0   : > { %v9273_v51 = vadd.f32 %v940_v50, %v570_v27 }
  0xf1   : > { %v7434_v52 = vpop.f32.mrf.mxu0  ;;  %v7512_v28 = vpop.f32.mrf.mxu1 }
  0xf3   : > { %v575_v53 = vpop.f32.mrf.mxu0  ;;  %7612 = vmatmul.mubr.msk.bf16.gmra.mxu0 %vm444_vm3, %v9038_v30  ;;  %v945_v29 = vpop.f32.mrf.mxu1  ;;  %7690 = vmatmul.mubr.msk.bf16.gmra.mxu1 %vm444_vm3, %v9041_v31 }
  0xf4   : > { %7615 = vmatprep.mubr.msk.bf16.mxu0 %vm8841_vm2, %v11907_v1  ;;  %v9281_v54 = vadd.f32 %v945_v29, %v575_v53  ;;  %7693 = vmatprep.mubr.msk.bf16.mxu1 %vm8841_vm2, %v11907_v1 }
  0xf5   : > { %v7437_v55 = vpop.f32.mrf.mxu0  ;;  %v7515_v57 = vpop.f32.mrf.mxu1 }
  0xf7   : > { %v578_v58 = vpop.f32.mrf.mxu0  ;;  %v948_v59 = vpop.f32.mrf.mxu1 }
  0xf8   : > { %v9285_v60 = vadd.f32 %v948_v59, %v578_v58 }
  0xf9   : > { %v7438_v62 = vpop.f32.mrf.mxu0  ;;  %v7516_v30 = vpop.f32.mrf.mxu1 }
  0xfb   : > { %v583_v63 = vpop.f32.mrf.mxu0  ;;  %7616 = vmatmul.mubr.msk.bf16.gmra.mxu0 %vm444_vm3, %v9052_v32  ;;  %v953_v31 = vpop.f32.mrf.mxu1  ;;  %7694 = vmatmul.mubr.msk.bf16.gmra.mxu1 %vm444_vm3, %v9055_v33 }
  0xfc   : > { %7619 = vmatprep.mubr.msk.bf16.mxu0 %vm8841_vm2, %v11907_v1  ;;  %v9293_v0 = vadd.f32 %v953_v31, %v583_v63  ;;  %7697 = vmatprep.mubr.msk.bf16.mxu1 %vm8841_vm2, %v11907_v1 }
  0xfd   : > { %v7441_v2 = vpop.f32.mrf.mxu0  ;;  %v7519_v4 = vpop.f32.mrf.mxu1 }
  0xff   : > { %v586_v6 = vpop.f32.mrf.mxu0  ;;  %v956_v7 = vpop.f32.mrf.mxu1 }
 0x100   : > { %v9297_v8 = vadd.f32 %v956_v7, %v586_v6 }
 0x101   : > { %v7442_v10 = vpop.f32.mrf.mxu0  ;;  %v7520_v32 = vpop.f32.mrf.mxu1 }
 0x103   : > { %v591_v11 = vpop.f32.mrf.mxu0  ;;  %7620 = vmatmul.mubr.msk.bf16.gmra.mxu0 %vm444_vm3, %v9066_v34  ;;  %v961_v33 = vpop.f32.mrf.mxu1  ;;  %7698 = vmatmul.mubr.msk.bf16.gmra.mxu1 %vm444_vm3, %v9069_v35 }
 0x104   : > { %7623 = vmatprep.mubr.msk.bf16.mxu0 %vm8841_vm2, %v11907_v1  ;;  %v9305_v12 = vadd.f32 %v961_v33, %v591_v11  ;;  %7701 = vmatprep.mubr.msk.bf16.mxu1 %vm8841_vm2, %v11907_v1 }
 0x105   : > { %v7445_v13 = vpop.f32.mrf.mxu0  ;;  %v7523_v15 = vpop.f32.mrf.mxu1 }
 0x107   : > { %v594_v16 = vpop.f32.mrf.mxu0  ;;  %v964_v17 = vpop.f32.mrf.mxu1 }
 0x108   : > { %v9309_v18 = vadd.f32 %v964_v17, %v594_v16 }
 0x109   : > { %v7446_v20 = vpop.f32.mrf.mxu0  ;;  %v7524_v34 = vpop.f32.mrf.mxu1 }
 0x10b   : > { %v599_v21 = vpop.f32.mrf.mxu0  ;;  %7624 = vmatmul.mubr.msk.bf16.gmra.mxu0 %vm444_vm3, %v9080_v36  ;;  %v969_v35 = vpop.f32.mrf.mxu1  ;;  %7702 = vmatmul.mubr.msk.bf16.gmra.mxu1 %vm444_vm3, %v9083_v37 }
 0x10c   : > { %7627 = vmatprep.mubr.msk.bf16.mxu0 %vm8841_vm2, %v11907_v1  ;;  %v9317_v22 = vadd.f32 %v969_v35, %v599_v21  ;;  %7705 = vmatprep.mubr.msk.bf16.mxu1 %vm8841_vm2, %v11907_v1 }
 0x10d   : > { %v7449_v23 = vpop.f32.mrf.mxu0  ;;  %v7527_v25 = vpop.f32.mrf.mxu1 }
 0x10f   : > { %v602_v26 = vpop.f32.mrf.mxu0  ;;  %v972_v27 = vpop.f32.mrf.mxu1 }
 0x110   : > { %v9321_v50 = vadd.f32 %v972_v27, %v602_v26 }
 0x111   : > { %v7450_v52 = vpop.f32.mrf.mxu0  ;;  %v7528_v36 = vpop.f32.mrf.mxu1 }
 0x113   : > { %v607_v28 = vpop.f32.mrf.mxu0  ;;  %7628 = vmatmul.mubr.msk.bf16.gmra.mxu0 %vm444_vm3, %v9094_v38  ;;  %v977_v37 = vpop.f32.mrf.mxu1  ;;  %7706 = vmatmul.mubr.msk.bf16.gmra.mxu1 %vm444_vm3, %v9097_v39 }
 0x114   : > { %7631 = vmatprep.mubr.msk.bf16.mxu0 %vm8841_vm2, %v11907_v1  ;;  %v9329_v53 = vadd.f32 %v977_v37, %v607_v28  ;;  %7709 = vmatprep.mubr.msk.bf16.mxu1 %vm8841_vm2, %v11907_v1 }
 0x115   : > { %v7453_v29 = vpop.f32.mrf.mxu0  ;;  %v7531_v55 = vpop.f32.mrf.mxu1 }
 0x117   : > { %v610_v57 = vpop.f32.mrf.mxu0  ;;  %v980_v58 = vpop.f32.mrf.mxu1 }
 0x118   : > { %v9333_v59 = vadd.f32 %v980_v58, %v610_v57 }
 0x119   : > { %v7454_v62 = vpop.f32.mrf.mxu0  ;;  %v7532_v38 = vpop.f32.mrf.mxu1 }
 0x11b   : > { %v615_v30 = vpop.f32.mrf.mxu0  ;;  %7632 = vmatmul.mubr.msk.bf16.gmra.mxu0 %vm444_vm3, %v9108_v40  ;;  %v985_v39 = vpop.f32.mrf.mxu1  ;;  %7710 = vmatmul.mubr.msk.bf16.gmra.mxu1 %vm444_vm3, %v9111_v41 }
 0x11c   : > { %7635 = vmatprep.mubr.msk.bf16.mxu0 %vm8841_vm2, %v11907_v1  ;;  %v9341_v63 = vadd.f32 %v985_v39, %v615_v30  ;;  %7713 = vmatprep.mubr.msk.bf16.mxu1 %vm8841_vm2, %v11907_v1 }
 0x11d   : > { %v7457_v31 = vpop.f32.mrf.mxu0  ;;  %v7535_v2 = vpop.f32.mrf.mxu1 }
 0x11e   : > { %v6826_v31 = vld [vmem:[%s11877_s1 + $0xc] sm:$0x3] }
 0x11f   : > { %v618_v4 = vpop.f32.mrf.mxu0  ;;  %v988_v6 = vpop.f32.mrf.mxu1 }
 0x120   : > { %v9345_v7 = vadd.f32 %v988_v6, %v618_v4 }
 0x121   : > { %v7458_v10 = vpop.f32.mrf.mxu0  ;;  %v7536_v40 = vpop.f32.mrf.mxu1 }
 0x122   : > { %v9403_v10 = vld [vmem:[%s8905_s27 + $0x1bc] sm:$0xff]   ;;  %v2556_v40 = vand.u32 %v6826_v31, %v8883_v5 }
 0x123   : > { %v623_v32 = vpop.f32.mrf.mxu0  ;;  %7636 = vmatmul.mubr.msk.bf16.gmra.mxu0 %vm444_vm3, %v9122_v42  ;;  %v993_v41 = vpop.f32.mrf.mxu1  ;;  %7714 = vmatmul.mubr.msk.bf16.gmra.mxu1 %vm444_vm3, %v9125_v43 }
 0x124   : > { %7639 = vmatprep.mubr.msk.bf16.mxu0 %vm8841_vm2, %v11907_v1  ;;  %v9353_v11 = vadd.f32 %v993_v41, %v623_v32  ;;  %7717 = vmatprep.mubr.msk.bf16.mxu1 %vm8841_vm2, %v11907_v1 }
 0x125   : > { %v7461_v33 = vpop.f32.mrf.mxu0  ;;  %v7539_v13 = vpop.f32.mrf.mxu1 }
 0x127   : > { %v626_v15 = vpop.f32.mrf.mxu0  ;;  %v996_v16 = vpop.f32.mrf.mxu1 }
 0x128   : > { %v9357_v17 = vadd.f32 %v996_v16, %v626_v15 }
 0x129   : > { %v7462_v20 = vpop.f32.mrf.mxu0  ;;  %v7540_v42 = vpop.f32.mrf.mxu1 }
 0x12b   : > { %v631_v34 = vpop.f32.mrf.mxu0  ;;  %7640 = vmatmul.mubr.msk.bf16.gmra.mxu0 %vm444_vm3, %v9136_v44  ;;  %v1001_v43 = vpop.f32.mrf.mxu1  ;;  %7718 = vmatmul.mubr.msk.bf16.gmra.mxu1 %vm444_vm3, %v9139_v45 }
 0x12c   : > { %7643 = vmatprep.mubr.msk.bf16.mxu0 %vm8841_vm2, %v11907_v1  ;;  %v9365_v21 = vadd.f32 %v1001_v43, %v631_v34  ;;  %7721 = vmatprep.mubr.msk.bf16.mxu1 %vm8841_vm2, %v11907_v1 }
 0x12d   : > { %v7465_v35 = vpop.f32.mrf.mxu0  ;;  %v7543_v23 = vpop.f32.mrf.mxu1 }
 0x12e   : > { %v9421_v35 = vld [vmem:[%s8905_s27 + $0x130] sm:$0xff]  }
 0x12f   : > { %v634_v25 = vpop.f32.mrf.mxu0  ;;  %v1004_v26 = vpop.f32.mrf.mxu1 }
 0x130   : > { %v9369_v27 = vadd.f32 %v1004_v26, %v634_v25  ;;  %v9425_v25 = vld [vmem:[%s8905_s27 + $0x1c4] sm:$0xff]  }
 0x131   : > { %v7466_v52 = vpop.f32.mrf.mxu0  ;;  %v7544_v44 = vpop.f32.mrf.mxu1 }
 0x133   : > { %v639_v36 = vpop.f32.mrf.mxu0  ;;  %7644 = vmatmul.mubr.msk.bf16.gmra.mxu0 %vm444_vm3, %v9150_v46  ;;  %v1009_v45 = vpop.f32.mrf.mxu1  ;;  %7722 = vmatmul.mubr.msk.bf16.gmra.mxu1 %vm444_vm3, %v9153_v47 }
 0x134   : > { %7647 = vmatprep.mubr.msk.bf16.mxu0 %vm8841_vm2, %v11907_v1  ;;  %v9377_v28 = vadd.f32 %v1009_v45, %v639_v36  ;;  %7725 = vmatprep.mubr.msk.bf16.mxu1 %vm8841_vm2, %v11907_v1 }
 0x135   : > { %v7469_v37 = vpop.f32.mrf.mxu0  ;;  %v7547_v29 = vpop.f32.mrf.mxu1 }
 0x137   : > { %v642_v55 = vpop.f32.mrf.mxu0  ;;  %v1012_v57 = vpop.f32.mrf.mxu1 }
 0x138   : > { %v9381_v58 = vadd.f32 %v1012_v57, %v642_v55 }
 0x139   : > { %v7470_v46 = vpop.f32.mrf.mxu0  ;;  %v7548_v62 = vpop.f32.mrf.mxu1 }
 0x13a   : > { %v9440_v46 = vld [vmem:[%s8905_s27 + $0x138] sm:$0xff]  }
 0x13b   : > { %v647_v38 = vpop.f32.mrf.mxu0  ;;  %7648 = vmatmul.mubr.msk.bf16.gmra.mxu0 %vm444_vm3, %v9164_v48  ;;  %v1017_v47 = vpop.f32.mrf.mxu1  ;;  %7726 = vmatmul.mubr.msk.bf16.gmra.mxu1 %vm444_vm3, %v9167_v49  ;;  %v6846_v48 = vld [vmem:[%s11877_s1 + $0xe] sm:$0x3] }
 0x13c   : > { %7731 = vmatprep.mubr.msk.bf16.mxu0 %vm8841_vm2, %v11907_v1  ;;  %v9389_v30 = vadd.f32 %v1017_v47, %v647_v38  ;;  %7809 = vmatprep.mubr.msk.bf16.mxu1 %vm8841_vm2, %v11907_v1  ;;  %v9400_v49 = vld [vmem:[%s8905_s27 + $0x128] sm:$0xff]   ;;  %v2915_v33 = vand.u32 %v6846_v48, %v8883_v5 }
 0x13d   : > { %v7473_v39 = vpop.f32.mrf.mxu0  ;;  %v7551_v2 = vpop.f32.mrf.mxu1  ;;  %v9443_v38 = vld [vmem:[%s8905_s27 + $0x1cc] sm:$0xff]  }
 0x13f   : > { %v650_v4 = vpop.f32.mrf.mxu0  ;;  %v1020_v6 = vpop.f32.mrf.mxu1 }
 0x140   : > { %v9406_v32 = vadd.f32 %v1020_v6, %v650_v4 }
 0x141   : > { %v7474_v41 = vpop.f32.mrf.mxu0  ;;  %v7552_v13 = vpop.f32.mrf.mxu1 }
 0x143   : > { %v655_v15 = vpop.f32.mrf.mxu0  ;;  %7732 = vmatmul.mubr.msk.bf16.vlgmr.msra.gmra.mxu0 %vm444_vm3, %v9400_v49  ;;  %v1025_v16 = vpop.f32.mrf.mxu1  ;;  %7810 = vmatmul.mubr.msk.bf16.vlgmr.msra.gmra.mxu1 %vm444_vm3, %v9403_v10 }
 0x144   : > { %7886 = vmatpush3.bf16.msra.mxu0 %v2556_v40  ;;  %v9413_v20 = vadd.f32 %v1025_v16, %v655_v15  ;;  %7964 = vmatpush3.bf16.msra.mxu1 %v2915_v33  ;;  %v9458_v33 = vld [vmem:[%s8905_s27 + $0x140] sm:$0xff]   ;;  %v9461_v15 = vld [vmem:[%s8905_s27 + $0x1d4] sm:$0xff]  }
 0x145   : > { %v7477_v42 = vpop.f32.mrf.mxu0  ;;  %7735 = vmatprep.mubr.msk.bf16.mxu0 %vm8841_vm2, %v11907_v1  ;;  %v7555_v34 = vpop.f32.mrf.mxu1  ;;  %7813 = vmatprep.mubr.msk.bf16.mxu1 %vm8841_vm2, %v11907_v1 }
 0x146   : > { %8041 = vmatprep.subr.bf16.mxu0 %v11907_v1  ;;  %8119 = vmatprep.subr.bf16.mxu1 %v11907_v1 }
 0x147   : > { %v658_v43 = vpop.f32.mrf.mxu0  ;;  %v1028_v23 = vpop.f32.mrf.mxu1 }
 0x148   : > { %v9427_v26 = vadd.f32 %v1028_v23, %v658_v43 }
 0x149   : > { %v7478_v52 = vpop.f32.mrf.mxu0  ;;  %v7556_v44 = vpop.f32.mrf.mxu1 }
 0x14b   : > { %v663_v36 = vpop.f32.mrf.mxu0  ;;  %7736 = vmatmul.mubr.msk.bf16.gmra.mxu0 %vm444_vm3, %v9421_v35  ;;  %v1033_v45 = vpop.f32.mrf.mxu1  ;;  %7814 = vmatmul.mubr.msk.bf16.gmra.mxu1 %vm444_vm3, %v9425_v25 }
 0x14c   : > { %7739 = vmatprep.mubr.msk.bf16.mxu0 %vm8841_vm2, %v11907_v1  ;;  %v9435_v37 = vadd.f32 %v1033_v45, %v663_v36  ;;  %7817 = vmatprep.mubr.msk.bf16.mxu1 %vm8841_vm2, %v11907_v1  ;;  %v9474_v45 = vld [vmem:[%s8905_s27 + $0x148] sm:$0xff]  }
 0x14d   : > { %v7481_v29 = vpop.f32.mrf.mxu0  ;;  %v7559_v55 = vpop.f32.mrf.mxu1 }
 0x14e   : > { %v9477_v55 = vld [vmem:[%s8905_s27 + $0x1dc] sm:$0xff]  }
 0x14f   : > { %v666_v57 = vpop.f32.mrf.mxu0  ;;  %v1036_v62 = vpop.f32.mrf.mxu1 }
 0x150   : > { %v9445_v47 = vadd.f32 %v1036_v62, %v666_v57 }
 0x151   : > { %v7482_v39 = vpop.f32.mrf.mxu0  ;;  %v7560_v31 = vpop.f32.mrf.mxu1 }
 0x153   : > { %v671_v2 = vpop.f32.mrf.mxu0  ;;  %7740 = vmatmul.mubr.msk.bf16.gmra.mxu0 %vm444_vm3, %v9440_v46  ;;  %v1041_v48 = vpop.f32.mrf.mxu1  ;;  %7818 = vmatmul.mubr.msk.bf16.gmra.mxu1 %vm444_vm3, %v9443_v38 }
 0x154   : > { %7743 = vmatprep.mubr.msk.bf16.mxu0 %vm8841_vm2, %v11907_v1  ;;  %v9453_v4 = vadd.f32 %v1041_v48, %v671_v2  ;;  %7821 = vmatprep.mubr.msk.bf16.mxu1 %vm8841_vm2, %v11907_v1 }
 0x155   : > { %v7485_v6 = vpop.f32.mrf.mxu0  ;;  %v7563_v40 = vpop.f32.mrf.mxu1 }
 0x156   : > { %v9488_v40 = vld [vmem:[%s8905_s27 + $0x150] sm:$0xff]  }
 0x157   : > { %v674_v41 = vpop.f32.mrf.mxu0  ;;  %v1044_v13 = vpop.f32.mrf.mxu1  ;;  %11941 = vst [vmem:[#allocation2_spill] sm:$0xff] %v9488_v40 }
 0x158   : > { %v9463_v16 = vadd.f32 %v1044_v13, %v674_v41  ;;  %v9491_v13 = vld [vmem:[%s8905_s27 + $0x1e4] sm:$0xff]  }
 0x159   : > { %v7486_v42 = vpop.f32.mrf.mxu0  ;;  %v7564_v34 = vpop.f32.mrf.mxu1  ;;  %11942 = vst [vmem:[#allocation3_spill] sm:$0xff] %v9491_v13 }
 0x15b   : > { %v679_v43 = vpop.f32.mrf.mxu0  ;;  %7744 = vmatmul.mubr.msk.bf16.gmra.mxu0 %vm444_vm3, %v9458_v33  ;;  %v1049_v23 = vpop.f32.mrf.mxu1  ;;  %7822 = vmatmul.mubr.msk.bf16.gmra.mxu1 %vm444_vm3, %v9461_v15 }
 0x15c   : > { %7747 = vmatprep.mubr.msk.bf16.mxu0 %vm8841_vm2, %v11907_v1  ;;  %7825 = vmatprep.mubr.msk.bf16.mxu1 %vm8841_vm2, %v11907_v1 }
 0x15d   : > { %v7489_v52 = vpop.f32.mrf.mxu0  ;;  %v7567_v44 = vpop.f32.mrf.mxu1 }
 0x15f   : > { %v681_v36 = vpop.f32.mrf.mxu0  ;;  %v1051_v29 = vpop.f32.mrf.mxu1 }
 0x160   : > { %v9502_v29 = vld [vmem:[%s8905_s27 + $0x158] sm:$0xff]  }
 0x161   : > { %v7490_v57 = vpop.f32.mrf.mxu0  ;;  %v7568_v62 = vpop.f32.mrf.mxu1  ;;  %11943 = vst [vmem:[#allocation4_spill] sm:$0xff] %v9502_v29 }
 0x163   : > { %v685_v39 = vpop.f32.mrf.mxu0  ;;  %7748 = vmatmul.mubr.msk.bf16.gmra.mxu0 %vm444_vm3, %v9474_v45  ;;  %v1055_v31 = vpop.f32.mrf.mxu1  ;;  %7826 = vmatmul.mubr.msk.bf16.gmra.mxu1 %vm444_vm3, %v9477_v55 }
 0x164   : > { %7751 = vmatprep.mubr.msk.bf16.mxu0 %vm8841_vm2, %v11907_v1  ;;  %7829 = vmatprep.mubr.msk.bf16.mxu1 %vm8841_vm2, %v11907_v1  ;;  %v9505_v31 = vld [vmem:[%s8905_s27 + $0x1ec] sm:$0xff]  }
 0x165   : > { %v7493_v2 = vpop.f32.mrf.mxu0  ;;  %v7571_v48 = vpop.f32.mrf.mxu1  ;;  %11944 = vst [vmem:[#allocation5_spill] sm:$0xff] %v9505_v31 }
 0x167   : > { %v687_v6 = vpop.f32.mrf.mxu0  ;;  %v1057_v41 = vpop.f32.mrf.mxu1 }
 0x169   : > { %v7494_v42 = vpop.f32.mrf.mxu0  ;;  %v7572_v34 = vpop.f32.mrf.mxu1 }
 0x16b   : > { %v1133_v43 = vpop.f32.mrf.mxu0  ;;  %7752 = vmatmul.mubr.msk.bf16.gmra.mxu0 %vm444_vm3, %v9488_v40  ;;  %v1493_v23 = vpop.f32.mrf.mxu1  ;;  %7830 = vmatmul.mubr.msk.bf16.gmra.mxu1 %vm444_vm3, %v9491_v13  ;;  %v9527_v13 = vld [vmem:[%s8905_s27 + $0x1f4] sm:$0xff]  }
 0x16c   : > { %7755 = vmatprep.mubr.msk.bf16.mxu0 %vm8841_vm2, %v11907_v1  ;;  %7833 = vmatprep.mubr.msk.bf16.mxu1 %vm8841_vm2, %v11907_v1  ;;  %v1317_v57 = vrot.slane %v1133_v43, 1  ;;  %v1676_v2 = vrot.slane %v1493_v23, 1  ;;  %11946 = vst [vmem:[#allocation7_spill] sm:$0xff] %v9527_v13 }
 0x16d   : > { %v7577_v52 = vpop.f32.mrf.mxu0  ;;  %v7655_v44 = vpop.f32.mrf.mxu1 }
 0x16f   : > { %v1136_v36 = vpop.f32.mrf.mxu0  ;;  %v1496_v39 = vpop.f32.mrf.mxu1 }
 0x170   : > { %v1318_v62 = vrot.slane %v1136_v36, 1  ;;  %v1677_v48 = vrot.slane %v1496_v39, 1 }
 0x171   : > { %v7578_v6 = vpop.f32.mrf.mxu0  ;;  %v7656_v42 = vpop.f32.mrf.mxu1 }
 0x172   : > { %v1319_v41 = vsel %vm1316_vm4, %v1317_v57, %v1318_v62  ;;  %v1678_v44 = vsel %vm1316_vm4, %v1676_v2, %v1677_v48 }
 0x173   : > { %v1141_v34 = vpop.f32.mrf.mxu0  ;;  %7756 = vmatmul.mubr.msk.bf16.gmra.mxu0 %vm444_vm3, %v9502_v29  ;;  %v1420_v52 = vadd.f32 %v1319_v41, %v9233_v56  ;;  %v1501_v36 = vpop.f32.mrf.mxu1  ;;  %7834 = vmatmul.mubr.msk.bf16.gmra.mxu1 %vm444_vm3, %v9505_v31  ;;  %v9522_v41 = vld [vmem:[%s8905_s27 + $0x160] sm:$0xff]  }
 0x174   : > { %v1320_v43 = vrot.slane %v1141_v34, 1  ;;  %7759 = vmatprep.mubr.msk.bf16.mxu0 %vm8841_vm2, %v11907_v1  ;;  %v1679_v23 = vrot.slane %v1501_v36, 1  ;;  %7837 = vmatprep.mubr.msk.bf16.mxu1 %vm8841_vm2, %v11907_v1  ;;  %11945 = vst [vmem:[#allocation6_spill] sm:$0xff] %v9522_v41 }
 0x175   : > { %v7581_v57 = vpop.f32.mrf.mxu0  ;;  %v9518_v39 = vadd.f32 %v1678_v44, %v1420_v52  ;;  %v7659_v6 = vpop.f32.mrf.mxu1 }
 0x176   : > { %v1321_v56 = vsel %vm1316_vm4, %v1318_v62, %v1320_v43  ;;  %v1680_v34 = vsel %vm1316_vm4, %v1677_v48, %v1679_v23 }
 0x177   : > { %v1144_v2 = vpop.f32.mrf.mxu0  ;;  %v1421_v42 = vadd.f32 %v1321_v56, %v9237_v61  ;;  %v1504_v29 = vpop.f32.mrf.mxu1 }
 0x178   : > { %v1322_v31 = vrot.slane %v1144_v2, 1  ;;  %v1681_v36 = vrot.slane %v1504_v29, 1 }
 0x179   : > { %v7582_v57 = vpop.f32.mrf.mxu0  ;;  %v9529_v40 = vadd.f32 %v1680_v34, %v1421_v42  ;;  %v7660_v44 = vpop.f32.mrf.mxu1  ;;  %v9546_v34 = vld [vmem:[%s8905_s27 + $0x168] sm:$0xff]  }
 0x17a   : > { %v1323_v52 = vsel %vm1316_vm4, %v1320_v43, %v1322_v31  ;;  %v1682_v48 = vsel %vm1316_vm4, %v1679_v23, %v1681_v36  ;;  %11947 = vst [vmem:[#allocation8_spill] sm:$0xff] %v9546_v34 }
 0x17b   : > { %v1149_v62 = vpop.f32.mrf.mxu0  ;;  %7760 = vmatmul.mubr.msk.bf16.gmra.mxu0 %vm444_vm3, %v9522_v41  ;;  %v1422_v61 = vadd.f32 %v1323_v52, %v9245_v3  ;;  %v1509_v6 = vpop.f32.mrf.mxu1  ;;  %7838 = vmatmul.mubr.msk.bf16.gmra.mxu1 %vm444_vm3, %v9527_v13  ;;  %v9551_v13 = vld [vmem:[%s8905_s27 + $0x1fc] sm:$0xff]  }
 0x17c   : > { %v1324_v56 = vrot.slane %v1149_v62, 1  ;;  %7763 = vmatprep.mubr.msk.bf16.mxu0 %vm8841_vm2, %v11907_v1  ;;  %v1683_v29 = vrot.slane %v1509_v6, 1  ;;  %7841 = vmatprep.mubr.msk.bf16.mxu1 %vm8841_vm2, %v11907_v1  ;;  %11948 = vst [vmem:[#allocation9_spill] sm:$0xff] %v9551_v13 }
 0x17d   : > { %v7585_v43 = vpop.f32.mrf.mxu0  ;;  %v9542_v2 = vadd.f32 %v1682_v48, %v1422_v61  ;;  %v7663_v42 = vpop.f32.mrf.mxu1 }
 0x17e   : > { %v1325_v3 = vsel %vm1316_vm4, %v1322_v31, %v1324_v56  ;;  %v1684_v52 = vsel %vm1316_vm4, %v1681_v36, %v1683_v29 }
 0x17f   : > { %v1152_v23 = vpop.f32.mrf.mxu0  ;;  %v1423_v57 = vadd.f32 %v1325_v3, %v9249_v9  ;;  %v1512_v62 = vpop.f32.mrf.mxu1 }
 0x180   : > { %v1326_v44 = vrot.slane %v1152_v23, 1  ;;  %v1685_v6 = vrot.slane %v1512_v62, 1  ;;  %v9570_v62 = vld [vmem:[%s8905_s27 + $0x170] sm:$0xff]  }
 0x181   : > { %v7586_v43 = vpop.f32.mrf.mxu0  ;;  %v9553_v41 = vadd.f32 %v1684_v52, %v1423_v57  ;;  %v7664_v48 = vpop.f32.mrf.mxu1  ;;  %11949 = vst [vmem:[#allocation10_spill] sm:$0xff] %v9570_v62 }
 0x182   : > { %v1327_v61 = vsel %vm1316_vm4, %v1324_v56, %v1326_v44  ;;  %v1686_v36 = vsel %vm1316_vm4, %v1683_v29, %v1685_v6 }
 0x183   : > { %v1157_v31 = vpop.f32.mrf.mxu0  ;;  %7764 = vmatmul.mubr.msk.bf16.gmra.mxu0 %vm444_vm3, %v9546_v34  ;;  %v1424_v9 = vadd.f32 %v1327_v61, %v9257_v14  ;;  %v1517_v42 = vpop.f32.mrf.mxu1  ;;  %7842 = vmatmul.mubr.msk.bf16.gmra.mxu1 %vm444_vm3, %v9551_v13  ;;  %v9575_v13 = vld [vmem:[%s8905_s27 + $0x204] sm:$0xff]  }
 0x184   : > { %v1328_v3 = vrot.slane %v1157_v31, 1  ;;  %7767 = vmatprep.mubr.msk.bf16.mxu0 %vm8841_vm2, %v11907_v1  ;;  %v1687_v56 = vrot.slane %v1517_v42, 1  ;;  %7845 = vmatprep.mubr.msk.bf16.mxu1 %vm8841_vm2, %v11907_v1  ;;  %11950 = vst [vmem:[#allocation11_spill] sm:$0xff] %v9575_v13 }
 0x185   : > { %v7589_v23 = vpop.f32.mrf.mxu0  ;;  %v9566_v57 = vadd.f32 %v1686_v36, %v1424_v9  ;;  %v7667_v52 = vpop.f32.mrf.mxu1 }
 0x186   : > { %v1329_v14 = vsel %vm1316_vm4, %v1326_v44, %v1328_v3  ;;  %v1688_v61 = vsel %vm1316_vm4, %v1685_v6, %v1687_v56 }
 0x187   : > { %v1160_v29 = vpop.f32.mrf.mxu0  ;;  %v1425_v43 = vadd.f32 %v1329_v14, %v9261_v19  ;;  %v1520_v31 = vpop.f32.mrf.mxu1 }
 0x188   : > { %v1330_v48 = vrot.slane %v1160_v29, 1  ;;  %v1689_v42 = vrot.slane %v1520_v31, 1  ;;  %v9594_v31 = vld [vmem:[%s8905_s27 + $0x178] sm:$0xff]  }
 0x189   : > { %v7590_v23 = vpop.f32.mrf.mxu0  ;;  %v9577_v34 = vadd.f32 %v1688_v61, %v1425_v43  ;;  %v7668_v36 = vpop.f32.mrf.mxu1  ;;  %11951 = vst [vmem:[#allocation12_spill] sm:$0xff] %v9594_v31 }
 0x18a   : > { %v1331_v9 = vsel %vm1316_vm4, %v1328_v3, %v1330_v48  ;;  %v1690_v6 = vsel %vm1316_vm4, %v1687_v56, %v1689_v42 }
 0x18b   : > { %v1165_v44 = vpop.f32.mrf.mxu0  ;;  %7768 = vmatmul.mubr.msk.bf16.gmra.mxu0 %vm444_vm3, %v9570_v62  ;;  %v1426_v19 = vadd.f32 %v1331_v9, %v9269_v24  ;;  %v1525_v52 = vpop.f32.mrf.mxu1  ;;  %7846 = vmatmul.mubr.msk.bf16.gmra.mxu1 %vm444_vm3, %v9575_v13  ;;  %v9599_v13 = vld [vmem:[%s8905_s27 + $0x20c] sm:$0xff]  }
 0x18c   : > { %v1332_v14 = vrot.slane %v1165_v44, 1  ;;  %7771 = vmatprep.mubr.msk.bf16.mxu0 %vm8841_vm2, %v11907_v1  ;;  %v1691_v3 = vrot.slane %v1525_v52, 1  ;;  %7849 = vmatprep.mubr.msk.bf16.mxu1 %vm8841_vm2, %v11907_v1  ;;  %11952 = vst [vmem:[#allocation13_spill] sm:$0xff] %v9599_v13 }
 0x18d   : > { %v7593_v29 = vpop.f32.mrf.mxu0  ;;  %v9590_v43 = vadd.f32 %v1690_v6, %v1426_v19  ;;  %v7671_v61 = vpop.f32.mrf.mxu1 }
 0x18e   : > { %v1333_v24 = vsel %vm1316_vm4, %v1330_v48, %v1332_v14  ;;  %v1692_v9 = vsel %vm1316_vm4, %v1689_v42, %v1691_v3 }
 0x18f   : > { %v1168_v56 = vpop.f32.mrf.mxu0  ;;  %v1427_v23 = vadd.f32 %v1333_v24, %v9273_v51  ;;  %v1528_v44 = vpop.f32.mrf.mxu1 }
 0x190   : > { %v1334_v36 = vrot.slane %v1168_v56, 1  ;;  %v1693_v52 = vrot.slane %v1528_v44, 1  ;;  %v9618_v44 = vld [vmem:[%s8905_s27 + $0x180] sm:$0xff]  }
 0x191   : > { %v7594_v29 = vpop.f32.mrf.mxu0  ;;  %v9601_v62 = vadd.f32 %v1692_v9, %v1427_v23  ;;  %v7672_v6 = vpop.f32.mrf.mxu1  ;;  %11953 = vst [vmem:[#allocation14_spill] sm:$0xff] %v9618_v44 }
 0x192   : > { %v1335_v19 = vsel %vm1316_vm4, %v1332_v14, %v1334_v36  ;;  %v1694_v42 = vsel %vm1316_vm4, %v1691_v3, %v1693_v52 }
 0x193   : > { %v1173_v48 = vpop.f32.mrf.mxu0  ;;  %7772 = vmatmul.mubr.msk.bf16.gmra.mxu0 %vm444_vm3, %v9594_v31  ;;  %v1428_v51 = vadd.f32 %v1335_v19, %v9281_v54  ;;  %v1533_v61 = vpop.f32.mrf.mxu1  ;;  %7850 = vmatmul.mubr.msk.bf16.gmra.mxu1 %vm444_vm3, %v9599_v13  ;;  %v9623_v13 = vld [vmem:[%s8905_s27 + $0x214] sm:$0xff]  }
 0x194   : > { %v1336_v24 = vrot.slane %v1173_v48, 1  ;;  %7775 = vmatprep.mubr.msk.bf16.mxu0 %vm8841_vm2, %v11907_v1  ;;  %v1695_v14 = vrot.slane %v1533_v61, 1  ;;  %7853 = vmatprep.mubr.msk.bf16.mxu1 %vm8841_vm2, %v11907_v1  ;;  %11954 = vst [vmem:[#allocation15_spill] sm:$0xff] %v9623_v13 }
 0x195   : > { %v7597_v56 = vpop.f32.mrf.mxu0  ;;  %v9614_v23 = vadd.f32 %v1694_v42, %v1428_v51  ;;  %v7675_v9 = vpop.f32.mrf.mxu1 }
 0x196   : > { %v1337_v54 = vsel %vm1316_vm4, %v1334_v36, %v1336_v24  ;;  %v1696_v19 = vsel %vm1316_vm4, %v1693_v52, %v1695_v14 }
 0x197   : > { %v1176_v3 = vpop.f32.mrf.mxu0  ;;  %v1429_v29 = vadd.f32 %v1337_v54, %v9285_v60  ;;  %v1536_v48 = vpop.f32.mrf.mxu1 }
 0x198   : > { %v1338_v6 = vrot.slane %v1176_v3, 1  ;;  %v1697_v61 = vrot.slane %v1536_v48, 1  ;;  %v9642_v48 = vld [vmem:[%s8905_s27 + $0x188] sm:$0xff]  }
 0x199   : > { %v7598_v56 = vpop.f32.mrf.mxu0  ;;  %v9625_v31 = vadd.f32 %v1696_v19, %v1429_v29  ;;  %v7676_v42 = vpop.f32.mrf.mxu1  ;;  %11955 = vst [vmem:[#allocation16_spill] sm:$0xff] %v9642_v48 }
 0x19a   : > { %v1339_v51 = vsel %vm1316_vm4, %v1336_v24, %v1338_v6  ;;  %v1698_v52 = vsel %vm1316_vm4, %v1695_v14, %v1697_v61 }
 0x19b   : > { %v1181_v36 = vpop.f32.mrf.mxu0  ;;  %7776 = vmatmul.mubr.msk.bf16.gmra.mxu0 %vm444_vm3, %v9618_v44  ;;  %v1430_v60 = vadd.f32 %v1339_v51, %v9293_v0  ;;  %v1541_v9 = vpop.f32.mrf.mxu1  ;;  %7854 = vmatmul.mubr.msk.bf16.gmra.mxu1 %vm444_vm3, %v9623_v13  ;;  %v9647_v13 = vld [vmem:[%s8905_s27 + $0x21c] sm:$0xff]  }
 0x19c   : > { %v1340_v54 = vrot.slane %v1181_v36, 1  ;;  %7779 = vmatprep.mubr.msk.bf16.mxu0 %vm8841_vm2, %v11907_v1  ;;  %v1699_v24 = vrot.slane %v1541_v9, 1  ;;  %7857 = vmatprep.mubr.msk.bf16.mxu1 %vm8841_vm2, %v11907_v1  ;;  %11956 = vst [vmem:[#allocation17_spill] sm:$0xff] %v9647_v13 }
 0x19d   : > { %v7601_v3 = vpop.f32.mrf.mxu0  ;;  %v9638_v29 = vadd.f32 %v1698_v52, %v1430_v60  ;;  %v7679_v19 = vpop.f32.mrf.mxu1 }
 0x19e   : > { %v1341_v0 = vsel %vm1316_vm4, %v1338_v6, %v1340_v54  ;;  %v1700_v51 = vsel %vm1316_vm4, %v1697_v61, %v1699_v24 }
 0x19f   : > { %v1184_v14 = vpop.f32.mrf.mxu0  ;;  %v1431_v56 = vadd.f32 %v1341_v0, %v9297_v8  ;;  %v1544_v36 = vpop.f32.mrf.mxu1 }
 0x1a0   : > { %v1342_v42 = vrot.slane %v1184_v14, 1  ;;  %v1701_v9 = vrot.slane %v1544_v36, 1  ;;  %v9666_v36 = vld [vmem:[%s8905_s27 + $0x190] sm:$0xff]  }
 0x1a1   : > { %v7602_v3 = vpop.f32.mrf.mxu0  ;;  %v9649_v44 = vadd.f32 %v1700_v51, %v1431_v56  ;;  %v7680_v52 = vpop.f32.mrf.mxu1  ;;  %11957 = vst [vmem:[#allocation18_spill] sm:$0xff] %v9666_v36 }
 0x1a2   : > { %v1343_v60 = vsel %vm1316_vm4, %v1340_v54, %v1342_v42  ;;  %v1702_v61 = vsel %vm1316_vm4, %v1699_v24, %v1701_v9 }
 0x1a3   : > { %v1189_v6 = vpop.f32.mrf.mxu0  ;;  %7780 = vmatmul.mubr.msk.bf16.gmra.mxu0 %vm444_vm3, %v9642_v48  ;;  %v1432_v8 = vadd.f32 %v1343_v60, %v9305_v12  ;;  %v1549_v19 = vpop.f32.mrf.mxu1  ;;  %7858 = vmatmul.mubr.msk.bf16.gmra.mxu1 %vm444_vm3, %v9647_v13  ;;  %v9671_v13 = vld [vmem:[%s8905_s27 + $0x224] sm:$0xff]  }
 0x1a4   : > { %v1344_v0 = vrot.slane %v1189_v6, 1  ;;  %7783 = vmatprep.mubr.msk.bf16.mxu0 %vm8841_vm2, %v11907_v1  ;;  %v1703_v54 = vrot.slane %v1549_v19, 1  ;;  %7861 = vmatprep.mubr.msk.bf16.mxu1 %vm8841_vm2, %v11907_v1  ;;  %11958 = vst [vmem:[#allocation19_spill] sm:$0xff] %v9671_v13 }
 0x1a5   : > { %v7605_v14 = vpop.f32.mrf.mxu0  ;;  %v9662_v56 = vadd.f32 %v1702_v61, %v1432_v8  ;;  %v7683_v51 = vpop.f32.mrf.mxu1 }
 0x1a6   : > { %v1345_v12 = vsel %vm1316_vm4, %v1342_v42, %v1344_v0  ;;  %v1704_v60 = vsel %vm1316_vm4, %v1701_v9, %v1703_v54 }
 0x1a7   : > { %v1192_v24 = vpop.f32.mrf.mxu0  ;;  %v1433_v3 = vadd.f32 %v1345_v12, %v9309_v18  ;;  %v1552_v6 = vpop.f32.mrf.mxu1 }
 0x1a8   : > { %v1346_v52 = vrot.slane %v1192_v24, 1  ;;  %v1705_v19 = vrot.slane %v1552_v6, 1  ;;  %v9690_v6 = vld [vmem:[%s8905_s27 + $0x198] sm:$0xff]  }
 0x1a9   : > { %v7606_v14 = vpop.f32.mrf.mxu0  ;;  %v9673_v48 = vadd.f32 %v1704_v60, %v1433_v3  ;;  %v7684_v61 = vpop.f32.mrf.mxu1  ;;  %11959 = vst [vmem:[#allocation20_spill] sm:$0xff] %v9690_v6 }
 0x1aa   : > { %v1347_v8 = vsel %vm1316_vm4, %v1344_v0, %v1346_v52  ;;  %v1706_v9 = vsel %vm1316_vm4, %v1703_v54, %v1705_v19 }
 0x1ab   : > { %v1197_v42 = vpop.f32.mrf.mxu0  ;;  %7784 = vmatmul.mubr.msk.bf16.gmra.mxu0 %vm444_vm3, %v9666_v36  ;;  %v1434_v18 = vadd.f32 %v1347_v8, %v9317_v22  ;;  %v1557_v51 = vpop.f32.mrf.mxu1  ;;  %7862 = vmatmul.mubr.msk.bf16.gmra.mxu1 %vm444_vm3, %v9671_v13  ;;  %v9695_v13 = vld [vmem:[%s8905_s27 + $0x22c] sm:$0xff]  }
 0x1ac   : > { %v1348_v12 = vrot.slane %v1197_v42, 1  ;;  %7787 = vmatprep.mubr.msk.bf16.mxu0 %vm8841_vm2, %v11907_v1  ;;  %v1707_v0 = vrot.slane %v1557_v51, 1  ;;  %7865 = vmatprep.mubr.msk.bf16.mxu1 %vm8841_vm2, %v11907_v1  ;;  %11960 = vst [vmem:[#allocation21_spill] sm:$0xff] %v9695_v13 }
 0x1ad   : > { %v7609_v24 = vpop.f32.mrf.mxu0  ;;  %v9686_v3 = vadd.f32 %v1706_v9, %v1434_v18  ;;  %v7687_v60 = vpop.f32.mrf.mxu1 }
 0x1ae   : > { %v1349_v22 = vsel %vm1316_vm4, %v1346_v52, %v1348_v12  ;;  %v1708_v8 = vsel %vm1316_vm4, %v1705_v19, %v1707_v0 }
 0x1af   : > { %v1200_v54 = vpop.f32.mrf.mxu0  ;;  %v1435_v14 = vadd.f32 %v1349_v22, %v9321_v50  ;;  %v1560_v42 = vpop.f32.mrf.mxu1 }
 0x1b0   : > { %v1350_v61 = vrot.slane %v1200_v54, 1  ;;  %v1709_v51 = vrot.slane %v1560_v42, 1  ;;  %v9714_v42 = vld [vmem:[%s8905_s27 + $0x1a0] sm:$0xff]  }
 0x1b1   : > { %v7610_v24 = vpop.f32.mrf.mxu0  ;;  %v9697_v36 = vadd.f32 %v1708_v8, %v1435_v14  ;;  %v7688_v9 = vpop.f32.mrf.mxu1  ;;  %11961 = vst [vmem:[#allocation22_spill] sm:$0xff] %v9714_v42 }
 0x1b2   : > { %v1351_v18 = vsel %vm1316_vm4, %v1348_v12, %v1350_v61  ;;  %v1710_v19 = vsel %vm1316_vm4, %v1707_v0, %v1709_v51 }
 0x1b3   : > { %v1205_v52 = vpop.f32.mrf.mxu0  ;;  %7788 = vmatmul.mubr.msk.bf16.gmra.mxu0 %vm444_vm3, %v9690_v6  ;;  %v1436_v50 = vadd.f32 %v1351_v18, %v9329_v53  ;;  %v1565_v60 = vpop.f32.mrf.mxu1  ;;  %7866 = vmatmul.mubr.msk.bf16.gmra.mxu1 %vm444_vm3, %v9695_v13  ;;  %v9719_v13 = vld [vmem:[%s8905_s27 + $0x234] sm:$0xff]  }
 0x1b4   : > { %v1352_v22 = vrot.slane %v1205_v52, 1  ;;  %7791 = vmatprep.mubr.msk.bf16.mxu0 %vm8841_vm2, %v11907_v1  ;;  %v1711_v12 = vrot.slane %v1565_v60, 1  ;;  %7869 = vmatprep.mubr.msk.bf16.mxu1 %vm8841_vm2, %v11907_v1  ;;  %11962 = vst [vmem:[#allocation23_spill] sm:$0xff] %v9719_v13 }
 0x1b5   : > { %v7613_v54 = vpop.f32.mrf.mxu0  ;;  %v9710_v14 = vadd.f32 %v1710_v19, %v1436_v50  ;;  %v7691_v8 = vpop.f32.mrf.mxu1 }
 0x1b6   : > { %v1353_v53 = vsel %vm1316_vm4, %v1350_v61, %v1352_v22  ;;  %v1712_v18 = vsel %vm1316_vm4, %v1709_v51, %v1711_v12 }
 0x1b7   : > { %v1208_v0 = vpop.f32.mrf.mxu0  ;;  %v1437_v24 = vadd.f32 %v1353_v53, %v9333_v59  ;;  %v1568_v52 = vpop.f32.mrf.mxu1 }
 0x1b8   : > { %v1354_v9 = vrot.slane %v1208_v0, 1  ;;  %v1713_v60 = vrot.slane %v1568_v52, 1  ;;  %v9738_v52 = vld [vmem:[%s8905_s27 + $0x1a8] sm:$0xff]  }
 0x1b9   : > { %v7614_v54 = vpop.f32.mrf.mxu0  ;;  %v9721_v6 = vadd.f32 %v1712_v18, %v1437_v24  ;;  %v7692_v19 = vpop.f32.mrf.mxu1  ;;  %11963 = vst [vmem:[#allocation24_spill] sm:$0xff] %v9738_v52 }
 0x1ba   : > { %v1355_v50 = vsel %vm1316_vm4, %v1352_v22, %v1354_v9  ;;  %v1714_v51 = vsel %vm1316_vm4, %v1711_v12, %v1713_v60 }
 0x1bb   : > { %v1213_v61 = vpop.f32.mrf.mxu0  ;;  %7792 = vmatmul.mubr.msk.bf16.gmra.mxu0 %vm444_vm3, %v9714_v42  ;;  %v1438_v59 = vadd.f32 %v1355_v50, %v9341_v63  ;;  %v1573_v8 = vpop.f32.mrf.mxu1  ;;  %7870 = vmatmul.mubr.msk.bf16.gmra.mxu1 %vm444_vm3, %v9719_v13  ;;  %v9743_v13 = vld [vmem:[%s8905_s27 + $0x23c] sm:$0xff]  }
 0x1bc   : > { %v1356_v53 = vrot.slane %v1213_v61, 1  ;;  %7795 = vmatprep.mubr.msk.bf16.mxu0 %vm8841_vm2, %v11907_v1  ;;  %v1715_v22 = vrot.slane %v1573_v8, 1  ;;  %7873 = vmatprep.mubr.msk.bf16.mxu1 %vm8841_vm2, %v11907_v1  ;;  %11964 = vst [vmem:[#allocation25_spill] sm:$0xff] %v9743_v13 }
 0x1bd   : > { %v7617_v0 = vpop.f32.mrf.mxu0  ;;  %v9734_v24 = vadd.f32 %v1714_v51, %v1438_v59  ;;  %v7695_v18 = vpop.f32.mrf.mxu1 }
 0x1be   : > { %v1357_v63 = vsel %vm1316_vm4, %v1354_v9, %v1356_v53  ;;  %v1716_v50 = vsel %vm1316_vm4, %v1713_v60, %v1715_v22 }
 0x1bf   : > { %v1216_v12 = vpop.f32.mrf.mxu0  ;;  %v1439_v54 = vadd.f32 %v1357_v63, %v9345_v7  ;;  %v1576_v61 = vpop.f32.mrf.mxu1 }
 0x1c0   : > { %v1358_v19 = vrot.slane %v1216_v12, 1  ;;  %v1717_v8 = vrot.slane %v1576_v61, 1  ;;  %v9762_v61 = vld [vmem:[%s8905_s27 + $0x1b0] sm:$0xff]  }
 0x1c1   : > { %v7618_v0 = vpop.f32.mrf.mxu0  ;;  %v9745_v42 = vadd.f32 %v1716_v50, %v1439_v54  ;;  %v7696_v51 = vpop.f32.mrf.mxu1  ;;  %11965 = vst [vmem:[#allocation26_spill] sm:$0xff] %v9762_v61 }
 0x1c2   : > { %v1359_v59 = vsel %vm1316_vm4, %v1356_v53, %v1358_v19  ;;  %v1718_v60 = vsel %vm1316_vm4, %v1715_v22, %v1717_v8 }
 0x1c3   : > { %v1221_v9 = vpop.f32.mrf.mxu0  ;;  %7796 = vmatmul.mubr.msk.bf16.gmra.mxu0 %vm444_vm3, %v9738_v52  ;;  %v1440_v7 = vadd.f32 %v1359_v59, %v9353_v11  ;;  %v1581_v18 = vpop.f32.mrf.mxu1  ;;  %7874 = vmatmul.mubr.msk.bf16.gmra.mxu1 %vm444_vm3, %v9743_v13  ;;  %v9767_v13 = vld [vmem:[%s8905_s27 + $0x244] sm:$0xff]  }
 0x1c4   : > { %v1360_v63 = vrot.slane %v1221_v9, 1  ;;  %7799 = vmatprep.mubr.msk.bf16.mxu0 %vm8841_vm2, %v11907_v1  ;;  %v1719_v53 = vrot.slane %v1581_v18, 1  ;;  %7877 = vmatprep.mubr.msk.bf16.mxu1 %vm8841_vm2, %v11907_v1  ;;  %11966 = vst [vmem:[#allocation27_spill] sm:$0xff] %v9767_v13 }
 0x1c5   : > { %v7621_v12 = vpop.f32.mrf.mxu0  ;;  %v9758_v54 = vadd.f32 %v1718_v60, %v1440_v7  ;;  %v7699_v50 = vpop.f32.mrf.mxu1 }
 0x1c6   : > { %v1361_v11 = vsel %vm1316_vm4, %v1358_v19, %v1360_v63  ;;  %v1720_v59 = vsel %vm1316_vm4, %v1717_v8, %v1719_v53 }
 0x1c7   : > { %v1224_v22 = vpop.f32.mrf.mxu0  ;;  %v1441_v0 = vadd.f32 %v1361_v11, %v9357_v17  ;;  %v1584_v9 = vpop.f32.mrf.mxu1 }
 0x1c8   : > { %v1362_v51 = vrot.slane %v1224_v22, 1  ;;  %v1721_v18 = vrot.slane %v1584_v9, 1  ;;  %v9786_v9 = vld [vmem:[%s8905_s27 + $0x1b8] ss:$0 sps:$4 sm:$0x11]  }
 0x1c9   : > { %v7622_v12 = vpop.f32.mrf.mxu0  ;;  %v9769_v52 = vadd.f32 %v1720_v59, %v1441_v0  ;;  %v7700_v60 = vpop.f32.mrf.mxu1  ;;  %11967 = vst [vmem:[#allocation28_spill] sm:$0xff] %v9786_v9 }
 0x1ca   : > { %v1363_v7 = vsel %vm1316_vm4, %v1360_v63, %v1362_v51  ;;  %v1722_v8 = vsel %vm1316_vm4, %v1719_v53, %v1721_v18 }
 0x1cb   : > { %v1229_v19 = vpop.f32.mrf.mxu0  ;;  %7800 = vmatmul.mubr.msk.bf16.gmra.mxu0 %vm444_vm3, %v9762_v61  ;;  %v1442_v17 = vadd.f32 %v1363_v7, %v9365_v21  ;;  %v1589_v50 = vpop.f32.mrf.mxu1  ;;  %7878 = vmatmul.mubr.msk.bf16.gmra.mxu1 %vm444_vm3, %v9767_v13  ;;  %v9791_v13 = vld [vmem:[%s8905_s27 + $0x24c] ss:$0 sps:$4 sm:$0x11]  }
 0x1cc   : > { %v1364_v11 = vrot.slane %v1229_v19, 1  ;;  %7803 = vmatprep.mubr.msk.bf16.mxu0 %vm8841_vm2, %v11907_v1  ;;  %v1723_v63 = vrot.slane %v1589_v50, 1  ;;  %7881 = vmatprep.mubr.msk.bf16.mxu1 %vm8841_vm2, %v11907_v1  ;;  %11968 = vst [vmem:[#allocation29_spill] sm:$0xff] %v9791_v13 }
 0x1cd   : > { %v7625_v22 = vpop.f32.mrf.mxu0  ;;  %v9782_v0 = vadd.f32 %v1722_v8, %v1442_v17  ;;  %v7703_v59 = vpop.f32.mrf.mxu1 }
 0x1ce   : > { %v1365_v21 = vsel %vm1316_vm4, %v1362_v51, %v1364_v11  ;;  %v1724_v7 = vsel %vm1316_vm4, %v1721_v18, %v1723_v63 }
 0x1cf   : > { %v1232_v53 = vpop.f32.mrf.mxu0  ;;  %v1443_v12 = vadd.f32 %v1365_v21, %v9369_v27  ;;  %v1592_v19 = vpop.f32.mrf.mxu1 }
 0x1d0   : > { %v1366_v60 = vrot.slane %v1232_v53, 1  ;;  %v1725_v50 = vrot.slane %v1592_v19, 1  ;;  %v6886_v19 = vld [vmem:[%s11877_s1 + $0x12] sm:$0x3] }
 0x1d1   : > { %v7626_v22 = vpop.f32.mrf.mxu0  ;;  %v9793_v61 = vadd.f32 %v1724_v7, %v1443_v12  ;;  %v7704_v8 = vpop.f32.mrf.mxu1 }
 0x1d2   : > { %v1367_v17 = vsel %vm1316_vm4, %v1364_v11, %v1366_v60  ;;  %v1726_v27 = vsel %vm1316_vm4, %v1723_v63, %v1725_v50  ;;  %v6866_v11 = vld [vmem:[%s11877_s1 + $0x10] sm:$0x3] }
 0x1d3   : > { %v1237_v51 = vpop.f32.mrf.mxu0  ;;  %7804 = vmatmul.mubr.msk.bf16.gmra.mxu0 %vm444_vm3, %v9786_v9  ;;  %v1444_v59 = vadd.f32 %v1367_v17, %v9377_v28  ;;  %v1597_v21 = vpop.f32.mrf.mxu1  ;;  %7882 = vmatmul.mubr.msk.bf16.gmra.mxu1 %vm444_vm3, %v9791_v13 }
 0x1d4   : > { %v1368_v18 = vrot.slane %v1237_v51, 1  ;;  %7887 = vmatprep.mubr.msk.bf16.mxu0 %vm8841_vm2, %v11907_v1  ;;  %v1727_v53 = vrot.slane %v1597_v21, 1  ;;  %7965 = vmatprep.mubr.msk.bf16.mxu1 %vm8841_vm2, %v11907_v1 }
 0x1d5   : > { %v7629_v12 = vpop.f32.mrf.mxu0  ;;  %v9809_v28 = vadd.f32 %v1726_v27, %v1444_v59  ;;  %v7707_v7 = vpop.f32.mrf.mxu1  ;;  %v3633_v59 = vand.u32 %v6886_v19, %v8883_v5  ;;  %v11969_v19 = vmov 0.0  }
 0x1d6   : > { %v1369_v63 = vsel %vm1316_vm4, %v1366_v60, %v1368_v18  ;;  %v1728_v8 = vsel %vm1316_vm4, %v1725_v50, %v1727_v53  ;;  %v3274_v12 = vand.u32 %v6866_v11, %v8883_v5 }
 0x1d7   : > { %v1240_v22 = vpop.f32.mrf.mxu0  ;;  %v1445_v17 = vadd.f32 %v1369_v63, %v9381_v58  ;;  %v1600_v21 = vpop.f32.mrf.mxu1 }
 0x1d8   : > { %v1370_v51 = vrot.slane %v1240_v22, 1  ;;  %v1729_v1 = vrot.slane %v1600_v21, 1 }
 0x1d9   : > { %v7630_v13 = vpop.f32.mrf.mxu0  ;;  %v9819_v27 = vadd.f32 %v1728_v8, %v1445_v17  ;;  %v7708_v7 = vpop.f32.mrf.mxu1 }
 0x1da   : > { %v1371_v60 = vsel %vm1316_vm4, %v1368_v18, %v1370_v51  ;;  %v1730_v50 = vsel %vm1316_vm4, %v1727_v53, %v1729_v1 }
 0x1db   : > { %v1245_v9 = vpop.f32.mrf.mxu0  ;;  %7888 = vmatmul.mubr.msk.bf16.vlgmr.msra.gmra.mxu0 %vm444_vm3, %v9400_v49  ;;  %v1446_v58 = vadd.f32 %v1371_v60, %v9389_v30  ;;  %v1605_v22 = vpop.f32.mrf.mxu1  ;;  %7966 = vmatmul.mubr.msk.bf16.vlgmr.msra.gmra.mxu1 %vm444_vm3, %v9403_v10 }
 0x1dc   : > { %v1372_v63 = vrot.slane %v1245_v9, 1  ;;  %8042 = vmatpush3.bf16.msra.mxu0 %v3274_v12  ;;  %v1731_v13 = vrot.slane %v1605_v22, 1  ;;  %8120 = vmatpush3.bf16.msra.mxu1 %v3633_v59 }
 0x1dd   : > { %v7633_v11 = vpop.f32.mrf.mxu0  ;;  %7891 = vmatprep.mubr.msk.bf16.mxu0 %vm8841_vm2, %v11969_v19  ;;  %v9830_v18 = vadd.f32 %v1730_v50, %v1446_v58  ;;  %v7711_v17 = vpop.f32.mrf.mxu1  ;;  %7969 = vmatprep.mubr.msk.bf16.mxu1 %vm8841_vm2, %v11969_v19 }
 0x1de   : > { %v1373_v49 = vsel %vm1316_vm4, %v1370_v51, %v1372_v63  ;;  %8197 = vmatprep.subr.bf16.mxu0 %v11969_v19  ;;  %v1732_v9 = vsel %vm1316_vm4, %v1729_v1, %v1731_v13  ;;  %8275 = vmatprep.subr.bf16.mxu1 %v11969_v19 }
 0x1df   : > { %v1248_v30 = vpop.f32.mrf.mxu0  ;;  %v1447_v10 = vadd.f32 %v1373_v49, %v9406_v32  ;;  %v1608_v8 = vpop.f32.mrf.mxu1 }
 0x1e0   : > { %v1374_v53 = vrot.slane %v1248_v30, 1  ;;  %v1733_v21 = vrot.slane %v1608_v8, 1 }
 0x1e1   : > { %v7634_v12 = vpop.f32.mrf.mxu0  ;;  %v9839_v59 = vadd.f32 %v1732_v9, %v1447_v10  ;;  %v7712_v60 = vpop.f32.mrf.mxu1 }
 0x1e2   : > { %v1375_v51 = vsel %vm1316_vm4, %v1372_v63, %v1374_v53  ;;  %v1734_v32 = vsel %vm1316_vm4, %v1731_v13, %v1733_v21 }
 0x1e3   : > { %v1253_v7 = vpop.f32.mrf.mxu0  ;;  %7892 = vmatmul.mubr.msk.bf16.gmra.mxu0 %vm444_vm3, %v9421_v35  ;;  %v1448_v58 = vadd.f32 %v1375_v51, %v9413_v20  ;;  %v1613_v50 = vpop.f32.mrf.mxu1  ;;  %7970 = vmatmul.mubr.msk.bf16.gmra.mxu1 %vm444_vm3, %v9425_v25 }
 0x1e4   : > { %v1376_v1 = vrot.slane %v1253_v7, 1  ;;  %7895 = vmatprep.mubr.msk.bf16.mxu0 %vm8841_vm2, %v11969_v19  ;;  %v1735_v22 = vrot.slane %v1613_v50, 1  ;;  %7973 = vmatprep.mubr.msk.bf16.mxu1 %vm8841_vm2, %v11969_v19 }
 0x1e5   : > { %v7637_v11 = vpop.f32.mrf.mxu0  ;;  %v9852_v63 = vadd.f32 %v1734_v32, %v1448_v58  ;;  %v7715_v20 = vpop.f32.mrf.mxu1 }
 0x1e6   : > { %v1377_v35 = vsel %vm1316_vm4, %v1374_v53, %v1376_v1  ;;  %v1736_v17 = vsel %vm1316_vm4, %v1733_v21, %v1735_v22 }
 0x1e7   : > { %v1256_v49 = vpop.f32.mrf.mxu0  ;;  %v1449_v13 = vadd.f32 %v1377_v35, %v9427_v26  ;;  %v1616_v25 = vpop.f32.mrf.mxu1 }
 0x1e8   : > { %v1378_v30 = vrot.slane %v1256_v49, 1  ;;  %v1737_v10 = vrot.slane %v1616_v25, 1 }
 0x1e9   : > { %v7638_v9 = vpop.f32.mrf.mxu0  ;;  %v9857_v8 = vadd.f32 %v1736_v17, %v1449_v13  ;;  %v7716_v51 = vpop.f32.mrf.mxu1 }
 0x1ea   : > { %v1379_v12 = vsel %vm1316_vm4, %v1376_v1, %v1378_v30  ;;  %v1738_v7 = vsel %vm1316_vm4, %v1735_v22, %v1737_v10 }
 0x1eb   : > { %v1261_v60 = vpop.f32.mrf.mxu0  ;;  %7896 = vmatmul.mubr.msk.bf16.gmra.mxu0 %vm444_vm3, %v9440_v46  ;;  %v1450_v53 = vadd.f32 %v1379_v12, %v9435_v37  ;;  %v1621_v58 = vpop.f32.mrf.mxu1  ;;  %7974 = vmatmul.mubr.msk.bf16.gmra.mxu1 %vm444_vm3, %v9443_v38 }
 0x1ec   : > { %v1380_v26 = vrot.slane %v1261_v60, 1  ;;  %7899 = vmatprep.mubr.msk.bf16.mxu0 %vm8841_vm2, %v11969_v19  ;;  %v1739_v21 = vrot.slane %v1621_v58, 1  ;;  %7977 = vmatprep.mubr.msk.bf16.mxu1 %vm8841_vm2, %v11969_v19 }
 0x1ed   : > { %v7641_v32 = vpop.f32.mrf.mxu0  ;;  %v9870_v1 = vadd.f32 %v1738_v7, %v1450_v53  ;;  %v7719_v37 = vpop.f32.mrf.mxu1 }
 0x1ee   : > { %v1381_v46 = vsel %vm1316_vm4, %v1378_v30, %v1380_v26  ;;  %v1740_v11 = vsel %vm1316_vm4, %v1737_v10, %v1739_v21 }
 0x1ef   : > { %v1264_v50 = vpop.f32.mrf.mxu0  ;;  %v1451_v22 = vadd.f32 %v1381_v46, %v9445_v47  ;;  %v1624_v38 = vpop.f32.mrf.mxu1 }
 0x1f0   : > { %v1382_v35 = vrot.slane %v1264_v50, 1  ;;  %v1741_v20 = vrot.slane %v1624_v38, 1 }
 0x1f1   : > { %v7642_v49 = vpop.f32.mrf.mxu0  ;;  %v9875_v13 = vadd.f32 %v1740_v11, %v1451_v22  ;;  %v7720_v25 = vpop.f32.mrf.mxu1 }
 0x1f2   : > { %v1383_v17 = vsel %vm1316_vm4, %v1380_v26, %v1382_v35  ;;  %v1742_v12 = vsel %vm1316_vm4, %v1739_v21, %v1741_v20 }
 0x1f3   : > { %v1269_v9 = vpop.f32.mrf.mxu0  ;;  %7900 = vmatmul.mubr.msk.bf16.gmra.mxu0 %vm444_vm3, %v9458_v33  ;;  %v1452_v30 = vadd.f32 %v1383_v17, %v9453_v4  ;;  %v1629_v51 = vpop.f32.mrf.mxu1  ;;  %7978 = vmatmul.mubr.msk.bf16.gmra.mxu1 %vm444_vm3, %v9461_v15  ;;  %v11970_v17 = vld [vmem:[#allocation2_spill] sm:$0xff] }
 0x1f4   : > { %v1384_v47 = vrot.slane %v1269_v9, 1  ;;  %7903 = vmatprep.mubr.msk.bf16.mxu0 %vm8841_vm2, %v11969_v19  ;;  %v1743_v10 = vrot.slane %v1629_v51, 1  ;;  %7981 = vmatprep.mubr.msk.bf16.mxu1 %vm8841_vm2, %v11969_v19 }
 0x1f5   : > { %v7645_v60 = vpop.f32.mrf.mxu0  ;;  %v9888_v53 = vadd.f32 %v1742_v12, %v1452_v30  ;;  %v7723_v4 = vpop.f32.mrf.mxu1 }
 0x1f6   : > { %v1385_v33 = vsel %vm1316_vm4, %v1382_v35, %v1384_v47  ;;  %v1744_v58 = vsel %vm1316_vm4, %v1741_v20, %v1743_v10 }
 0x1f7   : > { %v1272_v7 = vpop.f32.mrf.mxu0  ;;  %v1453_v26 = vadd.f32 %v1385_v33, %v9463_v16  ;;  %v1632_v21 = vpop.f32.mrf.mxu1 }
 0x1f8   : > { %v11972_v7 = vld [vmem:[#allocation4_spill] sm:$0xff]  ;;  %v11973_v21 = vld [vmem:[#allocation5_spill] sm:$0xff] }
 0x1f9   : > { %v7646_v15 = vpop.f32.mrf.mxu0  ;;  %v9893_v32 = vadd.f32 %v1744_v58, %v1453_v26  ;;  %v7724_v46 = vpop.f32.mrf.mxu1 }
 0x1fb   : > { %v1276_v37 = vpop.f32.mrf.mxu0  ;;  %7904 = vmatmul.mubr.msk.bf16.gmra.mxu0 %vm444_vm3, %v9474_v45  ;;  %v1636_v50 = vpop.f32.mrf.mxu1  ;;  %7982 = vmatmul.mubr.msk.bf16.gmra.mxu1 %vm444_vm3, %v9477_v55  ;;  %v11971_v55 = vld [vmem:[#allocation3_spill] sm:$0xff] }
 0x1fc   : > { %7907 = vmatprep.mubr.msk.bf16.mxu0 %vm8841_vm2, %v11969_v19  ;;  %7985 = vmatprep.mubr.msk.bf16.mxu1 %vm8841_vm2, %v11969_v19 }
 0x1fd   : > { %v7649_v22 = vpop.f32.mrf.mxu0  ;;  %v7727_v16 = vpop.f32.mrf.mxu1 }
 0x1ff   : > { %v1278_v11 = vpop.f32.mrf.mxu0  ;;  %v1638_v35 = vpop.f32.mrf.mxu1 }
 0x201   : > { %v7650_v38 = vpop.f32.mrf.mxu0  ;;  %v7728_v20 = vpop.f32.mrf.mxu1 }
 0x202   : > { %v11974_v38 = vld [vmem:[#allocation6_spill] sm:$0xff] }
 0x203   : > { %v2002_v49 = vpop.f32.mrf.mxu0  ;;  %7908 = vmatmul.mubr.msk.bf16.gmra.mxu0 %vm444_vm3, %v11970_v17  ;;  %v2372_v25 = vpop.f32.mrf.mxu1  ;;  %7986 = vmatmul.mubr.msk.bf16.gmra.mxu1 %vm444_vm3, %v11971_v55  ;;  %v11975_v17 = vld [vmem:[#allocation7_spill] sm:$0xff] }
 0x204   : > { %v2149_v45 = vadd.f32 %v2002_v49, %v9518_v39  ;;  %7911 = vmatprep.mubr.msk.bf16.mxu0 %vm8841_vm2, %v11969_v19  ;;  %7989 = vmatprep.mubr.msk.bf16.mxu1 %vm8841_vm2, %v11969_v19 }
 0x205   : > { %v7733_v9 = vpop.f32.mrf.mxu0  ;;  %v7811_v12 = vpop.f32.mrf.mxu1 }
 0x206   : > { %v9912_v30 = vadd.f32 %v2372_v25, %v2149_v45 }
 0x207   : > { %v2005_v47 = vpop.f32.mrf.mxu0  ;;  %v2375_v10 = vpop.f32.mrf.mxu1 }
 0x208   : > { %v2150_v51 = vadd.f32 %v2005_v47, %v9529_v40 }
 0x209   : > { %v7734_v60 = vpop.f32.mrf.mxu0  ;;  %v7812_v33 = vpop.f32.mrf.mxu1 }
 0x20a   : > { %v9915_v39 = vadd.f32 %v2375_v10, %v2150_v51  ;;  %v11976_v60 = vld [vmem:[#allocation8_spill] sm:$0xff] }
 0x20b   : > { %v2010_v4 = vpop.f32.mrf.mxu0  ;;  %7912 = vmatmul.mubr.msk.bf16.gmra.mxu0 %vm444_vm3, %v11972_v7  ;;  %v2380_v58 = vpop.f32.mrf.mxu1  ;;  %7990 = vmatmul.mubr.msk.bf16.gmra.mxu1 %vm444_vm3, %v11973_v21  ;;  %v11977_v7 = vld [vmem:[#allocation9_spill] sm:$0xff] }
 0x20c   : > { %v2151_v26 = vadd.f32 %v2010_v4, %v9542_v2  ;;  %7915 = vmatprep.mubr.msk.bf16.mxu0 %vm8841_vm2, %v11969_v19  ;;  %7993 = vmatprep.mubr.msk.bf16.mxu1 %vm8841_vm2, %v11969_v19 }
 0x20d   : > { %v7737_v15 = vpop.f32.mrf.mxu0  ;;  %v7815_v46 = vpop.f32.mrf.mxu1 }
 0x20e   : > { %v9926_v40 = vadd.f32 %v2380_v58, %v2151_v26 }
 0x20f   : > { %v2013_v37 = vpop.f32.mrf.mxu0  ;;  %v2383_v22 = vpop.f32.mrf.mxu1 }
 0x210   : > { %v2152_v50 = vadd.f32 %v2013_v37, %v9553_v41 }
 0x211   : > { %v7738_v16 = vpop.f32.mrf.mxu0  ;;  %v7816_v11 = vpop.f32.mrf.mxu1 }
 0x212   : > { %v9929_v2 = vadd.f32 %v2383_v22, %v2152_v50  ;;  %v11978_v16 = vld [vmem:[#allocation10_spill] sm:$0xff] }
 0x213   : > { %v2018_v35 = vpop.f32.mrf.mxu0  ;;  %7916 = vmatmul.mubr.msk.bf16.gmra.mxu0 %vm444_vm3, %v11974_v38  ;;  %v2388_v49 = vpop.f32.mrf.mxu1  ;;  %7994 = vmatmul.mubr.msk.bf16.gmra.mxu1 %vm444_vm3, %v11975_v17  ;;  %v11979_v38 = vld [vmem:[#allocation11_spill] sm:$0xff] }
 0x214   : > { %v2153_v20 = vadd.f32 %v2018_v35, %v9566_v57  ;;  %7919 = vmatprep.mubr.msk.bf16.mxu0 %vm8841_vm2, %v11969_v19  ;;  %7997 = vmatprep.mubr.msk.bf16.mxu1 %vm8841_vm2, %v11969_v19 }
 0x215   : > { %v7741_v45 = vpop.f32.mrf.mxu0  ;;  %v7819_v25 = vpop.f32.mrf.mxu1 }
 0x216   : > { %v9940_v41 = vadd.f32 %v2388_v49, %v2153_v20 }
 0x217   : > { %v2021_v55 = vpop.f32.mrf.mxu0  ;;  %v2391_v12 = vpop.f32.mrf.mxu1 }
 0x218   : > { %v2154_v9 = vadd.f32 %v2021_v55, %v9577_v34 }
 0x219   : > { %v7742_v47 = vpop.f32.mrf.mxu0  ;;  %v7820_v51 = vpop.f32.mrf.mxu1 }
 0x21a   : > { %v9943_v57 = vadd.f32 %v2391_v12, %v2154_v9  ;;  %v11980_v47 = vld [vmem:[#allocation12_spill] sm:$0xff] }
 0x21b   : > { %v2026_v10 = vpop.f32.mrf.mxu0  ;;  %7920 = vmatmul.mubr.msk.bf16.gmra.mxu0 %vm444_vm3, %v11976_v60  ;;  %v2396_v4 = vpop.f32.mrf.mxu1  ;;  %7998 = vmatmul.mubr.msk.bf16.gmra.mxu1 %vm444_vm3, %v11977_v7  ;;  %v11981_v60 = vld [vmem:[#allocation13_spill] sm:$0xff] }
 0x21c   : > { %v2155_v33 = vadd.f32 %v2026_v10, %v9590_v43  ;;  %7923 = vmatprep.mubr.msk.bf16.mxu0 %vm8841_vm2, %v11969_v19  ;;  %8001 = vmatprep.mubr.msk.bf16.mxu1 %vm8841_vm2, %v11969_v19 }
 0x21d   : > { %v7745_v26 = vpop.f32.mrf.mxu0  ;;  %v7823_v58 = vpop.f32.mrf.mxu1 }
 0x21e   : > { %v9954_v34 = vadd.f32 %v2396_v4, %v2155_v33 }
 0x21f   : > { %v2029_v21 = vpop.f32.mrf.mxu0  ;;  %v2399_v46 = vpop.f32.mrf.mxu1 }
 0x220   : > { %v2156_v15 = vadd.f32 %v2029_v21, %v9601_v62 }
 0x221   : > { %v7746_v37 = vpop.f32.mrf.mxu0  ;;  %v7824_v50 = vpop.f32.mrf.mxu1 }
 0x222   : > { %v9957_v43 = vadd.f32 %v2399_v46, %v2156_v15  ;;  %v11982_v37 = vld [vmem:[#allocation14_spill] sm:$0xff] }
 0x223   : > { %v2034_v22 = vpop.f32.mrf.mxu0  ;;  %7924 = vmatmul.mubr.msk.bf16.gmra.mxu0 %vm444_vm3, %v11978_v16  ;;  %v2404_v35 = vpop.f32.mrf.mxu1  ;;  %8002 = vmatmul.mubr.msk.bf16.gmra.mxu1 %vm444_vm3, %v11979_v38  ;;  %v11983_v16 = vld [vmem:[#allocation15_spill] sm:$0xff] }
 0x224   : > { %v2157_v11 = vadd.f32 %v2034_v22, %v9614_v23  ;;  %7927 = vmatprep.mubr.msk.bf16.mxu0 %vm8841_vm2, %v11969_v19  ;;  %8005 = vmatprep.mubr.msk.bf16.mxu1 %vm8841_vm2, %v11969_v19 }
 0x225   : > { %v7749_v20 = vpop.f32.mrf.mxu0  ;;  %v7827_v49 = vpop.f32.mrf.mxu1 }
 0x226   : > { %v9968_v62 = vadd.f32 %v2404_v35, %v2157_v11 }
 0x227   : > { %v2037_v17 = vpop.f32.mrf.mxu0  ;;  %v2407_v25 = vpop.f32.mrf.mxu1 }
 0x228   : > { %v2158_v45 = vadd.f32 %v2037_v17, %v9625_v31 }
 0x229   : > { %v7750_v55 = vpop.f32.mrf.mxu0  ;;  %v7828_v9 = vpop.f32.mrf.mxu1 }
 0x22a   : > { %v9971_v23 = vadd.f32 %v2407_v25, %v2158_v45  ;;  %v11984_v55 = vld [vmem:[#allocation16_spill] sm:$0xff] }
 0x22b   : > { %v2042_v12 = vpop.f32.mrf.mxu0  ;;  %7928 = vmatmul.mubr.msk.bf16.gmra.mxu0 %vm444_vm3, %v11980_v47  ;;  %v2412_v10 = vpop.f32.mrf.mxu1  ;;  %8006 = vmatmul.mubr.msk.bf16.gmra.mxu1 %vm444_vm3, %v11981_v60  ;;  %v11985_v47 = vld [vmem:[#allocation17_spill] sm:$0xff] }
 0x22c   : > { %v2159_v51 = vadd.f32 %v2042_v12, %v9638_v29  ;;  %7931 = vmatprep.mubr.msk.bf16.mxu0 %vm8841_vm2, %v11969_v19  ;;  %8009 = vmatprep.mubr.msk.bf16.mxu1 %vm8841_vm2, %v11969_v19 }
 0x22d   : > { %v7753_v33 = vpop.f32.mrf.mxu0  ;;  %v7831_v4 = vpop.f32.mrf.mxu1 }
 0x22e   : > { %v9982_v31 = vadd.f32 %v2412_v10, %v2159_v51 }
 0x22f   : > { %v2045_v7 = vpop.f32.mrf.mxu0  ;;  %v2415_v58 = vpop.f32.mrf.mxu1 }
 0x230   : > { %v2160_v26 = vadd.f32 %v2045_v7, %v9649_v44 }
 0x231   : > { %v7754_v21 = vpop.f32.mrf.mxu0  ;;  %v7832_v15 = vpop.f32.mrf.mxu1 }
 0x232   : > { %v9985_v29 = vadd.f32 %v2415_v58, %v2160_v26  ;;  %v11986_v21 = vld [vmem:[#allocation18_spill] sm:$0xff] }
 0x233   : > { %v2050_v46 = vpop.f32.mrf.mxu0  ;;  %7932 = vmatmul.mubr.msk.bf16.gmra.mxu0 %vm444_vm3, %v11982_v37  ;;  %v2420_v22 = vpop.f32.mrf.mxu1  ;;  %8010 = vmatmul.mubr.msk.bf16.gmra.mxu1 %vm444_vm3, %v11983_v16  ;;  %v11987_v37 = vld [vmem:[#allocation19_spill] sm:$0xff] }
 0x234   : > { %v2161_v50 = vadd.f32 %v2050_v46, %v9662_v56  ;;  %7935 = vmatprep.mubr.msk.bf16.mxu0 %vm8841_vm2, %v11969_v19  ;;  %8013 = vmatprep.mubr.msk.bf16.mxu1 %vm8841_vm2, %v11969_v19 }
 0x235   : > { %v7757_v11 = vpop.f32.mrf.mxu0  ;;  %v7835_v35 = vpop.f32.mrf.mxu1 }
 0x236   : > { %v9996_v44 = vadd.f32 %v2420_v22, %v2161_v50 }
 0x237   : > { %v2053_v38 = vpop.f32.mrf.mxu0  ;;  %v2423_v49 = vpop.f32.mrf.mxu1 }
 0x238   : > { %v2162_v20 = vadd.f32 %v2053_v38, %v9673_v48 }
 0x239   : > { %v7758_v17 = vpop.f32.mrf.mxu0  ;;  %v7836_v45 = vpop.f32.mrf.mxu1 }
 0x23a   : > { %v9999_v56 = vadd.f32 %v2423_v49, %v2162_v20  ;;  %v11988_v17 = vld [vmem:[#allocation20_spill] sm:$0xff] }
 0x23b   : > { %v2058_v25 = vpop.f32.mrf.mxu0  ;;  %7936 = vmatmul.mubr.msk.bf16.gmra.mxu0 %vm444_vm3, %v11984_v55  ;;  %v2428_v12 = vpop.f32.mrf.mxu1  ;;  %8014 = vmatmul.mubr.msk.bf16.gmra.mxu1 %vm444_vm3, %v11985_v47  ;;  %v11989_v55 = vld [vmem:[#allocation21_spill] sm:$0xff] }
 0x23c   : > { %v2163_v9 = vadd.f32 %v2058_v25, %v9686_v3  ;;  %7939 = vmatprep.mubr.msk.bf16.mxu0 %vm8841_vm2, %v11969_v19  ;;  %8017 = vmatprep.mubr.msk.bf16.mxu1 %vm8841_vm2, %v11969_v19 }
 0x23d   : > { %v7761_v51 = vpop.f32.mrf.mxu0  ;;  %v7839_v10 = vpop.f32.mrf.mxu1 }
 0x23e   : > { %v10010_v48 = vadd.f32 %v2428_v12, %v2163_v9 }
 0x23f   : > { %v2061_v60 = vpop.f32.mrf.mxu0  ;;  %v2431_v4 = vpop.f32.mrf.mxu1 }
 0x240   : > { %v2164_v33 = vadd.f32 %v2061_v60, %v9697_v36 }
 0x241   : > { %v7762_v7 = vpop.f32.mrf.mxu0  ;;  %v7840_v26 = vpop.f32.mrf.mxu1 }
 0x242   : > { %v10013_v3 = vadd.f32 %v2431_v4, %v2164_v33  ;;  %v11990_v7 = vld [vmem:[#allocation22_spill] sm:$0xff] }
 0x243   : > { %v2066_v58 = vpop.f32.mrf.mxu0  ;;  %7940 = vmatmul.mubr.msk.bf16.gmra.mxu0 %vm444_vm3, %v11986_v21  ;;  %v2436_v46 = vpop.f32.mrf.mxu1  ;;  %8018 = vmatmul.mubr.msk.bf16.gmra.mxu1 %vm444_vm3, %v11987_v37  ;;  %v11991_v21 = vld [vmem:[#allocation23_spill] sm:$0xff] }
 0x244   : > { %v2165_v15 = vadd.f32 %v2066_v58, %v9710_v14  ;;  %7943 = vmatprep.mubr.msk.bf16.mxu0 %vm8841_vm2, %v11969_v19  ;;  %8021 = vmatprep.mubr.msk.bf16.mxu1 %vm8841_vm2, %v11969_v19 }
 0x245   : > { %v7765_v50 = vpop.f32.mrf.mxu0  ;;  %v7843_v22 = vpop.f32.mrf.mxu1 }
 0x246   : > { %v10024_v36 = vadd.f32 %v2436_v46, %v2165_v15 }
 0x247   : > { %v2069_v16 = vpop.f32.mrf.mxu0  ;;  %v2439_v35 = vpop.f32.mrf.mxu1 }
 0x248   : > { %v2166_v11 = vadd.f32 %v2069_v16, %v9721_v6 }
 0x249   : > { %v7766_v38 = vpop.f32.mrf.mxu0  ;;  %v7844_v20 = vpop.f32.mrf.mxu1 }
 0x24a   : > { %v10027_v14 = vadd.f32 %v2439_v35, %v2166_v11  ;;  %v11992_v38 = vld [vmem:[#allocation24_spill] sm:$0xff] }
 0x24b   : > { %v2074_v49 = vpop.f32.mrf.mxu0  ;;  %7944 = vmatmul.mubr.msk.bf16.gmra.mxu0 %vm444_vm3, %v11988_v17  ;;  %v2444_v25 = vpop.f32.mrf.mxu1  ;;  %8022 = vmatmul.mubr.msk.bf16.gmra.mxu1 %vm444_vm3, %v11989_v55  ;;  %v11993_v17 = vld [vmem:[#allocation25_spill] sm:$0xff] }
 0x24c   : > { %v2167_v45 = vadd.f32 %v2074_v49, %v9734_v24  ;;  %7947 = vmatprep.mubr.msk.bf16.mxu0 %vm8841_vm2, %v11969_v19  ;;  %8025 = vmatprep.mubr.msk.bf16.mxu1 %vm8841_vm2, %v11969_v19 }
 0x24d   : > { %v7769_v9 = vpop.f32.mrf.mxu0  ;;  %v7847_v12 = vpop.f32.mrf.mxu1 }
 0x24e   : > { %v10038_v6 = vadd.f32 %v2444_v25, %v2167_v45 }
 0x24f   : > { %v2077_v47 = vpop.f32.mrf.mxu0  ;;  %v2447_v10 = vpop.f32.mrf.mxu1 }
 0x250   : > { %v2168_v51 = vadd.f32 %v2077_v47, %v9745_v42 }
 0x251   : > { %v7770_v60 = vpop.f32.mrf.mxu0  ;;  %v7848_v33 = vpop.f32.mrf.mxu1 }
 0x252   : > { %v10041_v24 = vadd.f32 %v2447_v10, %v2168_v51  ;;  %v11994_v60 = vld [vmem:[#allocation26_spill] sm:$0xff] }
 0x253   : > { %v2082_v4 = vpop.f32.mrf.mxu0  ;;  %7948 = vmatmul.mubr.msk.bf16.gmra.mxu0 %vm444_vm3, %v11990_v7  ;;  %v2452_v58 = vpop.f32.mrf.mxu1  ;;  %8026 = vmatmul.mubr.msk.bf16.gmra.mxu1 %vm444_vm3, %v11991_v21  ;;  %v11995_v7 = vld [vmem:[#allocation27_spill] sm:$0xff] }
 0x254   : > { %v2169_v26 = vadd.f32 %v2082_v4, %v9758_v54  ;;  %7951 = vmatprep.mubr.msk.bf16.mxu0 %vm8841_vm2, %v11969_v19  ;;  %8029 = vmatprep.mubr.msk.bf16.mxu1 %vm8841_vm2, %v11969_v19 }
 0x255   : > { %v7773_v15 = vpop.f32.mrf.mxu0  ;;  %v7851_v46 = vpop.f32.mrf.mxu1 }
 0x256   : > { %v10052_v42 = vadd.f32 %v2452_v58, %v2169_v26 }
 0x257   : > { %v2085_v37 = vpop.f32.mrf.mxu0  ;;  %v2455_v22 = vpop.f32.mrf.mxu1 }
 0x258   : > { %v2170_v50 = vadd.f32 %v2085_v37, %v9769_v52 }
 0x259   : > { %v7774_v16 = vpop.f32.mrf.mxu0  ;;  %v7852_v11 = vpop.f32.mrf.mxu1 }
 0x25a   : > { %v10055_v54 = vadd.f32 %v2455_v22, %v2170_v50  ;;  %v11996_v16 = vld [vmem:[#allocation28_spill] sm:$0xff] }
 0x25b   : > { %v2090_v35 = vpop.f32.mrf.mxu0  ;;  %7952 = vmatmul.mubr.msk.bf16.gmra.mxu0 %vm444_vm3, %v11992_v38  ;;  %v2460_v49 = vpop.f32.mrf.mxu1  ;;  %8030 = vmatmul.mubr.msk.bf16.gmra.mxu1 %vm444_vm3, %v11993_v17  ;;  %v11997_v38 = vld [vmem:[#allocation29_spill] sm:$0xff]  ;;  %v6926_v17 = vld [vmem:[%s11877_s1 + $0x16] sm:$0x3] }
 0x25c   : > { %v2171_v20 = vadd.f32 %v2090_v35, %v9782_v0  ;;  %7955 = vmatprep.mubr.msk.bf16.mxu0 %vm8841_vm2, %v11969_v19  ;;  %8033 = vmatprep.mubr.msk.bf16.mxu1 %vm8841_vm2, %v11969_v19 }
 0x25d   : > { %v7777_v45 = vpop.f32.mrf.mxu0  ;;  %v7855_v25 = vpop.f32.mrf.mxu1 }
 0x25e   : > { %v10066_v52 = vadd.f32 %v2460_v49, %v2171_v20  ;;  %v6906_v20 = vld [vmem:[%s11877_s1 + $0x14] sm:$0x3] }
 0x25f   : > { %v2093_v55 = vpop.f32.mrf.mxu0  ;;  %v2463_v12 = vpop.f32.mrf.mxu1 }
 0x260   : > { %v2172_v9 = vadd.f32 %v2093_v55, %v9793_v61 }
 0x261   : > { %v7778_v47 = vpop.f32.mrf.mxu0  ;;  %v7856_v51 = vpop.f32.mrf.mxu1 }
 0x262   : > { %v10069_v0 = vadd.f32 %v2463_v12, %v2172_v9  ;;  %v3992_v9 = vand.u32 %v6906_v20, %v8883_v5  ;;  %v4352_v47 = vand.u32 %v6926_v17, %v8883_v5 }
 0x263   : > { %v2098_v10 = vpop.f32.mrf.mxu0  ;;  %7956 = vmatmul.mubr.msk.bf16.gmra.mxu0 %vm444_vm3, %v11994_v60  ;;  %v2468_v4 = vpop.f32.mrf.mxu1  ;;  %8034 = vmatmul.mubr.msk.bf16.gmra.mxu1 %vm444_vm3, %v11995_v7 }
 0x264   : > { %v2173_v33 = vadd.f32 %v2098_v10, %v9809_v28  ;;  %7959 = vmatprep.mubr.msk.bf16.mxu0 %vm8841_vm2, %v11969_v19  ;;  %8037 = vmatprep.mubr.msk.bf16.mxu1 %vm8841_vm2, %v11969_v19 }
 0x265   : > { %v7781_v26 = vpop.f32.mrf.mxu0  ;;  %v7859_v58 = vpop.f32.mrf.mxu1 }
 0x266   : > { %v10080_v61 = vadd.f32 %v2468_v4, %v2173_v33  ;;  %v10108_v33 = vld [vmem:[%s8905_s27] sm:$0xff]   ;;  %v10114_v26 = vld [vmem:[%s8905_s27 + $0x94] sm:$0xff]  }
 0x267   : > { %v2101_v21 = vpop.f32.mrf.mxu0  ;;  %v2471_v46 = vpop.f32.mrf.mxu1 }
 0x268   : > { %v2174_v15 = vadd.f32 %v2101_v21, %v9819_v27 }
 0x269   : > { %v7782_v37 = vpop.f32.mrf.mxu0  ;;  %v7860_v50 = vpop.f32.mrf.mxu1 }
 0x26a   : > { %v10083_v28 = vadd.f32 %v2471_v46, %v2174_v15 }
 0x26b   : > { %v2106_v22 = vpop.f32.mrf.mxu0  ;;  %7960 = vmatmul.mubr.msk.bf16.gmra.mxu0 %vm444_vm3, %v11996_v16  ;;  %v2476_v35 = vpop.f32.mrf.mxu1  ;;  %8038 = vmatmul.mubr.msk.bf16.gmra.mxu1 %vm444_vm3, %v11997_v38 }
 0x26c   : > { %v2175_v11 = vadd.f32 %v2106_v22, %v9830_v18  ;;  %8043 = vmatprep.mubr.msk.bf16.mxu0 %vm8841_vm2, %v11969_v19  ;;  %8121 = vmatprep.mubr.msk.bf16.mxu1 %vm8841_vm2, %v11969_v19 }
 0x26d   : > { %v7785_v27 = vpop.f32.mrf.mxu0  ;;  %v7863_v18 = vpop.f32.mrf.mxu1 }
 0x26e   : > { %v10097_v49 = vadd.f32 %v2476_v35, %v2175_v11  ;;  %v10130_v11 = vld [vmem:[%s8905_s27 + $0x8] sm:$0xff]   ;;  %v10136_v27 = vld [vmem:[%s8905_s27 + $0x9c] sm:$0xff]  }
 0x26f   : > { %v2109_v45 = vpop.f32.mrf.mxu0  ;;  %v2479_v55 = vpop.f32.mrf.mxu1 }
 0x270   : > { %v2176_v25 = vadd.f32 %v2109_v45, %v9839_v59 }
 0x271   : > { %v7786_v12 = vpop.f32.mrf.mxu0  ;;  %v7864_v10 = vpop.f32.mrf.mxu1 }
 0x272   : > { %v10105_v51 = vadd.f32 %v2479_v55, %v2176_v25 }
 0x273   : > { %v2114_v60 = vpop.f32.mrf.mxu0  ;;  %8044 = vmatmul.mubr.msk.bf16.vlgmr.msra.gmra.mxu0 %vm444_vm3, %v10108_v33  ;;  %v2484_v7 = vpop.f32.mrf.mxu1  ;;  %8122 = vmatmul.mubr.msk.bf16.vlgmr.msra.gmra.mxu1 %vm444_vm3, %v10114_v26 }
 0x274   : > { %v2177_v4 = vadd.f32 %v2114_v60, %v9852_v63  ;;  %8198 = vmatpush3.bf16.msra.mxu0 %v3992_v9  ;;  %8276 = vmatpush3.bf16.msra.mxu1 %v4352_v47  ;;  %v10150_v47 = vld [vmem:[%s8905_s27 + $0x10] sm:$0xff]  }
 0x275   : > { %v7789_v59 = vpop.f32.mrf.mxu0  ;;  %8047 = vmatprep.mubr.msk.bf16.mxu0 %vm8841_vm2, %v11969_v19  ;;  %v7867_v21 = vpop.f32.mrf.mxu1  ;;  %8125 = vmatprep.mubr.msk.bf16.mxu1 %vm8841_vm2, %v11969_v19 }
 0x276   : > { %v10120_v58 = vadd.f32 %v2484_v7, %v2177_v4  ;;  %8353 = vmatprep.subr.bf16.mxu0 %v11969_v19  ;;  %8431 = vmatprep.subr.bf16.mxu1 %v11969_v19  ;;  %v10156_v4 = vld [vmem:[%s8905_s27 + $0xa4] sm:$0xff]  }
 0x277   : > { %v2117_v63 = vpop.f32.mrf.mxu0  ;;  %v2487_v46 = vpop.f32.mrf.mxu1 }
 0x278   : > { %v2178_v15 = vadd.f32 %v2117_v63, %v9857_v8 }
 0x279   : > { %v7790_v37 = vpop.f32.mrf.mxu0  ;;  %v7868_v22 = vpop.f32.mrf.mxu1 }
 0x27a   : > { %v10127_v50 = vadd.f32 %v2487_v46, %v2178_v15 }
 0x27b   : > { %v2122_v16 = vpop.f32.mrf.mxu0  ;;  %8048 = vmatmul.mubr.msk.bf16.gmra.mxu0 %vm444_vm3, %v10130_v11  ;;  %v2492_v38 = vpop.f32.mrf.mxu1  ;;  %8126 = vmatmul.mubr.msk.bf16.gmra.mxu1 %vm444_vm3, %v10136_v27 }
 0x27c   : > { %v2179_v35 = vadd.f32 %v2122_v16, %v9870_v1  ;;  %8051 = vmatprep.mubr.msk.bf16.mxu0 %vm8841_vm2, %v11969_v19  ;;  %8129 = vmatprep.mubr.msk.bf16.mxu1 %vm8841_vm2, %v11969_v19  ;;  %v10170_v16 = vld [vmem:[%s8905_s27 + $0x18] sm:$0xff]  }
 0x27d   : > { %v7793_v8 = vpop.f32.mrf.mxu0  ;;  %v7871_v18 = vpop.f32.mrf.mxu1 }
 0x27e   : > { %v10144_v20 = vadd.f32 %v2492_v38, %v2179_v35  ;;  %v10175_v38 = vld [vmem:[%s8905_s27 + $0xac] sm:$0xff]  }
 0x27f   : > { %v2125_v17 = vpop.f32.mrf.mxu0  ;;  %v2495_v45 = vpop.f32.mrf.mxu1 }
 0x280   : > { %v2180_v1 = vadd.f32 %v2125_v17, %v9875_v13 }
 0x281   : > { %v7794_v25 = vpop.f32.mrf.mxu0  ;;  %v7872_v9 = vpop.f32.mrf.mxu1 }
 0x282   : > { %v10147_v55 = vadd.f32 %v2495_v45, %v2180_v1  ;;  %v10184_v9 = vld [vmem:[%s8905_s27 + $0x20] sm:$0xff]  }
 0x283   : > { %v2130_v12 = vpop.f32.mrf.mxu0  ;;  %8052 = vmatmul.mubr.msk.bf16.gmra.mxu0 %vm444_vm3, %v10150_v47  ;;  %v2500_v60 = vpop.f32.mrf.mxu1  ;;  %8130 = vmatmul.mubr.msk.bf16.gmra.mxu1 %vm444_vm3, %v10156_v4 }
 0x284   : > { %v2181_v10 = vadd.f32 %v2130_v12, %v9888_v53  ;;  %8055 = vmatprep.mubr.msk.bf16.mxu0 %vm8841_vm2, %v11969_v19  ;;  %8133 = vmatprep.mubr.msk.bf16.mxu1 %vm8841_vm2, %v11969_v19 }
 0x285   : > { %v7797_v13 = vpop.f32.mrf.mxu0  ;;  %v7875_v59 = vpop.f32.mrf.mxu1 }
 0x286   : > { %v10164_v7 = vadd.f32 %v2500_v60, %v2181_v10  ;;  %v10189_v10 = vld [vmem:[%s8905_s27 + $0xb4] sm:$0xff]  }
 0x287   : > { %v2133_v21 = vpop.f32.mrf.mxu0  ;;  %v2503_v63 = vpop.f32.mrf.mxu1 }
 0x288   : > { %v2182_v53 = vadd.f32 %v2133_v21, %v9893_v32 }
 0x289   : > { %v7798_v15 = vpop.f32.mrf.mxu0  ;;  %v7876_v37 = vpop.f32.mrf.mxu1 }
 0x28a   : > { %v10167_v46 = vadd.f32 %v2503_v63, %v2182_v53  ;;  %v10198_v37 = vld [vmem:[%s8905_s27 + $0x28] sm:$0xff]  }
 0x28b   : > { %v2138_v22 = vpop.f32.mrf.mxu0  ;;  %8056 = vmatmul.mubr.msk.bf16.gmra.mxu0 %vm444_vm3, %v10170_v16  ;;  %v2508_v35 = vpop.f32.mrf.mxu1  ;;  %8134 = vmatmul.mubr.msk.bf16.gmra.mxu1 %vm444_vm3, %v10175_v38 }
 0x28c   : > { %8059 = vmatprep.mubr.msk.bf16.mxu0 %vm8841_vm2, %v11969_v19  ;;  %8137 = vmatprep.mubr.msk.bf16.mxu1 %vm8841_vm2, %v11969_v19  ;;  %v10203_v35 = vld [vmem:[%s8905_s27 + $0xbc] sm:$0xff]  }
 0x28d   : > { %v7801_v32 = vpop.f32.mrf.mxu0  ;;  %v7879_v8 = vpop.f32.mrf.mxu1  ;;  %11998 = vst [vmem:[#allocation2_spill] sm:$0xff] %v10203_v35 }
 0x28f   : > { %v2140_v18 = vpop.f32.mrf.mxu0  ;;  %v2510_v17 = vpop.f32.mrf.mxu1 }
 0x291   : > { %v7802_v1 = vpop.f32.mrf.mxu0  ;;  %v7880_v45 = vpop.f32.mrf.mxu1 }
 0x293   : > { %v2144_v25 = vpop.f32.mrf.mxu0  ;;  %8060 = vmatmul.mubr.msk.bf16.gmra.mxu0 %vm444_vm3, %v10184_v9  ;;  %v2514_v12 = vpop.f32.mrf.mxu1  ;;  %8138 = vmatmul.mubr.msk.bf16.gmra.mxu1 %vm444_vm3, %v10189_v10 }
 0x294   : > { %8063 = vmatprep.mubr.msk.bf16.mxu0 %vm8841_vm2, %v11969_v19  ;;  %8141 = vmatprep.mubr.msk.bf16.mxu1 %vm8841_vm2, %v11969_v19 }
 0x295   : > { %v7805_v60 = vpop.f32.mrf.mxu0  ;;  %v7883_v13 = vpop.f32.mrf.mxu1 }
 0x297   : > { %v2146_v59 = vpop.f32.mrf.mxu0  ;;  %v2516_v21 = vpop.f32.mrf.mxu1 }
 0x299   : > { %v7806_v53 = vpop.f32.mrf.mxu0  ;;  %v7884_v63 = vpop.f32.mrf.mxu1 }
 0x29b   : > { %v2592_v15 = vpop.f32.mrf.mxu0  ;;  %8064 = vmatmul.mubr.msk.bf16.gmra.mxu0 %vm444_vm3, %v10198_v37  ;;  %v2951_v22 = vpop.f32.mrf.mxu1  ;;  %8142 = vmatmul.mubr.msk.bf16.gmra.mxu1 %vm444_vm3, %v10203_v35  ;;  %v10239_v35 = vld [vmem:[%s8905_s27 + $0x38] sm:$0xff]  }
 0x29c   : > { %8067 = vmatprep.mubr.msk.bf16.mxu0 %vm8841_vm2, %v11969_v19  ;;  %8145 = vmatprep.mubr.msk.bf16.mxu1 %vm8841_vm2, %v11969_v19  ;;  %v2775_v17 = vrot.slane %v2592_v15, 1  ;;  %v3134_v25 = vrot.slane %v2951_v22, 1 }
 0x29d   : > { %v7889_v32 = vpop.f32.mrf.mxu0  ;;  %v7967_v8 = vpop.f32.mrf.mxu1 }
 0x29e   : > { %v10215_v32 = vld [vmem:[%s8905_s27 + $0x30] sm:$0xff]  }
 0x29f   : > { %v2595_v18 = vpop.f32.mrf.mxu0  ;;  %v2954_v45 = vpop.f32.mrf.mxu1  ;;  %11999 = vst [vmem:[#allocation3_spill] sm:$0xff] %v10215_v32 }
 0x2a0   : > { %v2776_v1 = vrot.slane %v2595_v18, 1  ;;  %v3135_v12 = vrot.slane %v2954_v45, 1  ;;  %v10220_v18 = vld [vmem:[%s8905_s27 + $0xc4] sm:$0xff]  }
 0x2a1   : > { %v7890_v60 = vpop.f32.mrf.mxu0  ;;  %v7968_v59 = vpop.f32.mrf.mxu1  ;;  %12000 = vst [vmem:[#allocation4_spill] sm:$0xff] %v10220_v18 }
 0x2a2   : > { %v2777_v13 = vsel %vm1316_vm4, %v2775_v17, %v2776_v1  ;;  %v3136_v53 = vsel %vm1316_vm4, %v3134_v25, %v3135_v12 }
 0x2a3   : > { %v2878_v21 = vadd.f32 %v2777_v13, %v9912_v30  ;;  %v2600_v63 = vpop.f32.mrf.mxu0  ;;  %8068 = vmatmul.mubr.msk.bf16.gmra.mxu0 %vm444_vm3, %v10215_v32  ;;  %v2959_v15 = vpop.f32.mrf.mxu1  ;;  %8146 = vmatmul.mubr.msk.bf16.gmra.mxu1 %vm444_vm3, %v10220_v18 }
 0x2a4   : > { %v2778_v8 = vrot.slane %v2600_v63, 1  ;;  %8071 = vmatprep.mubr.msk.bf16.mxu0 %vm8841_vm2, %v11969_v19  ;;  %v3137_v30 = vrot.slane %v2959_v15, 1  ;;  %8149 = vmatprep.mubr.msk.bf16.mxu1 %vm8841_vm2, %v11969_v19 }
 0x2a5   : > { %v10226_v22 = vadd.f32 %v3136_v53, %v2878_v21  ;;  %v7893_v17 = vpop.f32.mrf.mxu0  ;;  %v7971_v25 = vpop.f32.mrf.mxu1 }
 0x2a6   : > { %v2779_v45 = vsel %vm1316_vm4, %v2776_v1, %v2778_v8  ;;  %v3138_v13 = vsel %vm1316_vm4, %v3135_v12, %v3137_v30 }
 0x2a7   : > { %12001 = vst [vmem:[#allocation5_spill] sm:$0xff] %v10226_v22  ;;  %v2879_v60 = vadd.f32 %v2779_v45, %v9915_v39  ;;  %v2603_v59 = vpop.f32.mrf.mxu0  ;;  %v2962_v18 = vpop.f32.mrf.mxu1  ;;  %v10244_v45 = vld [vmem:[%s8905_s27 + $0xcc] sm:$0xff]  }
 0x2a8   : > { %v2780_v63 = vrot.slane %v2603_v59, 1  ;;  %v3139_v21 = vrot.slane %v2962_v18, 1 }
 0x2a9   : > { %v10233_v32 = vadd.f32 %v3138_v13, %v2879_v60  ;;  %v7894_v53 = vpop.f32.mrf.mxu0  ;;  %v7972_v17 = vpop.f32.mrf.mxu1 }
 0x2aa   : > { %v2781_v15 = vsel %vm1316_vm4, %v2778_v8, %v2780_v63  ;;  %v3140_v1 = vsel %vm1316_vm4, %v3137_v30, %v3139_v21 }
 0x2ab   : > { %12002 = vst [vmem:[#allocation6_spill] sm:$0xff] %v10233_v32  ;;  %v2880_v22 = vadd.f32 %v2781_v15, %v9926_v40  ;;  %v2608_v25 = vpop.f32.mrf.mxu0  ;;  %8072 = vmatmul.mubr.msk.bf16.gmra.mxu0 %vm444_vm3, %v10239_v35  ;;  %v2967_v12 = vpop.f32.mrf.mxu1  ;;  %8150 = vmatmul.mubr.msk.bf16.gmra.mxu1 %vm444_vm3, %v10244_v45  ;;  %v10263_v32 = vld [vmem:[%s8905_s27 + $0x40] sm:$0xff]  }
 0x2ac   : > { %v2782_v39 = vrot.slane %v2608_v25, 1  ;;  %8075 = vmatprep.mubr.msk.bf16.mxu0 %vm8841_vm2, %v11969_v19  ;;  %v3141_v40 = vrot.slane %v2967_v12, 1  ;;  %8153 = vmatprep.mubr.msk.bf16.mxu1 %vm8841_vm2, %v11969_v19 }
 0x2ad   : > { %v10250_v8 = vadd.f32 %v3140_v1, %v2880_v22  ;;  %v7897_v18 = vpop.f32.mrf.mxu0  ;;  %v7975_v60 = vpop.f32.mrf.mxu1 }
 0x2ae   : > { %v2783_v30 = vsel %vm1316_vm4, %v2780_v63, %v2782_v39  ;;  %v3142_v59 = vsel %vm1316_vm4, %v3139_v21, %v3141_v40 }
 0x2af   : > { %12003 = vst [vmem:[#allocation7_spill] sm:$0xff] %v10250_v8  ;;  %v2881_v13 = vadd.f32 %v2783_v30, %v9929_v2  ;;  %v2611_v53 = vpop.f32.mrf.mxu0  ;;  %v2970_v17 = vpop.f32.mrf.mxu1  ;;  %v10268_v30 = vld [vmem:[%s8905_s27 + $0xd4] sm:$0xff]  }
 0x2b0   : > { %v2784_v15 = vrot.slane %v2611_v53, 1  ;;  %v3143_v22 = vrot.slane %v2970_v17, 1 }
 0x2b1   : > { %v10257_v25 = vadd.f32 %v3142_v59, %v2881_v13  ;;  %v7898_v1 = vpop.f32.mrf.mxu0  ;;  %v7976_v18 = vpop.f32.mrf.mxu1 }
 0x2b2   : > { %v2785_v12 = vsel %vm1316_vm4, %v2782_v39, %v2784_v15  ;;  %v3144_v63 = vsel %vm1316_vm4, %v3141_v40, %v3143_v22 }
 0x2b3   : > { %12004 = vst [vmem:[#allocation8_spill] sm:$0xff] %v10257_v25  ;;  %v2882_v8 = vadd.f32 %v2785_v12, %v9940_v41  ;;  %v2616_v60 = vpop.f32.mrf.mxu0  ;;  %8076 = vmatmul.mubr.msk.bf16.gmra.mxu0 %vm444_vm3, %v10263_v32  ;;  %v2975_v21 = vpop.f32.mrf.mxu1  ;;  %8154 = vmatmul.mubr.msk.bf16.gmra.mxu1 %vm444_vm3, %v10268_v30  ;;  %v10287_v25 = vld [vmem:[%s8905_s27 + $0x48] sm:$0xff]  }
 0x2b4   : > { %v2786_v2 = vrot.slane %v2616_v60, 1  ;;  %8079 = vmatprep.mubr.msk.bf16.mxu0 %vm8841_vm2, %v11969_v19  ;;  %v3145_v41 = vrot.slane %v2975_v21, 1  ;;  %8157 = vmatprep.mubr.msk.bf16.mxu1 %vm8841_vm2, %v11969_v19 }
 0x2b5   : > { %v10274_v39 = vadd.f32 %v3144_v63, %v2882_v8  ;;  %v7901_v40 = vpop.f32.mrf.mxu0  ;;  %v7979_v59 = vpop.f32.mrf.mxu1 }
 0x2b6   : > { %v2787_v13 = vsel %vm1316_vm4, %v2784_v15, %v2786_v2  ;;  %v3146_v17 = vsel %vm1316_vm4, %v3143_v22, %v3145_v41 }
 0x2b7   : > { %12005 = vst [vmem:[#allocation9_spill] sm:$0xff] %v10274_v39  ;;  %v2883_v53 = vadd.f32 %v2787_v13, %v9943_v57  ;;  %v2619_v1 = vpop.f32.mrf.mxu0  ;;  %v2978_v18 = vpop.f32.mrf.mxu1  ;;  %v10292_v13 = vld [vmem:[%s8905_s27 + $0xdc] sm:$0xff]  }
 0x2b8   : > { %v2788_v12 = vrot.slane %v2619_v1, 1  ;;  %v3147_v8 = vrot.slane %v2978_v18, 1 }
 0x2b9   : > { %v10281_v60 = vadd.f32 %v3146_v17, %v2883_v53  ;;  %v7902_v63 = vpop.f32.mrf.mxu0  ;;  %v7980_v40 = vpop.f32.mrf.mxu1 }
 0x2ba   : > { %v2789_v21 = vsel %vm1316_vm4, %v2786_v2, %v2788_v12  ;;  %v3148_v15 = vsel %vm1316_vm4, %v3145_v41, %v3147_v8 }
 0x2bb   : > { %12006 = vst [vmem:[#allocation10_spill] sm:$0xff] %v10281_v60  ;;  %v2884_v39 = vadd.f32 %v2789_v21, %v9954_v34  ;;  %v2624_v59 = vpop.f32.mrf.mxu0  ;;  %8080 = vmatmul.mubr.msk.bf16.gmra.mxu0 %vm444_vm3, %v10287_v25  ;;  %v2983_v22 = vpop.f32.mrf.mxu1  ;;  %8158 = vmatmul.mubr.msk.bf16.gmra.mxu1 %vm444_vm3, %v10292_v13  ;;  %v10311_v60 = vld [vmem:[%s8905_s27 + $0x50] sm:$0xff]  }
 0x2bc   : > { %v2790_v57 = vrot.slane %v2624_v59, 1  ;;  %8083 = vmatprep.mubr.msk.bf16.mxu0 %vm8841_vm2, %v11969_v19  ;;  %v3149_v34 = vrot.slane %v2983_v22, 1  ;;  %8161 = vmatprep.mubr.msk.bf16.mxu1 %vm8841_vm2, %v11969_v19 }
 0x2bd   : > { %v10298_v2 = vadd.f32 %v3148_v15, %v2884_v39  ;;  %v7905_v41 = vpop.f32.mrf.mxu0  ;;  %v7983_v17 = vpop.f32.mrf.mxu1 }
 0x2be   : > { %v2791_v53 = vsel %vm1316_vm4, %v2788_v12, %v2790_v57  ;;  %v3150_v18 = vsel %vm1316_vm4, %v3147_v8, %v3149_v34 }
 0x2bf   : > { %12007 = vst [vmem:[#allocation11_spill] sm:$0xff] %v10298_v2  ;;  %v2885_v1 = vadd.f32 %v2791_v53, %v9957_v43  ;;  %v2627_v63 = vpop.f32.mrf.mxu0  ;;  %v2986_v40 = vpop.f32.mrf.mxu1  ;;  %v10316_v53 = vld [vmem:[%s8905_s27 + $0xe4] sm:$0xff]  }
 0x2c0   : > { %v2792_v21 = vrot.slane %v2627_v63, 1  ;;  %v3151_v39 = vrot.slane %v2986_v40, 1 }
 0x2c1   : > { %v10305_v59 = vadd.f32 %v3150_v18, %v2885_v1  ;;  %v7906_v15 = vpop.f32.mrf.mxu0  ;;  %v7984_v41 = vpop.f32.mrf.mxu1 }
 0x2c2   : > { %v2793_v22 = vsel %vm1316_vm4, %v2790_v57, %v2792_v21  ;;  %v3152_v12 = vsel %vm1316_vm4, %v3149_v34, %v3151_v39 }
 0x2c3   : > { %12008 = vst [vmem:[#allocation12_spill] sm:$0xff] %v10305_v59  ;;  %v2886_v2 = vadd.f32 %v2793_v22, %v9968_v62  ;;  %v2632_v17 = vpop.f32.mrf.mxu0  ;;  %8084 = vmatmul.mubr.msk.bf16.gmra.mxu0 %vm444_vm3, %v10311_v60  ;;  %v2991_v8 = vpop.f32.mrf.mxu1  ;;  %8162 = vmatmul.mubr.msk.bf16.gmra.mxu1 %vm444_vm3, %v10316_v53  ;;  %v10335_v59 = vld [vmem:[%s8905_s27 + $0x58] sm:$0xff]  }
 0x2c4   : > { %v2794_v43 = vrot.slane %v2632_v17, 1  ;;  %8087 = vmatprep.mubr.msk.bf16.mxu0 %vm8841_vm2, %v11969_v19  ;;  %v3153_v62 = vrot.slane %v2991_v8, 1  ;;  %8165 = vmatprep.mubr.msk.bf16.mxu1 %vm8841_vm2, %v11969_v19 }
 0x2c5   : > { %v10322_v57 = vadd.f32 %v3152_v12, %v2886_v2  ;;  %v7909_v34 = vpop.f32.mrf.mxu0  ;;  %v7987_v18 = vpop.f32.mrf.mxu1 }
 0x2c6   : > { %v2795_v1 = vsel %vm1316_vm4, %v2792_v21, %v2794_v43  ;;  %v3154_v40 = vsel %vm1316_vm4, %v3151_v39, %v3153_v62 }
 0x2c7   : > { %12009 = vst [vmem:[#allocation13_spill] sm:$0xff] %v10322_v57  ;;  %v2887_v63 = vadd.f32 %v2795_v1, %v9971_v23  ;;  %v2635_v15 = vpop.f32.mrf.mxu0  ;;  %v2994_v41 = vpop.f32.mrf.mxu1  ;;  %v10340_v1 = vld [vmem:[%s8905_s27 + $0xec] sm:$0xff]  }
 0x2c8   : > { %v2796_v22 = vrot.slane %v2635_v15, 1  ;;  %v3155_v2 = vrot.slane %v2994_v41, 1 }
 0x2c9   : > { %v10329_v17 = vadd.f32 %v3154_v40, %v2887_v63  ;;  %v7910_v12 = vpop.f32.mrf.mxu0  ;;  %v7988_v34 = vpop.f32.mrf.mxu1 }
 0x2ca   : > { %v2797_v8 = vsel %vm1316_vm4, %v2794_v43, %v2796_v22  ;;  %v3156_v21 = vsel %vm1316_vm4, %v3153_v62, %v3155_v2 }
 0x2cb   : > { %12010 = vst [vmem:[#allocation14_spill] sm:$0xff] %v10329_v17  ;;  %v2888_v57 = vadd.f32 %v2797_v8, %v9982_v31  ;;  %v2640_v18 = vpop.f32.mrf.mxu0  ;;  %8088 = vmatmul.mubr.msk.bf16.gmra.mxu0 %vm444_vm3, %v10335_v59  ;;  %v2999_v39 = vpop.f32.mrf.mxu1  ;;  %8166 = vmatmul.mubr.msk.bf16.gmra.mxu1 %vm444_vm3, %v10340_v1  ;;  %v10359_v17 = vld [vmem:[%s8905_s27 + $0x60] sm:$0xff]  }
 0x2cc   : > { %v2798_v23 = vrot.slane %v2640_v18, 1  ;;  %8091 = vmatprep.mubr.msk.bf16.mxu0 %vm8841_vm2, %v11969_v19  ;;  %v3157_v31 = vrot.slane %v2999_v39, 1  ;;  %8169 = vmatprep.mubr.msk.bf16.mxu1 %vm8841_vm2, %v11969_v19 }
 0x2cd   : > { %v10346_v43 = vadd.f32 %v3156_v21, %v2888_v57  ;;  %v7913_v62 = vpop.f32.mrf.mxu0  ;;  %v7991_v40 = vpop.f32.mrf.mxu1 }
 0x2ce   : > { %v2799_v63 = vsel %vm1316_vm4, %v2796_v22, %v2798_v23  ;;  %v3158_v41 = vsel %vm1316_vm4, %v3155_v2, %v3157_v31 }
 0x2cf   : > { %12011 = vst [vmem:[#allocation15_spill] sm:$0xff] %v10346_v43  ;;  %v2889_v15 = vadd.f32 %v2799_v63, %v9985_v29  ;;  %v2643_v12 = vpop.f32.mrf.mxu0  ;;  %v3002_v34 = vpop.f32.mrf.mxu1  ;;  %v10364_v63 = vld [vmem:[%s8905_s27 + $0xf4] sm:$0xff]  }
 0x2d0   : > { %v2800_v8 = vrot.slane %v2643_v12, 1  ;;  %v3159_v57 = vrot.slane %v3002_v34, 1 }
 0x2d1   : > { %v10353_v18 = vadd.f32 %v3158_v41, %v2889_v15  ;;  %v7914_v21 = vpop.f32.mrf.mxu0  ;;  %v7992_v62 = vpop.f32.mrf.mxu1 }
 0x2d2   : > { %v2801_v39 = vsel %vm1316_vm4, %v2798_v23, %v2800_v8  ;;  %v3160_v22 = vsel %vm1316_vm4, %v3157_v31, %v3159_v57 }
 0x2d3   : > { %12012 = vst [vmem:[#allocation16_spill] sm:$0xff] %v10353_v18  ;;  %v2890_v43 = vadd.f32 %v2801_v39, %v9996_v44  ;;  %v2648_v40 = vpop.f32.mrf.mxu0  ;;  %8092 = vmatmul.mubr.msk.bf16.gmra.mxu0 %vm444_vm3, %v10359_v17  ;;  %v3007_v2 = vpop.f32.mrf.mxu1  ;;  %8170 = vmatmul.mubr.msk.bf16.gmra.mxu1 %vm444_vm3, %v10364_v63  ;;  %v10383_v18 = vld [vmem:[%s8905_s27 + $0x68] sm:$0xff]  }
 0x2d4   : > { %v2802_v29 = vrot.slane %v2648_v40, 1  ;;  %8095 = vmatprep.mubr.msk.bf16.mxu0 %vm8841_vm2, %v11969_v19  ;;  %v3161_v44 = vrot.slane %v3007_v2, 1  ;;  %8173 = vmatprep.mubr.msk.bf16.mxu1 %vm8841_vm2, %v11969_v19 }
 0x2d5   : > { %v10370_v23 = vadd.f32 %v3160_v22, %v2890_v43  ;;  %v7917_v31 = vpop.f32.mrf.mxu0  ;;  %v7995_v41 = vpop.f32.mrf.mxu1 }
 0x2d6   : > { %v2803_v15 = vsel %vm1316_vm4, %v2800_v8, %v2802_v29  ;;  %v3162_v34 = vsel %vm1316_vm4, %v3159_v57, %v3161_v44 }
 0x2d7   : > { %12013 = vst [vmem:[#allocation17_spill] sm:$0xff] %v10370_v23  ;;  %v2891_v12 = vadd.f32 %v2803_v15, %v9999_v56  ;;  %v2651_v21 = vpop.f32.mrf.mxu0  ;;  %v3010_v62 = vpop.f32.mrf.mxu1  ;;  %v10388_v15 = vld [vmem:[%s8905_s27 + $0xfc] sm:$0xff]  }
 0x2d8   : > { %v2804_v39 = vrot.slane %v2651_v21, 1  ;;  %v3163_v43 = vrot.slane %v3010_v62, 1 }
 0x2d9   : > { %v10377_v40 = vadd.f32 %v3162_v34, %v2891_v12  ;;  %v7918_v22 = vpop.f32.mrf.mxu0  ;;  %v7996_v31 = vpop.f32.mrf.mxu1 }
 0x2da   : > { %v2805_v2 = vsel %vm1316_vm4, %v2802_v29, %v2804_v39  ;;  %v3164_v8 = vsel %vm1316_vm4, %v3161_v44, %v3163_v43 }
 0x2db   : > { %12014 = vst [vmem:[#allocation18_spill] sm:$0xff] %v10377_v40  ;;  %v2892_v23 = vadd.f32 %v2805_v2, %v10010_v48  ;;  %v2656_v41 = vpop.f32.mrf.mxu0  ;;  %8096 = vmatmul.mubr.msk.bf16.gmra.mxu0 %vm444_vm3, %v10383_v18  ;;  %v3015_v57 = vpop.f32.mrf.mxu1  ;;  %8174 = vmatmul.mubr.msk.bf16.gmra.mxu1 %vm444_vm3, %v10388_v15  ;;  %v10407_v40 = vld [vmem:[%s8905_s27 + $0x70] sm:$0xff]  }
 0x2dc   : > { %v2806_v56 = vrot.slane %v2656_v41, 1  ;;  %8099 = vmatprep.mubr.msk.bf16.mxu0 %vm8841_vm2, %v11969_v19  ;;  %v3165_v48 = vrot.slane %v3015_v57, 1  ;;  %8177 = vmatprep.mubr.msk.bf16.mxu1 %vm8841_vm2, %v11969_v19 }
 0x2dd   : > { %v10394_v29 = vadd.f32 %v3164_v8, %v2892_v23  ;;  %v7921_v44 = vpop.f32.mrf.mxu0  ;;  %v7999_v34 = vpop.f32.mrf.mxu1 }
 0x2de   : > { %v2807_v12 = vsel %vm1316_vm4, %v2804_v39, %v2806_v56  ;;  %v3166_v62 = vsel %vm1316_vm4, %v3163_v43, %v3165_v48 }
 0x2df   : > { %12015 = vst [vmem:[#allocation19_spill] sm:$0xff] %v10394_v29  ;;  %v2893_v21 = vadd.f32 %v2807_v12, %v10013_v3  ;;  %v2659_v22 = vpop.f32.mrf.mxu0  ;;  %v3018_v31 = vpop.f32.mrf.mxu1  ;;  %v10412_v12 = vld [vmem:[%s8905_s27 + $0x104] sm:$0xff]  }
 0x2e0   : > { %v2808_v2 = vrot.slane %v2659_v22, 1  ;;  %v3167_v23 = vrot.slane %v3018_v31, 1 }
 0x2e1   : > { %v10401_v41 = vadd.f32 %v3166_v62, %v2893_v21  ;;  %v7922_v8 = vpop.f32.mrf.mxu0  ;;  %v8000_v44 = vpop.f32.mrf.mxu1 }
 0x2e2   : > { %v2809_v57 = vsel %vm1316_vm4, %v2806_v56, %v2808_v2  ;;  %v3168_v39 = vsel %vm1316_vm4, %v3165_v48, %v3167_v23 }
 0x2e3   : > { %12016 = vst [vmem:[#allocation20_spill] sm:$0xff] %v10401_v41  ;;  %v2894_v29 = vadd.f32 %v2809_v57, %v10024_v36  ;;  %v2664_v34 = vpop.f32.mrf.mxu0  ;;  %8100 = vmatmul.mubr.msk.bf16.gmra.mxu0 %vm444_vm3, %v10407_v40  ;;  %v3023_v43 = vpop.f32.mrf.mxu1  ;;  %8178 = vmatmul.mubr.msk.bf16.gmra.mxu1 %vm444_vm3, %v10412_v12  ;;  %v10431_v41 = vld [vmem:[%s8905_s27 + $0x78] sm:$0xff]  }
 0x2e4   : > { %v2810_v3 = vrot.slane %v2664_v34, 1  ;;  %8103 = vmatprep.mubr.msk.bf16.mxu0 %vm8841_vm2, %v11969_v19  ;;  %v3169_v36 = vrot.slane %v3023_v43, 1  ;;  %8181 = vmatprep.mubr.msk.bf16.mxu1 %vm8841_vm2, %v11969_v19 }
 0x2e5   : > { %v10418_v56 = vadd.f32 %v3168_v39, %v2894_v29  ;;  %v7925_v48 = vpop.f32.mrf.mxu0  ;;  %v8003_v62 = vpop.f32.mrf.mxu1 }
 0x2e6   : > { %v2811_v21 = vsel %vm1316_vm4, %v2808_v2, %v2810_v3  ;;  %v3170_v31 = vsel %vm1316_vm4, %v3167_v23, %v3169_v36 }
 0x2e7   : > { %12017 = vst [vmem:[#allocation21_spill] sm:$0xff] %v10418_v56  ;;  %v2895_v22 = vadd.f32 %v2811_v21, %v10027_v14  ;;  %v2667_v8 = vpop.f32.mrf.mxu0  ;;  %v3026_v44 = vpop.f32.mrf.mxu1  ;;  %v10436_v21 = vld [vmem:[%s8905_s27 + $0x10c] sm:$0xff]  }
 0x2e8   : > { %v2812_v57 = vrot.slane %v2667_v8, 1  ;;  %v3171_v29 = vrot.slane %v3026_v44, 1 }
 0x2e9   : > { %v10425_v34 = vadd.f32 %v3170_v31, %v2895_v22  ;;  %v7926_v39 = vpop.f32.mrf.mxu0  ;;  %v8004_v48 = vpop.f32.mrf.mxu1 }
 0x2ea   : > { %v2813_v43 = vsel %vm1316_vm4, %v2810_v3, %v2812_v57  ;;  %v3172_v2 = vsel %vm1316_vm4, %v3169_v36, %v3171_v29 }
 0x2eb   : > { %12018 = vst [vmem:[#allocation22_spill] sm:$0xff] %v10425_v34  ;;  %v2896_v56 = vadd.f32 %v2813_v43, %v10038_v6  ;;  %v2672_v62 = vpop.f32.mrf.mxu0  ;;  %8104 = vmatmul.mubr.msk.bf16.gmra.mxu0 %vm444_vm3, %v10431_v41  ;;  %v3031_v23 = vpop.f32.mrf.mxu1  ;;  %8182 = vmatmul.mubr.msk.bf16.gmra.mxu1 %vm444_vm3, %v10436_v21  ;;  %v10455_v34 = vld [vmem:[%s8905_s27 + $0x80] sm:$0xff]  }
 0x2ec   : > { %v2814_v14 = vrot.slane %v2672_v62, 1  ;;  %8107 = vmatprep.mubr.msk.bf16.mxu0 %vm8841_vm2, %v11969_v19  ;;  %v3173_v6 = vrot.slane %v3031_v23, 1  ;;  %8185 = vmatprep.mubr.msk.bf16.mxu1 %vm8841_vm2, %v11969_v19 }
 0x2ed   : > { %v10442_v3 = vadd.f32 %v3172_v2, %v2896_v56  ;;  %v7929_v36 = vpop.f32.mrf.mxu0  ;;  %v8007_v31 = vpop.f32.mrf.mxu1 }
 0x2ee   : > { %v2815_v22 = vsel %vm1316_vm4, %v2812_v57, %v2814_v14  ;;  %v3174_v44 = vsel %vm1316_vm4, %v3171_v29, %v3173_v6 }
 0x2ef   : > { %12019 = vst [vmem:[#allocation23_spill] sm:$0xff] %v10442_v3  ;;  %v2897_v8 = vadd.f32 %v2815_v22, %v10041_v24  ;;  %v2675_v39 = vpop.f32.mrf.mxu0  ;;  %v3034_v48 = vpop.f32.mrf.mxu1  ;;  %v10460_v22 = vld [vmem:[%s8905_s27 + $0x114] sm:$0xff]  }
 0x2f0   : > { %v2816_v43 = vrot.slane %v2675_v39, 1  ;;  %v3175_v56 = vrot.slane %v3034_v48, 1 }
 0x2f1   : > { %v10449_v62 = vadd.f32 %v3174_v44, %v2897_v8  ;;  %v7930_v2 = vpop.f32.mrf.mxu0  ;;  %v8008_v36 = vpop.f32.mrf.mxu1 }
 0x2f2   : > { %v2817_v23 = vsel %vm1316_vm4, %v2814_v14, %v2816_v43  ;;  %v3176_v57 = vsel %vm1316_vm4, %v3173_v6, %v3175_v56 }
 0x2f3   : > { %12020 = vst [vmem:[#allocation24_spill] sm:$0xff] %v10449_v62  ;;  %v2898_v3 = vadd.f32 %v2817_v23, %v10052_v42  ;;  %v2680_v31 = vpop.f32.mrf.mxu0  ;;  %8108 = vmatmul.mubr.msk.bf16.gmra.mxu0 %vm444_vm3, %v10455_v34  ;;  %v3039_v29 = vpop.f32.mrf.mxu1  ;;  %8186 = vmatmul.mubr.msk.bf16.gmra.mxu1 %vm444_vm3, %v10460_v22  ;;  %v10479_v62 = vld [vmem:[%s8905_s27 + $0x88] sm:$0xff]  }
 0x2f4   : > { %v2818_v24 = vrot.slane %v2680_v31, 1  ;;  %8111 = vmatprep.mubr.msk.bf16.mxu0 %vm8841_vm2, %v11969_v19  ;;  %v3177_v42 = vrot.slane %v3039_v29, 1  ;;  %8189 = vmatprep.mubr.msk.bf16.mxu1 %vm8841_vm2, %v11969_v19 }
 0x2f5   : > { %v10466_v14 = vadd.f32 %v3176_v57, %v2898_v3  ;;  %v7933_v6 = vpop.f32.mrf.mxu0  ;;  %v8011_v44 = vpop.f32.mrf.mxu1 }
 0x2f6   : > { %v2819_v8 = vsel %vm1316_vm4, %v2816_v43, %v2818_v24  ;;  %v3178_v48 = vsel %vm1316_vm4, %v3175_v56, %v3177_v42 }
 0x2f7   : > { %12021 = vst [vmem:[#allocation25_spill] sm:$0xff] %v10466_v14  ;;  %v2899_v39 = vadd.f32 %v2819_v8, %v10055_v54  ;;  %v2683_v2 = vpop.f32.mrf.mxu0  ;;  %v3042_v36 = vpop.f32.mrf.mxu1  ;;  %v10484_v8 = vld [vmem:[%s8905_s27 + $0x11c] sm:$0xff]  }
 0x2f8   : > { %v2820_v23 = vrot.slane %v2683_v2, 1  ;;  %v3179_v3 = vrot.slane %v3042_v36, 1 }
 0x2f9   : > { %v10473_v31 = vadd.f32 %v3178_v48, %v2899_v39  ;;  %v7934_v57 = vpop.f32.mrf.mxu0  ;;  %v8012_v6 = vpop.f32.mrf.mxu1 }
 0x2fa   : > { %v2821_v29 = vsel %vm1316_vm4, %v2818_v24, %v2820_v23  ;;  %v3180_v43 = vsel %vm1316_vm4, %v3177_v42, %v3179_v3 }
 0x2fb   : > { %12022 = vst [vmem:[#allocation26_spill] sm:$0xff] %v10473_v31  ;;  %v2900_v14 = vadd.f32 %v2821_v29, %v10066_v52  ;;  %v2688_v44 = vpop.f32.mrf.mxu0  ;;  %8112 = vmatmul.mubr.msk.bf16.gmra.mxu0 %vm444_vm3, %v10479_v62  ;;  %v3047_v56 = vpop.f32.mrf.mxu1  ;;  %8190 = vmatmul.mubr.msk.bf16.gmra.mxu1 %vm444_vm3, %v10484_v8  ;;  %v10503_v31 = vld [vmem:[%s8905_s27 + $0x90] ss:$0 sps:$4 sm:$0x11]  }
 0x2fc   : > { %v2822_v54 = vrot.slane %v2688_v44, 1  ;;  %8115 = vmatprep.mubr.msk.bf16.mxu0 %vm8841_vm2, %v11969_v19  ;;  %v3181_v52 = vrot.slane %v3047_v56, 1  ;;  %8193 = vmatprep.mubr.msk.bf16.mxu1 %vm8841_vm2, %v11969_v19 }
 0x2fd   : > { %v10490_v24 = vadd.f32 %v3180_v43, %v2900_v14  ;;  %v7937_v42 = vpop.f32.mrf.mxu0  ;;  %v8015_v48 = vpop.f32.mrf.mxu1 }
 0x2fe   : > { %v2823_v39 = vsel %vm1316_vm4, %v2820_v23, %v2822_v54  ;;  %v3182_v36 = vsel %vm1316_vm4, %v3179_v3, %v3181_v52 }
 0x2ff   : > { %12023 = vst [vmem:[#allocation27_spill] sm:$0xff] %v10490_v24  ;;  %v2901_v2 = vadd.f32 %v2823_v39, %v10069_v0  ;;  %v2691_v57 = vpop.f32.mrf.mxu0  ;;  %v3050_v6 = vpop.f32.mrf.mxu1  ;;  %v10508_v39 = vld [vmem:[%s8905_s27 + $0x124] ss:$0 sps:$4 sm:$0x11]  }
 0x300   : > { %v2824_v29 = vrot.slane %v2691_v57, 1  ;;  %v3183_v14 = vrot.slane %v3050_v6, 1  ;;  %12025 = vst [vmem:[#allocation29_spill] sm:$0xff] %v10508_v39  ;;  %v6966_v6 = vld [vmem:[%s11877_s1 + $0x1a] sm:$0x3] }
 0x301   : > { %v10497_v44 = vadd.f32 %v3182_v36, %v2901_v2  ;;  %v7938_v43 = vpop.f32.mrf.mxu0  ;;  %v8016_v42 = vpop.f32.mrf.mxu1  ;;  %v6946_v2 = vld [vmem:[%s11877_s1 + $0x18] sm:$0x3] }
 0x302   : > { %v2825_v56 = vsel %vm1316_vm4, %v2822_v54, %v2824_v29  ;;  %v3184_v23 = vsel %vm1316_vm4, %v3181_v52, %v3183_v14 }
 0x303   : > { %12024 = vst [vmem:[#allocation28_spill] sm:$0xff] %v10497_v44  ;;  %v2902_v24 = vadd.f32 %v2825_v56, %v10080_v61  ;;  %v2696_v48 = vpop.f32.mrf.mxu0  ;;  %8116 = vmatmul.mubr.msk.bf16.gmra.mxu0 %vm444_vm3, %v10503_v31  ;;  %v3055_v3 = vpop.f32.mrf.mxu1  ;;  %8194 = vmatmul.mubr.msk.bf16.gmra.mxu1 %vm444_vm3, %v10508_v39 }
 0x304   : > { %v2826_v0 = vrot.slane %v2696_v48, 1  ;;  %8199 = vmatprep.mubr.msk.bf16.mxu0 %vm8841_vm2, %v11969_v19  ;;  %v3185_v61 = vrot.slane %v3055_v3, 1  ;;  %8277 = vmatprep.mubr.msk.bf16.mxu1 %vm8841_vm2, %v11969_v19  ;;  %v4711_v48 = vand.u32 %v6946_v2, %v8883_v5 }
 0x305   : > { %v10514_v54 = vadd.f32 %v3184_v23, %v2902_v24  ;;  %v7941_v52 = vpop.f32.mrf.mxu0  ;;  %v8019_v57 = vpop.f32.mrf.mxu1 }
 0x306   : > { %v2827_v36 = vsel %vm1316_vm4, %v2824_v29, %v2826_v0  ;;  %v3186_v24 = vsel %vm1316_vm4, %v3183_v14, %v3185_v61  ;;  %v5070_v29 = vand.u32 %v6966_v6, %v8883_v5 }
 0x307   : > { %12026 = vst [vmem:[#allocation30_spill] sm:$0xff] %v10514_v54  ;;  %v2903_v43 = vadd.f32 %v2827_v36, %v10083_v28  ;;  %v2699_v56 = vpop.f32.mrf.mxu0  ;;  %v3058_v23 = vpop.f32.mrf.mxu1 }
 0x308   : > { %v2828_v42 = vrot.slane %v2699_v56, 1  ;;  %v3187_v52 = vrot.slane %v3058_v23, 1 }
 0x309   : > { %v10528_v3 = vadd.f32 %v3186_v24, %v2903_v43  ;;  %v7942_v54 = vpop.f32.mrf.mxu0  ;;  %v8020_v44 = vpop.f32.mrf.mxu1 }
 0x30a   : > { %v2829_v57 = vsel %vm1316_vm4, %v2826_v0, %v2828_v42  ;;  %v3188_v28 = vsel %vm1316_vm4, %v3185_v61, %v3187_v52 }
 0x30b   : > { %v2904_v39 = vadd.f32 %v2829_v57, %v10097_v49  ;;  %v2704_v36 = vpop.f32.mrf.mxu0  ;;  %8200 = vmatmul.mubr.msk.bf16.vlgmr.msra.gmra.mxu0 %vm444_vm3, %v10108_v33  ;;  %v3063_v56 = vpop.f32.mrf.mxu1  ;;  %8278 = vmatmul.mubr.msk.bf16.vlgmr.msra.gmra.mxu1 %vm444_vm3, %v10114_v26 }
 0x30c   : > { %v2830_v14 = vrot.slane %v2704_v36, 1  ;;  %8354 = vmatpush3.bf16.msra.mxu0 %v4711_v48  ;;  %v3189_v2 = vrot.slane %v3063_v56, 1  ;;  %8432 = vmatpush3.bf16.msra.mxu1 %v5070_v29 }
 0x30d   : > { %v10538_v54 = vadd.f32 %v3188_v28, %v2904_v39  ;;  %v7945_v6 = vpop.f32.mrf.mxu0  ;;  %8203 = vmatprep.mubr.msk.bf16.mxu0 %vm8841_vm2, %v11969_v19  ;;  %v8023_v44 = vpop.f32.mrf.mxu1  ;;  %8281 = vmatprep.mubr.msk.bf16.mxu1 %vm8841_vm2, %v11969_v19 }
 0x30e   : > { %v2831_v49 = vsel %vm1316_vm4, %v2828_v42, %v2830_v14  ;;  %8509 = vmatprep.subr.bf16.mxu0 %v11969_v19  ;;  %v3190_v26 = vsel %vm1316_vm4, %v3187_v52, %v3189_v2  ;;  %8587 = vmatprep.subr.bf16.mxu1 %v11969_v19 }
 0x30f   : > { %v2905_v33 = vadd.f32 %v2831_v49, %v10105_v51  ;;  %v2707_v0 = vpop.f32.mrf.mxu0  ;;  %v3066_v61 = vpop.f32.mrf.mxu1 }
 0x310   : > { %v2832_v39 = vrot.slane %v2707_v0, 1  ;;  %v3191_v24 = vrot.slane %v3066_v61, 1 }
 0x311   : > { %v10549_v43 = vadd.f32 %v3190_v26, %v2905_v33  ;;  %v7946_v23 = vpop.f32.mrf.mxu0  ;;  %v8024_v48 = vpop.f32.mrf.mxu1 }
 0x312   : > { %v2833_v42 = vsel %vm1316_vm4, %v2830_v14, %v2832_v39  ;;  %v3192_v57 = vsel %vm1316_vm4, %v3189_v2, %v3191_v24 }
 0x313   : > { %v2906_v29 = vadd.f32 %v2833_v42, %v10120_v58  ;;  %v2712_v28 = vpop.f32.mrf.mxu0  ;;  %8204 = vmatmul.mubr.msk.bf16.gmra.mxu0 %vm444_vm3, %v10130_v11  ;;  %v3071_v52 = vpop.f32.mrf.mxu1  ;;  %8282 = vmatmul.mubr.msk.bf16.gmra.mxu1 %vm444_vm3, %v10136_v27 }
 0x314   : > { %v2834_v51 = vrot.slane %v2712_v28, 1  ;;  %8207 = vmatprep.mubr.msk.bf16.mxu0 %vm8841_vm2, %v11969_v19  ;;  %v3193_v14 = vrot.slane %v3071_v52, 1  ;;  %8285 = vmatprep.mubr.msk.bf16.mxu1 %vm8841_vm2, %v11969_v19 }
 0x315   : > { %v10560_v36 = vadd.f32 %v3192_v57, %v2906_v29  ;;  %v7949_v56 = vpop.f32.mrf.mxu0  ;;  %v8027_v2 = vpop.f32.mrf.mxu1 }
 0x316   : > { %v2835_v58 = vsel %vm1316_vm4, %v2832_v39, %v2834_v51  ;;  %v3194_v6 = vsel %vm1316_vm4, %v3191_v24, %v3193_v14 }
 0x317   : > { %v2907_v11 = vadd.f32 %v2835_v58, %v10127_v50  ;;  %v2715_v49 = vpop.f32.mrf.mxu0  ;;  %v3074_v27 = vpop.f32.mrf.mxu1 }
 0x318   : > { %v2836_v44 = vrot.slane %v2715_v49, 1  ;;  %v3195_v26 = vrot.slane %v3074_v27, 1 }
 0x319   : > { %v10567_v33 = vadd.f32 %v3194_v6, %v2907_v11  ;;  %v7950_v0 = vpop.f32.mrf.mxu0  ;;  %v8028_v23 = vpop.f32.mrf.mxu1 }
 0x31a   : > { %v2837_v61 = vsel %vm1316_vm4, %v2834_v51, %v2836_v44  ;;  %v3196_v48 = vsel %vm1316_vm4, %v3193_v14, %v3195_v26 }
 0x31b   : > { %v2908_v42 = vadd.f32 %v2837_v61, %v10144_v20  ;;  %v2720_v39 = vpop.f32.mrf.mxu0  ;;  %8208 = vmatmul.mubr.msk.bf16.gmra.mxu0 %vm444_vm3, %v10150_v47  ;;  %v3079_v24 = vpop.f32.mrf.mxu1  ;;  %8286 = vmatmul.mubr.msk.bf16.gmra.mxu1 %vm444_vm3, %v10156_v4 }
 0x31c   : > { %v2838_v50 = vrot.slane %v2720_v39, 1  ;;  %8211 = vmatprep.mubr.msk.bf16.mxu0 %vm8841_vm2, %v11969_v19  ;;  %v3197_v57 = vrot.slane %v3079_v24, 1  ;;  %8289 = vmatprep.mubr.msk.bf16.mxu1 %vm8841_vm2, %v11969_v19 }
 0x31d   : > { %v10578_v29 = vadd.f32 %v3196_v48, %v2908_v42  ;;  %v7953_v28 = vpop.f32.mrf.mxu0  ;;  %v8031_v51 = vpop.f32.mrf.mxu1 }
 0x31e   : > { %v2839_v20 = vsel %vm1316_vm4, %v2836_v44, %v2838_v50  ;;  %v3198_v52 = vsel %vm1316_vm4, %v3195_v26, %v3197_v57 }
 0x31f   : > { %v2909_v47 = vadd.f32 %v2839_v20, %v10147_v55  ;;  %v2723_v14 = vpop.f32.mrf.mxu0  ;;  %v3082_v4 = vpop.f32.mrf.mxu1 }
 0x320   : > { %v2840_v56 = vrot.slane %v2723_v14, 1  ;;  %v3199_v2 = vrot.slane %v3082_v4, 1 }
 0x321   : > { %v10585_v58 = vadd.f32 %v3198_v52, %v2909_v47  ;;  %v7954_v11 = vpop.f32.mrf.mxu0  ;;  %v8032_v49 = vpop.f32.mrf.mxu1 }
 0x322   : > { %v2841_v6 = vsel %vm1316_vm4, %v2838_v50, %v2840_v56  ;;  %v3200_v0 = vsel %vm1316_vm4, %v3197_v57, %v3199_v2  ;;  %v12027_v11 = vld [vmem:[#allocation2_spill] sm:$0xff] }
 0x323   : > { %v2910_v27 = vadd.f32 %v2841_v6, %v10164_v7  ;;  %v2728_v44 = vpop.f32.mrf.mxu0  ;;  %8212 = vmatmul.mubr.msk.bf16.gmra.mxu0 %vm444_vm3, %v10170_v16  ;;  %v3087_v26 = vpop.f32.mrf.mxu1  ;;  %8290 = vmatmul.mubr.msk.bf16.gmra.mxu1 %vm444_vm3, %v10175_v38 }
 0x324   : > { %v2842_v55 = vrot.slane %v2728_v44, 1  ;;  %8215 = vmatprep.mubr.msk.bf16.mxu0 %vm8841_vm2, %v11969_v19  ;;  %v3201_v23 = vrot.slane %v3087_v26, 1  ;;  %8293 = vmatprep.mubr.msk.bf16.mxu1 %vm8841_vm2, %v11969_v19  ;;  %v12028_v26 = vld [vmem:[#allocation3_spill] sm:$0xff] }
 0x325   : > { %v10596_v61 = vadd.f32 %v3200_v0, %v2910_v27  ;;  %v7957_v42 = vpop.f32.mrf.mxu0  ;;  %v8035_v48 = vpop.f32.mrf.mxu1 }
 0x326   : > { %v2843_v7 = vsel %vm1316_vm4, %v2840_v56, %v2842_v55  ;;  %v3202_v39 = vsel %vm1316_vm4, %v3199_v2, %v3201_v23  ;;  %v12029_v23 = vld [vmem:[#allocation4_spill] sm:$0xff] }
 0x327   : > { %v2911_v16 = vadd.f32 %v2843_v7, %v10167_v46  ;;  %v2731_v50 = vpop.f32.mrf.mxu0  ;;  %v3090_v24 = vpop.f32.mrf.mxu1 }
 0x329   : > { %v10603_v38 = vadd.f32 %v3202_v39, %v2911_v16  ;;  %v7958_v57 = vpop.f32.mrf.mxu0  ;;  %v8036_v28 = vpop.f32.mrf.mxu1 }
 0x32b   : > { %v2735_v20 = vpop.f32.mrf.mxu0  ;;  %8216 = vmatmul.mubr.msk.bf16.gmra.mxu0 %vm444_vm3, %v10184_v9  ;;  %v3094_v51 = vpop.f32.mrf.mxu1  ;;  %8294 = vmatmul.mubr.msk.bf16.gmra.mxu1 %vm444_vm3, %v10189_v10 }
 0x32c   : > { %8219 = vmatprep.mubr.msk.bf16.mxu0 %vm8841_vm2, %v11969_v19  ;;  %8297 = vmatprep.mubr.msk.bf16.mxu1 %vm8841_vm2, %v11969_v19 }
 0x32d   : > { %v7961_v46 = vpop.f32.mrf.mxu0  ;;  %v8039_v47 = vpop.f32.mrf.mxu1 }
 0x32e   : > { %v12030_v46 = vld [vmem:[#allocation5_spill] sm:$0xff] }
 0x32f   : > { %v2737_v52 = vpop.f32.mrf.mxu0  ;;  %v3096_v14 = vpop.f32.mrf.mxu1 }
 0x331   : > { %v7962_v56 = vpop.f32.mrf.mxu0  ;;  %v8040_v4 = vpop.f32.mrf.mxu1 }
 0x333   : > { %v3310_v2 = vpop.f32.mrf.mxu0  ;;  %8220 = vmatmul.mubr.msk.bf16.gmra.mxu0 %vm444_vm3, %v10198_v37  ;;  %v3669_v9 = vpop.f32.mrf.mxu1  ;;  %8298 = vmatmul.mubr.msk.bf16.gmra.mxu1 %vm444_vm3, %v12027_v11 }
 0x334   : > { %8223 = vmatprep.mubr.msk.bf16.mxu0 %vm8841_vm2, %v11969_v19  ;;  %8301 = vmatprep.mubr.msk.bf16.mxu1 %vm8841_vm2, %v11969_v19 }
 0x335   : > { %v8045_v10 = vpop.f32.mrf.mxu0  ;;  %v8123_v6 = vpop.f32.mrf.mxu1 }
 0x337   : > { %v3312_v49 = vpop.f32.mrf.mxu0  ;;  %v3671_v27 = vpop.f32.mrf.mxu1 }
 0x338   : > { %v12031_v49 = vld [vmem:[#allocation6_spill] sm:$0xff] }
 0x339   : > { %v8046_v0 = vpop.f32.mrf.mxu0  ;;  %v8124_v44 = vpop.f32.mrf.mxu1 }
 0x33b   : > { %v3316_v55 = vpop.f32.mrf.mxu0  ;;  %8224 = vmatmul.mubr.msk.bf16.gmra.mxu0 %vm444_vm3, %v12028_v26  ;;  %v3675_v37 = vpop.f32.mrf.mxu1  ;;  %8302 = vmatmul.mubr.msk.bf16.gmra.mxu1 %vm444_vm3, %v12029_v23 }
 0x33c   : > { %8227 = vmatprep.mubr.msk.bf16.mxu0 %vm8841_vm2, %v11969_v19  ;;  %8305 = vmatprep.mubr.msk.bf16.mxu1 %vm8841_vm2, %v11969_v19  ;;  %v3493_v16 = vrot.slane %v3316_v55, 1  ;;  %v3852_v24 = vrot.slane %v3675_v37, 1 }
 0x33d   : > { %v8049_v42 = vpop.f32.mrf.mxu0  ;;  %v8127_v7 = vpop.f32.mrf.mxu1 }
 0x33e   : > { %v12032_v7 = vld [vmem:[#allocation7_spill] sm:$0xff] }
 0x33f   : > { %v3319_v48 = vpop.f32.mrf.mxu0  ;;  %v3678_v50 = vpop.f32.mrf.mxu1 }
 0x340   : > { %v3494_v39 = vrot.slane %v3319_v48, 1  ;;  %v3853_v57 = vrot.slane %v3678_v50, 1 }
 0x341   : > { %v8050_v28 = vpop.f32.mrf.mxu0  ;;  %v8128_v51 = vpop.f32.mrf.mxu1 }
 0x342   : > { %v3495_v20 = vsel %vm1316_vm4, %v3493_v16, %v3494_v39  ;;  %v3854_v52 = vsel %vm1316_vm4, %v3852_v24, %v3853_v57 }
 0x343   : > { %v3596_v47 = vadd.f32 %v3495_v20, %v12030_v46  ;;  %v3324_v14 = vpop.f32.mrf.mxu0  ;;  %8228 = vmatmul.mubr.msk.bf16.gmra.mxu0 %vm444_vm3, %v10239_v35  ;;  %v3683_v4 = vpop.f32.mrf.mxu1  ;;  %8306 = vmatmul.mubr.msk.bf16.gmra.mxu1 %vm444_vm3, %v10244_v45 }
 0x344   : > { %v3496_v56 = vrot.slane %v3324_v14, 1  ;;  %8231 = vmatprep.mubr.msk.bf16.mxu0 %vm8841_vm2, %v11969_v19  ;;  %v3855_v9 = vrot.slane %v3683_v4, 1  ;;  %8309 = vmatprep.mubr.msk.bf16.mxu1 %vm8841_vm2, %v11969_v19 }
 0x345   : > { %v10638_v2 = vadd.f32 %v3854_v52, %v3596_v47  ;;  %v8053_v11 = vpop.f32.mrf.mxu0  ;;  %v8131_v6 = vpop.f32.mrf.mxu1  ;;  %v12033_v47 = vld [vmem:[#allocation8_spill] sm:$0xff] }
 0x346   : > { %v3497_v10 = vsel %vm1316_vm4, %v3494_v39, %v3496_v56  ;;  %v3856_v27 = vsel %vm1316_vm4, %v3853_v57, %v3855_v9 }
 0x347   : > { %v3597_v35 = vadd.f32 %v3497_v10, %v12031_v49  ;;  %v3327_v0 = vpop.f32.mrf.mxu0  ;;  %v3686_v45 = vpop.f32.mrf.mxu1  ;;  %v12034_v49 = vld [vmem:[#allocation9_spill] sm:$0xff] }
 0x348   : > { %v3498_v44 = vrot.slane %v3327_v0, 1  ;;  %v3857_v26 = vrot.slane %v3686_v45, 1 }
 0x349   : > { %v10645_v55 = vadd.f32 %v3856_v27, %v3597_v35  ;;  %v8054_v37 = vpop.f32.mrf.mxu0  ;;  %v8132_v42 = vpop.f32.mrf.mxu1 }
 0x34a   : > { %v3499_v23 = vsel %vm1316_vm4, %v3496_v56, %v3498_v44  ;;  %v3858_v16 = vsel %vm1316_vm4, %v3855_v9, %v3857_v26 }
 0x34b   : > { %v3598_v48 = vadd.f32 %v3499_v23, %v12032_v7  ;;  %v3332_v39 = vpop.f32.mrf.mxu0  ;;  %8232 = vmatmul.mubr.msk.bf16.gmra.mxu0 %vm444_vm3, %v10263_v32  ;;  %v3691_v24 = vpop.f32.mrf.mxu1  ;;  %8310 = vmatmul.mubr.msk.bf16.gmra.mxu1 %vm444_vm3, %v10268_v30 }
 0x34c   : > { %v3500_v50 = vrot.slane %v3332_v39, 1  ;;  %8235 = vmatprep.mubr.msk.bf16.mxu0 %vm8841_vm2, %v11969_v19  ;;  %v3859_v28 = vrot.slane %v3691_v24, 1  ;;  %8313 = vmatprep.mubr.msk.bf16.mxu1 %vm8841_vm2, %v11969_v19 }
 0x34d   : > { %v10656_v57 = vadd.f32 %v3858_v16, %v3598_v48  ;;  %v8057_v20 = vpop.f32.mrf.mxu0  ;;  %v8135_v46 = vpop.f32.mrf.mxu1  ;;  %v12035_v48 = vld [vmem:[#allocation10_spill] sm:$0xff] }
 0x34e   : > { %v3501_v51 = vsel %vm1316_vm4, %v3498_v44, %v3500_v50  ;;  %v3860_v52 = vsel %vm1316_vm4, %v3857_v26, %v3859_v28 }
 0x34f   : > { %v3599_v32 = vadd.f32 %v3501_v51, %v12033_v47  ;;  %v3335_v14 = vpop.f32.mrf.mxu0  ;;  %v3694_v30 = vpop.f32.mrf.mxu1  ;;  %v12036_v47 = vld [vmem:[#allocation11_spill] sm:$0xff] }
 0x350   : > { %v3502_v56 = vrot.slane %v3335_v14, 1  ;;  %v3861_v9 = vrot.slane %v3694_v30, 1 }
 0x351   : > { %v10663_v4 = vadd.f32 %v3860_v52, %v3599_v32  ;;  %v8058_v11 = vpop.f32.mrf.mxu0  ;;  %v8136_v6 = vpop.f32.mrf.mxu1 }
 0x352   : > { %v3503_v10 = vsel %vm1316_vm4, %v3500_v50, %v3502_v56  ;;  %v3862_v27 = vsel %vm1316_vm4, %v3859_v28, %v3861_v9 }
 0x353   : > { %v3600_v35 = vadd.f32 %v3503_v10, %v12034_v49  ;;  %v3340_v0 = vpop.f32.mrf.mxu0  ;;  %8236 = vmatmul.mubr.msk.bf16.gmra.mxu0 %vm444_vm3, %v10287_v25  ;;  %v3699_v45 = vpop.f32.mrf.mxu1  ;;  %8314 = vmatmul.mubr.msk.bf16.gmra.mxu1 %vm444_vm3, %v10292_v13 }
 0x354   : > { %v3504_v44 = vrot.slane %v3340_v0, 1  ;;  %8239 = vmatprep.mubr.msk.bf16.mxu0 %vm8841_vm2, %v11969_v19  ;;  %v3863_v37 = vrot.slane %v3699_v45, 1  ;;  %8317 = vmatprep.mubr.msk.bf16.mxu1 %vm8841_vm2, %v11969_v19 }
 0x355   : > { %v10674_v26 = vadd.f32 %v3862_v27, %v3600_v35  ;;  %v8061_v23 = vpop.f32.mrf.mxu0  ;;  %v8139_v7 = vpop.f32.mrf.mxu1  ;;  %v12037_v35 = vld [vmem:[#allocation12_spill] sm:$0xff] }
 0x356   : > { %v3505_v42 = vsel %vm1316_vm4, %v3502_v56, %v3504_v44  ;;  %v3864_v16 = vsel %vm1316_vm4, %v3861_v9, %v3863_v37 }
 0x357   : > { %v3601_v25 = vadd.f32 %v3505_v42, %v12035_v48  ;;  %v3343_v39 = vpop.f32.mrf.mxu0  ;;  %v3702_v13 = vpop.f32.mrf.mxu1  ;;  %v12038_v48 = vld [vmem:[#allocation13_spill] sm:$0xff] }
 0x358   : > { %v3506_v50 = vrot.slane %v3343_v39, 1  ;;  %v3865_v28 = vrot.slane %v3702_v13, 1 }
 0x359   : > { %v10681_v24 = vadd.f32 %v3864_v16, %v3601_v25  ;;  %v8062_v20 = vpop.f32.mrf.mxu0  ;;  %v8140_v46 = vpop.f32.mrf.mxu1 }
 0x35a   : > { %v3507_v51 = vsel %vm1316_vm4, %v3504_v44, %v3506_v50  ;;  %v3866_v52 = vsel %vm1316_vm4, %v3863_v37, %v3865_v28 }
 0x35b   : > { %v3602_v32 = vadd.f32 %v3507_v51, %v12036_v47  ;;  %v3348_v14 = vpop.f32.mrf.mxu0  ;;  %8240 = vmatmul.mubr.msk.bf16.gmra.mxu0 %vm444_vm3, %v10311_v60  ;;  %v3707_v30 = vpop.f32.mrf.mxu1  ;;  %8318 = vmatmul.mubr.msk.bf16.gmra.mxu1 %vm444_vm3, %v10316_v53 }
 0x35c   : > { %v3508_v56 = vrot.slane %v3348_v14, 1  ;;  %8243 = vmatprep.mubr.msk.bf16.mxu0 %vm8841_vm2, %v11969_v19  ;;  %v3867_v11 = vrot.slane %v3707_v30, 1  ;;  %8321 = vmatprep.mubr.msk.bf16.mxu1 %vm8841_vm2, %v11969_v19 }
 0x35d   : > { %v10692_v9 = vadd.f32 %v3866_v52, %v3602_v32  ;;  %v8065_v10 = vpop.f32.mrf.mxu0  ;;  %v8143_v49 = vpop.f32.mrf.mxu1  ;;  %v12039_v32 = vld [vmem:[#allocation14_spill] sm:$0xff] }
 0x35e   : > { %v3509_v6 = vsel %vm1316_vm4, %v3506_v50, %v3508_v56  ;;  %v3868_v27 = vsel %vm1316_vm4, %v3865_v28, %v3867_v11 }
 0x35f   : > { %v3603_v60 = vadd.f32 %v3509_v6, %v12037_v35  ;;  %v3351_v0 = vpop.f32.mrf.mxu0  ;;  %v3710_v53 = vpop.f32.mrf.mxu1  ;;  %v12040_v35 = vld [vmem:[#allocation15_spill] sm:$0xff] }
 0x360   : > { %v3510_v44 = vrot.slane %v3351_v0, 1  ;;  %v3869_v37 = vrot.slane %v3710_v53, 1 }
 0x361   : > { %v10699_v45 = vadd.f32 %v3868_v27, %v3603_v60  ;;  %v8066_v23 = vpop.f32.mrf.mxu0  ;;  %v8144_v7 = vpop.f32.mrf.mxu1 }
 0x362   : > { %v3511_v42 = vsel %vm1316_vm4, %v3508_v56, %v3510_v44  ;;  %v3870_v16 = vsel %vm1316_vm4, %v3867_v11, %v3869_v37 }
 0x363   : > { %v3604_v25 = vadd.f32 %v3511_v42, %v12038_v48  ;;  %v3356_v39 = vpop.f32.mrf.mxu0  ;;  %8244 = vmatmul.mubr.msk.bf16.gmra.mxu0 %vm444_vm3, %v10335_v59  ;;  %v3715_v13 = vpop.f32.mrf.mxu1  ;;  %8322 = vmatmul.mubr.msk.bf16.gmra.mxu1 %vm444_vm3, %v10340_v1 }
 0x364   : > { %v3512_v50 = vrot.slane %v3356_v39, 1  ;;  %8247 = vmatprep.mubr.msk.bf16.mxu0 %vm8841_vm2, %v11969_v19  ;;  %v3871_v20 = vrot.slane %v3715_v13, 1  ;;  %8325 = vmatprep.mubr.msk.bf16.mxu1 %vm8841_vm2, %v11969_v19 }
 0x365   : > { %v10710_v28 = vadd.f32 %v3870_v16, %v3604_v25  ;;  %v8069_v51 = vpop.f32.mrf.mxu0  ;;  %v8147_v47 = vpop.f32.mrf.mxu1  ;;  %v12041_v25 = vld [vmem:[#allocation16_spill] sm:$0xff] }
 0x366   : > { %v3513_v46 = vsel %vm1316_vm4, %v3510_v44, %v3512_v50  ;;  %v3872_v52 = vsel %vm1316_vm4, %v3869_v37, %v3871_v20 }
 0x367   : > { %v3605_v59 = vadd.f32 %v3513_v46, %v12039_v32  ;;  %v3359_v14 = vpop.f32.mrf.mxu0  ;;  %v3718_v1 = vpop.f32.mrf.mxu1  ;;  %v12042_v32 = vld [vmem:[#allocation17_spill] sm:$0xff] }
 0x368   : > { %v3514_v56 = vrot.slane %v3359_v14, 1  ;;  %v3873_v11 = vrot.slane %v3718_v1, 1 }
 0x369   : > { %v10717_v30 = vadd.f32 %v3872_v52, %v3605_v59  ;;  %v8070_v10 = vpop.f32.mrf.mxu0  ;;  %v8148_v49 = vpop.f32.mrf.mxu1 }
 0x36a   : > { %v3515_v6 = vsel %vm1316_vm4, %v3512_v50, %v3514_v56  ;;  %v3874_v27 = vsel %vm1316_vm4, %v3871_v20, %v3873_v11 }
 0x36b   : > { %v3606_v60 = vadd.f32 %v3515_v6, %v12040_v35  ;;  %v3364_v0 = vpop.f32.mrf.mxu0  ;;  %8248 = vmatmul.mubr.msk.bf16.gmra.mxu0 %vm444_vm3, %v10359_v17  ;;  %v3723_v53 = vpop.f32.mrf.mxu1  ;;  %8326 = vmatmul.mubr.msk.bf16.gmra.mxu1 %vm444_vm3, %v10364_v63 }
 0x36c   : > { %v3516_v44 = vrot.slane %v3364_v0, 1  ;;  %8251 = vmatprep.mubr.msk.bf16.mxu0 %vm8841_vm2, %v11969_v19  ;;  %v3875_v23 = vrot.slane %v3723_v53, 1  ;;  %8329 = vmatprep.mubr.msk.bf16.mxu1 %vm8841_vm2, %v11969_v19 }
 0x36d   : > { %v10728_v37 = vadd.f32 %v3874_v27, %v3606_v60  ;;  %v8073_v42 = vpop.f32.mrf.mxu0  ;;  %v8151_v48 = vpop.f32.mrf.mxu1  ;;  %v12043_v60 = vld [vmem:[#allocation18_spill] sm:$0xff] }
 0x36e   : > { %v3517_v7 = vsel %vm1316_vm4, %v3514_v56, %v3516_v44  ;;  %v3876_v16 = vsel %vm1316_vm4, %v3873_v11, %v3875_v23 }
 0x36f   : > { %v3607_v17 = vadd.f32 %v3517_v7, %v12041_v25  ;;  %v3367_v39 = vpop.f32.mrf.mxu0  ;;  %v3726_v63 = vpop.f32.mrf.mxu1  ;;  %v12044_v25 = vld [vmem:[#allocation19_spill] sm:$0xff] }
 0x370   : > { %v3518_v50 = vrot.slane %v3367_v39, 1  ;;  %v3877_v20 = vrot.slane %v3726_v63, 1 }
 0x371   : > { %v10735_v13 = vadd.f32 %v3876_v16, %v3607_v17  ;;  %v8074_v51 = vpop.f32.mrf.mxu0  ;;  %v8152_v47 = vpop.f32.mrf.mxu1 }
 0x372   : > { %v3519_v46 = vsel %vm1316_vm4, %v3516_v44, %v3518_v50  ;;  %v3878_v52 = vsel %vm1316_vm4, %v3875_v23, %v3877_v20 }
 0x373   : > { %v3608_v59 = vadd.f32 %v3519_v46, %v12042_v32  ;;  %v3372_v14 = vpop.f32.mrf.mxu0  ;;  %8252 = vmatmul.mubr.msk.bf16.gmra.mxu0 %vm444_vm3, %v10383_v18  ;;  %v3731_v1 = vpop.f32.mrf.mxu1  ;;  %8330 = vmatmul.mubr.msk.bf16.gmra.mxu1 %vm444_vm3, %v10388_v15 }
 0x374   : > { %v3520_v56 = vrot.slane %v3372_v14, 1  ;;  %8255 = vmatprep.mubr.msk.bf16.mxu0 %vm8841_vm2, %v11969_v19  ;;  %v3879_v10 = vrot.slane %v3731_v1, 1  ;;  %8333 = vmatprep.mubr.msk.bf16.mxu1 %vm8841_vm2, %v11969_v19 }
 0x375   : > { %v10746_v11 = vadd.f32 %v3878_v52, %v3608_v59  ;;  %v8077_v6 = vpop.f32.mrf.mxu0  ;;  %v8155_v35 = vpop.f32.mrf.mxu1  ;;  %v12045_v59 = vld [vmem:[#allocation20_spill] sm:$0xff] }
 0x376   : > { %v3521_v49 = vsel %vm1316_vm4, %v3518_v50, %v3520_v56  ;;  %v3880_v27 = vsel %vm1316_vm4, %v3877_v20, %v3879_v10 }
 0x377   : > { %v3609_v18 = vadd.f32 %v3521_v49, %v12043_v60  ;;  %v3375_v0 = vpop.f32.mrf.mxu0  ;;  %v3734_v15 = vpop.f32.mrf.mxu1  ;;  %v12046_v60 = vld [vmem:[#allocation21_spill] sm:$0xff] }
 0x378   : > { %v3522_v44 = vrot.slane %v3375_v0, 1  ;;  %v3881_v23 = vrot.slane %v3734_v15, 1 }
 0x379   : > { %v10753_v53 = vadd.f32 %v3880_v27, %v3609_v18  ;;  %v8078_v42 = vpop.f32.mrf.mxu0  ;;  %v8156_v48 = vpop.f32.mrf.mxu1 }
 0x37a   : > { %v3523_v7 = vsel %vm1316_vm4, %v3520_v56, %v3522_v44  ;;  %v3882_v16 = vsel %vm1316_vm4, %v3879_v10, %v3881_v23 }
 0x37b   : > { %v3610_v17 = vadd.f32 %v3523_v7, %v12044_v25  ;;  %v3380_v39 = vpop.f32.mrf.mxu0  ;;  %8256 = vmatmul.mubr.msk.bf16.gmra.mxu0 %vm444_vm3, %v10407_v40  ;;  %v3739_v63 = vpop.f32.mrf.mxu1  ;;  %8334 = vmatmul.mubr.msk.bf16.gmra.mxu1 %vm444_vm3, %v10412_v12 }
 0x37c   : > { %v3524_v50 = vrot.slane %v3380_v39, 1  ;;  %8259 = vmatprep.mubr.msk.bf16.mxu0 %vm8841_vm2, %v11969_v19  ;;  %v3883_v51 = vrot.slane %v3739_v63, 1  ;;  %8337 = vmatprep.mubr.msk.bf16.mxu1 %vm8841_vm2, %v11969_v19 }
 0x37d   : > { %v10764_v20 = vadd.f32 %v3882_v16, %v3610_v17  ;;  %v8081_v46 = vpop.f32.mrf.mxu0  ;;  %v8159_v32 = vpop.f32.mrf.mxu1  ;;  %v12047_v17 = vld [vmem:[#allocation22_spill] sm:$0xff] }
 0x37e   : > { %v3525_v47 = vsel %vm1316_vm4, %v3522_v44, %v3524_v50  ;;  %v3884_v52 = vsel %vm1316_vm4, %v3881_v23, %v3883_v51 }
 0x37f   : > { %v3611_v40 = vadd.f32 %v3525_v47, %v12045_v59  ;;  %v3383_v14 = vpop.f32.mrf.mxu0  ;;  %v3742_v12 = vpop.f32.mrf.mxu1  ;;  %v12048_v59 = vld [vmem:[#allocation23_spill] sm:$0xff] }
 0x380   : > { %v3526_v56 = vrot.slane %v3383_v14, 1  ;;  %v3885_v10 = vrot.slane %v3742_v12, 1 }
 0x381   : > { %v10771_v1 = vadd.f32 %v3884_v52, %v3611_v40  ;;  %v8082_v6 = vpop.f32.mrf.mxu0  ;;  %v8160_v35 = vpop.f32.mrf.mxu1 }
 0x382   : > { %v3527_v49 = vsel %vm1316_vm4, %v3524_v50, %v3526_v56  ;;  %v3886_v27 = vsel %vm1316_vm4, %v3883_v51, %v3885_v10 }
 0x383   : > { %v3612_v18 = vadd.f32 %v3527_v49, %v12046_v60  ;;  %v3388_v0 = vpop.f32.mrf.mxu0  ;;  %8260 = vmatmul.mubr.msk.bf16.gmra.mxu0 %vm444_vm3, %v10431_v41  ;;  %v3747_v15 = vpop.f32.mrf.mxu1  ;;  %8338 = vmatmul.mubr.msk.bf16.gmra.mxu1 %vm444_vm3, %v10436_v21 }
 0x384   : > { %v3528_v44 = vrot.slane %v3388_v0, 1  ;;  %8263 = vmatprep.mubr.msk.bf16.mxu0 %vm8841_vm2, %v11969_v19  ;;  %v3887_v42 = vrot.slane %v3747_v15, 1  ;;  %8341 = vmatprep.mubr.msk.bf16.mxu1 %vm8841_vm2, %v11969_v19 }
 0x385   : > { %v10782_v23 = vadd.f32 %v3886_v27, %v3612_v18  ;;  %v8085_v7 = vpop.f32.mrf.mxu0  ;;  %v8163_v25 = vpop.f32.mrf.mxu1  ;;  %v12049_v18 = vld [vmem:[#allocation24_spill] sm:$0xff] }
 0x386   : > { %v3529_v48 = vsel %vm1316_vm4, %v3526_v56, %v3528_v44  ;;  %v3888_v16 = vsel %vm1316_vm4, %v3885_v10, %v3887_v42 }
 0x387   : > { %v3613_v41 = vadd.f32 %v3529_v48, %v12047_v17  ;;  %v3391_v39 = vpop.f32.mrf.mxu0  ;;  %v3750_v21 = vpop.f32.mrf.mxu1  ;;  %v12050_v17 = vld [vmem:[#allocation25_spill] sm:$0xff] }
 0x388   : > { %v3530_v50 = vrot.slane %v3391_v39, 1  ;;  %v3889_v51 = vrot.slane %v3750_v21, 1 }
 0x389   : > { %v10789_v63 = vadd.f32 %v3888_v16, %v3613_v41  ;;  %v8086_v46 = vpop.f32.mrf.mxu0  ;;  %v8164_v32 = vpop.f32.mrf.mxu1 }
 0x38a   : > { %v3531_v47 = vsel %vm1316_vm4, %v3528_v44, %v3530_v50  ;;  %v3890_v52 = vsel %vm1316_vm4, %v3887_v42, %v3889_v51 }
 0x38b   : > { %v3614_v40 = vadd.f32 %v3531_v47, %v12048_v59  ;;  %v3396_v14 = vpop.f32.mrf.mxu0  ;;  %8264 = vmatmul.mubr.msk.bf16.gmra.mxu0 %vm444_vm3, %v10455_v34  ;;  %v3755_v12 = vpop.f32.mrf.mxu1  ;;  %8342 = vmatmul.mubr.msk.bf16.gmra.mxu1 %vm444_vm3, %v10460_v22 }
 0x38c   : > { %v3532_v56 = vrot.slane %v3396_v14, 1  ;;  %8267 = vmatprep.mubr.msk.bf16.mxu0 %vm8841_vm2, %v11969_v19  ;;  %v3891_v6 = vrot.slane %v3755_v12, 1  ;;  %8345 = vmatprep.mubr.msk.bf16.mxu1 %vm8841_vm2, %v11969_v19 }
 0x38d   : > { %v10800_v10 = vadd.f32 %v3890_v52, %v3614_v40  ;;  %v8089_v49 = vpop.f32.mrf.mxu0  ;;  %v8167_v60 = vpop.f32.mrf.mxu1  ;;  %v12051_v40 = vld [vmem:[#allocation26_spill] sm:$0xff] }
 0x38e   : > { %v3533_v35 = vsel %vm1316_vm4, %v3530_v50, %v3532_v56  ;;  %v3892_v27 = vsel %vm1316_vm4, %v3889_v51, %v3891_v6 }
 0x38f   : > { %v3615_v34 = vadd.f32 %v3533_v35, %v12049_v18  ;;  %v3399_v0 = vpop.f32.mrf.mxu0  ;;  %v3758_v22 = vpop.f32.mrf.mxu1  ;;  %v12052_v18 = vld [vmem:[#allocation27_spill] sm:$0xff] }
 0x390   : > { %v3534_v44 = vrot.slane %v3399_v0, 1  ;;  %v3893_v42 = vrot.slane %v3758_v22, 1 }
 0x391   : > { %v10807_v15 = vadd.f32 %v3892_v27, %v3615_v34  ;;  %v8090_v7 = vpop.f32.mrf.mxu0  ;;  %v8168_v25 = vpop.f32.mrf.mxu1 }
 0x392   : > { %v3535_v48 = vsel %vm1316_vm4, %v3532_v56, %v3534_v44  ;;  %v3894_v16 = vsel %vm1316_vm4, %v3891_v6, %v3893_v42 }
 0x393   : > { %v3616_v41 = vadd.f32 %v3535_v48, %v12050_v17  ;;  %v3404_v39 = vpop.f32.mrf.mxu0  ;;  %8268 = vmatmul.mubr.msk.bf16.gmra.mxu0 %vm444_vm3, %v10479_v62  ;;  %v3763_v21 = vpop.f32.mrf.mxu1  ;;  %8346 = vmatmul.mubr.msk.bf16.gmra.mxu1 %vm444_vm3, %v10484_v8  ;;  %v6986_v17 = vld [vmem:[%s11877_s1 + $0x1c] sm:$0x3] }
 0x394   : > { %v3536_v50 = vrot.slane %v3404_v39, 1  ;;  %8271 = vmatprep.mubr.msk.bf16.mxu0 %vm8841_vm2, %v11969_v19  ;;  %v3895_v46 = vrot.slane %v3763_v21, 1  ;;  %8349 = vmatprep.mubr.msk.bf16.mxu1 %vm8841_vm2, %v11969_v19  ;;  %v12054_v39 = vld [vmem:[#allocation28_spill] sm:$0xff] }
 0x395   : > { %v10818_v51 = vadd.f32 %v3894_v16, %v3616_v41  ;;  %v8093_v47 = vpop.f32.mrf.mxu0  ;;  %v8171_v59 = vpop.f32.mrf.mxu1  ;;  %v7006_v16 = vld [vmem:[%s11877_s1 + $0x1e] sm:$0x3] }
 0x396   : > { %v3537_v32 = vsel %vm1316_vm4, %v3534_v44, %v3536_v50  ;;  %v3896_v52 = vsel %vm1316_vm4, %v3893_v42, %v3895_v46  ;;  %v12053_v42 = vld [vmem:[#allocation29_spill] sm:$0xff]  ;;  %v5429_v59 = vand.u32 %v6986_v17, %v8883_v5 }
 0x397   : > { %v3617_v62 = vadd.f32 %v3537_v32, %v12051_v40  ;;  %v3407_v14 = vpop.f32.mrf.mxu0  ;;  %v3766_v8 = vpop.f32.mrf.mxu1 }
 0x398   : > { %v3538_v56 = vrot.slane %v3407_v14, 1  ;;  %v3897_v6 = vrot.slane %v3766_v8, 1  ;;  %v5788_v14 = vand.u32 %v7006_v16, %v8883_v5 }
 0x399   : > { %v10825_v12 = vadd.f32 %v3896_v52, %v3617_v62  ;;  %v8094_v49 = vpop.f32.mrf.mxu0  ;;  %v8172_v60 = vpop.f32.mrf.mxu1 }
 0x39a   : > { %v3539_v35 = vsel %vm1316_vm4, %v3536_v50, %v3538_v56  ;;  %v3898_v27 = vsel %vm1316_vm4, %v3895_v46, %v3897_v6  ;;  %v12055_v49 = vld [vmem:[#allocation30_spill] sm:$0xff] }
 0x39b   : > { %v3618_v34 = vadd.f32 %v3539_v35, %v12052_v18  ;;  %v3412_v0 = vpop.f32.mrf.mxu0  ;;  %8272 = vmatmul.mubr.msk.bf16.gmra.mxu0 %vm444_vm3, %v10503_v31  ;;  %v3771_v22 = vpop.f32.mrf.mxu1  ;;  %8350 = vmatmul.mubr.msk.bf16.gmra.mxu1 %vm444_vm3, %v12053_v42  ;;  %v10857_v18 = vld [vmem:[%s8905_s27 + $0x128] sm:$0xff]  }
 0x39c   : > { %v3540_v44 = vrot.slane %v3412_v0, 1  ;;  %8355 = vmatprep.mubr.msk.bf16.mxu0 %vm8841_vm2, %v11969_v19  ;;  %v3899_v48 = vrot.slane %v3771_v22, 1  ;;  %8433 = vmatprep.mubr.msk.bf16.mxu1 %vm8841_vm2, %v11969_v19  ;;  %v10862_v0 = vld [vmem:[%s8905_s27 + $0x1bc] sm:$0xff]  }
 0x39d   : > { %v10836_v7 = vadd.f32 %v3898_v27, %v3618_v34  ;;  %v8097_v25 = vpop.f32.mrf.mxu0  ;;  %v8175_v41 = vpop.f32.mrf.mxu1 }
 0x39e   : > { %v3541_v31 = vsel %vm1316_vm4, %v3538_v56, %v3540_v44  ;;  %v3900_v21 = vsel %vm1316_vm4, %v3897_v6, %v3899_v48 }
 0x39f   : > { %v3619_v50 = vadd.f32 %v3541_v31, %v12054_v39  ;;  %v3415_v46 = vpop.f32.mrf.mxu0  ;;  %v3774_v32 = vpop.f32.mrf.mxu1 }
 0x3a0   : > { %v3542_v47 = vrot.slane %v3415_v46, 1  ;;  %v3901_v62 = vrot.slane %v3774_v32, 1 }
 0x3a1   : > { %v10850_v40 = vadd.f32 %v3900_v21, %v3619_v50  ;;  %v8098_v52 = vpop.f32.mrf.mxu0  ;;  %v8176_v8 = vpop.f32.mrf.mxu1 }
 0x3a2   : > { %v3543_v56 = vsel %vm1316_vm4, %v3540_v44, %v3542_v47  ;;  %v3902_v60 = vsel %vm1316_vm4, %v3899_v48, %v3901_v62 }
 0x3a3   : > { %v3620_v35 = vadd.f32 %v3543_v56, %v12055_v49  ;;  %v3420_v6 = vpop.f32.mrf.mxu0  ;;  %8356 = vmatmul.mubr.msk.bf16.vlgmr.msra.gmra.mxu0 %vm444_vm3, %v10857_v18  ;;  %v3779_v27 = vpop.f32.mrf.mxu1  ;;  %8434 = vmatmul.mubr.msk.bf16.vlgmr.msra.gmra.mxu1 %vm444_vm3, %v10862_v0  ;;  %v10886_v56 = vld [vmem:[%s8905_s27 + $0x1c4] sm:$0xff]  }
 0x3a4   : > { %v3544_v34 = vrot.slane %v3420_v6, 1  ;;  %8510 = vmatpush3.bf16.msra.mxu0 %v5429_v59  ;;  %v3903_v44 = vrot.slane %v3779_v27, 1  ;;  %8588 = vmatpush3.bf16.msra.mxu1 %v5788_v14  ;;  %v10881_v14 = vld [vmem:[%s8905_s27 + $0x130] sm:$0xff]  }
 0x3a5   : > { %v10866_v5 = vadd.f32 %v3902_v60, %v3620_v35  ;;  %v8101_v22 = vpop.f32.mrf.mxu0  ;;  %8359 = vmatprep.mubr.msk.bf16.mxu0 %vm8841_vm2, %v11969_v19  ;;  %v8179_v48 = vpop.f32.mrf.mxu1  ;;  %8437 = vmatprep.mubr.msk.bf16.mxu1 %vm8841_vm2, %v11969_v19 }
 0x3a6   : > { %v3545_v42 = vsel %vm1316_vm4, %v3542_v47, %v3544_v34  ;;  %v3904_v17 = vsel %vm1316_vm4, %v3901_v62, %v3903_v44 }
 0x3a7   : > { %v3621_v25 = vadd.f32 %v3545_v42, %v10528_v3  ;;  %v3423_v31 = vpop.f32.mrf.mxu0  ;;  %v3782_v16 = vpop.f32.mrf.mxu1 }
 0x3a8   : > { %v3546_v41 = vrot.slane %v3423_v31, 1  ;;  %v3905_v50 = vrot.slane %v3782_v16, 1 }
 0x3a9   : > { %v10875_v39 = vadd.f32 %v3904_v17, %v3621_v25  ;;  %v8102_v21 = vpop.f32.mrf.mxu0  ;;  %v8180_v47 = vpop.f32.mrf.mxu1 }
 0x3aa   : > { %v3547_v46 = vsel %vm1316_vm4, %v3544_v34, %v3546_v41  ;;  %v3906_v59 = vsel %vm1316_vm4, %v3903_v44, %v3905_v50  ;;  %v10910_v47 = vld [vmem:[%s8905_s27 + $0x1cc] sm:$0xff]  }
 0x3ab   : > { %v3622_v32 = vadd.f32 %v3547_v46, %v10538_v54  ;;  %v3428_v52 = vpop.f32.mrf.mxu0  ;;  %8360 = vmatmul.mubr.msk.bf16.gmra.mxu0 %vm444_vm3, %v10881_v14  ;;  %v3787_v62 = vpop.f32.mrf.mxu1  ;;  %8438 = vmatmul.mubr.msk.bf16.gmra.mxu1 %vm444_vm3, %v10886_v56  ;;  %v10905_v46 = vld [vmem:[%s8905_s27 + $0x138] sm:$0xff]  }
 0x3ac   : > { %v3548_v3 = vrot.slane %v3428_v52, 1  ;;  %8363 = vmatprep.mubr.msk.bf16.mxu0 %vm8841_vm2, %v11969_v19  ;;  %v3907_v54 = vrot.slane %v3787_v62, 1  ;;  %8441 = vmatprep.mubr.msk.bf16.mxu1 %vm8841_vm2, %v11969_v19 }
 0x3ad   : > { %v10892_v8 = vadd.f32 %v3906_v59, %v3622_v32  ;;  %v8105_v49 = vpop.f32.mrf.mxu0  ;;  %v8183_v60 = vpop.f32.mrf.mxu1 }
 0x3ae   : > { %v3549_v35 = vsel %vm1316_vm4, %v3546_v41, %v3548_v3  ;;  %v3908_v34 = vsel %vm1316_vm4, %v3905_v50, %v3907_v54 }
 0x3af   : > { %v3623_v6 = vadd.f32 %v3549_v35, %v10549_v43  ;;  %v3431_v27 = vpop.f32.mrf.mxu0  ;;  %v3790_v22 = vpop.f32.mrf.mxu1 }
 0x3b0   : > { %v3550_v44 = vrot.slane %v3431_v27, 1  ;;  %v3909_v48 = vrot.slane %v3790_v22, 1 }
 0x3b1   : > { %v10899_v42 = vadd.f32 %v3908_v34, %v3623_v6  ;;  %v8106_v25 = vpop.f32.mrf.mxu0  ;;  %v8184_v31 = vpop.f32.mrf.mxu1 }
 0x3b2   : > { %v3551_v17 = vsel %vm1316_vm4, %v3548_v3, %v3550_v44  ;;  %v3910_v41 = vsel %vm1316_vm4, %v3907_v54, %v3909_v48 }
 0x3b3   : > { %v3624_v16 = vadd.f32 %v3551_v17, %v10560_v36  ;;  %v3436_v21 = vpop.f32.mrf.mxu0  ;;  %8364 = vmatmul.mubr.msk.bf16.gmra.mxu0 %vm444_vm3, %v10905_v46  ;;  %v3795_v50 = vpop.f32.mrf.mxu1  ;;  %8442 = vmatmul.mubr.msk.bf16.gmra.mxu1 %vm444_vm3, %v10910_v47 }
 0x3b4   : > { %v3552_v43 = vrot.slane %v3436_v21, 1  ;;  %8367 = vmatprep.mubr.msk.bf16.mxu0 %vm8841_vm2, %v11969_v19  ;;  %v3911_v36 = vrot.slane %v3795_v50, 1  ;;  %8445 = vmatprep.mubr.msk.bf16.mxu1 %vm8841_vm2, %v11969_v19 }
 0x3b5   : > { %v10916_v32 = vadd.f32 %v3910_v41, %v3624_v16  ;;  %v8109_v59 = vpop.f32.mrf.mxu0  ;;  %v8187_v3 = vpop.f32.mrf.mxu1  ;;  %v10929_v16 = vld [vmem:[%s8905_s27 + $0x140] sm:$0xff]   ;;  %v10934_v41 = vld [vmem:[%s8905_s27 + $0x1d4] sm:$0xff]  }
 0x3b6   : > { %v3553_v52 = vsel %vm1316_vm4, %v3550_v44, %v3552_v43  ;;  %v3912_v54 = vsel %vm1316_vm4, %v3909_v48, %v3911_v36 }
 0x3b7   : > { %v3625_v62 = vadd.f32 %v3553_v52, %v10567_v33  ;;  %v3439_v49 = vpop.f32.mrf.mxu0  ;;  %v3798_v60 = vpop.f32.mrf.mxu1 }
 0x3b8   : > { %v3554_v35 = vrot.slane %v3439_v49, 1  ;;  %v3913_v34 = vrot.slane %v3798_v60, 1 }
 0x3b9   : > { %v10923_v6 = vadd.f32 %v3912_v54, %v3625_v62  ;;  %v8110_v27 = vpop.f32.mrf.mxu0  ;;  %v8188_v25 = vpop.f32.mrf.mxu1 }
 0x3ba   : > { %v3555_v22 = vsel %vm1316_vm4, %v3552_v43, %v3554_v35  ;;  %v3914_v44 = vsel %vm1316_vm4, %v3911_v36, %v3913_v34 }
 0x3bb   : > { %v3626_v17 = vadd.f32 %v3555_v22, %v10578_v29  ;;  %v3444_v31 = vpop.f32.mrf.mxu0  ;;  %8368 = vmatmul.mubr.msk.bf16.gmra.mxu0 %vm444_vm3, %v10929_v16  ;;  %v3803_v48 = vpop.f32.mrf.mxu1  ;;  %8446 = vmatmul.mubr.msk.bf16.gmra.mxu1 %vm444_vm3, %v10934_v41 }
 0x3bc   : > { %v3556_v33 = vrot.slane %v3444_v31, 1  ;;  %8371 = vmatprep.mubr.msk.bf16.mxu0 %vm8841_vm2, %v11969_v19  ;;  %v3915_v29 = vrot.slane %v3803_v48, 1  ;;  %8449 = vmatprep.mubr.msk.bf16.mxu1 %vm8841_vm2, %v11969_v19  ;;  %v10953_v31 = vld [vmem:[%s8905_s27 + $0x148] sm:$0xff]   ;;  %v10958_v48 = vld [vmem:[%s8905_s27 + $0x1dc] sm:$0xff]  }
 0x3bd   : > { %v10940_v21 = vadd.f32 %v3914_v44, %v3626_v17  ;;  %v8113_v43 = vpop.f32.mrf.mxu0  ;;  %v8191_v36 = vpop.f32.mrf.mxu1 }
 0x3be   : > { %v3557_v50 = vsel %vm1316_vm4, %v3554_v35, %v3556_v33  ;;  %v3916_v52 = vsel %vm1316_vm4, %v3913_v34, %v3915_v29 }
 0x3bf   : > { %v3627_v59 = vadd.f32 %v3557_v50, %v10585_v58  ;;  %v3447_v3 = vpop.f32.mrf.mxu0  ;;  %v3806_v54 = vpop.f32.mrf.mxu1 }
 0x3c0   : > { %v3558_v62 = vrot.slane %v3447_v3, 1  ;;  %v3917_v60 = vrot.slane %v3806_v54, 1 }
 0x3c1   : > { %v10947_v49 = vadd.f32 %v3916_v52, %v3627_v59  ;;  %v8114_v27 = vpop.f32.mrf.mxu0  ;;  %v8192_v25 = vpop.f32.mrf.mxu1 }
 0x3c2   : > { %v3559_v22 = vsel %vm1316_vm4, %v3556_v33, %v3558_v62  ;;  %v3918_v35 = vsel %vm1316_vm4, %v3915_v29, %v3917_v60 }
 0x3c3   : > { %v3628_v17 = vadd.f32 %v3559_v22, %v10596_v61  ;;  %v3452_v44 = vpop.f32.mrf.mxu0  ;;  %8372 = vmatmul.mubr.msk.bf16.gmra.mxu0 %vm444_vm3, %v10953_v31  ;;  %v3811_v34 = vpop.f32.mrf.mxu1  ;;  %8450 = vmatmul.mubr.msk.bf16.gmra.mxu1 %vm444_vm3, %v10958_v48 }
 0x3c4   : > { %v3560_v58 = vrot.slane %v3452_v44, 1  ;;  %8375 = vmatprep.mubr.msk.bf16.mxu0 %vm8841_vm2, %v11969_v19  ;;  %v3919_v33 = vrot.slane %v3811_v34, 1  ;;  %8453 = vmatprep.mubr.msk.bf16.mxu1 %vm8841_vm2, %v11969_v19 }
 0x3c5   : > { %v10964_v61 = vadd.f32 %v3918_v35, %v3628_v17  ;;  %v8117_v29 = vpop.f32.mrf.mxu0  ;;  %v8195_v50 = vpop.f32.mrf.mxu1  ;;  %v10974_v17 = vld [vmem:[%s8905_s27 + $0x150] sm:$0xff]   ;;  %v10979_v35 = vld [vmem:[%s8905_s27 + $0x1e4] sm:$0xff]  }
 0x3c6   : > { %v3561_v43 = vsel %vm1316_vm4, %v3558_v62, %v3560_v58  ;;  %v3920_v59 = vsel %vm1316_vm4, %v3917_v60, %v3919_v33 }
 0x3c7   : > { %v3629_v36 = vadd.f32 %v3561_v43, %v10603_v38  ;;  %v3455_v52 = vpop.f32.mrf.mxu0  ;;  %v3814_v3 = vpop.f32.mrf.mxu1  ;;  %v10988_v43 = vld [vmem:[%s8905_s27 + $0x158] sm:$0xff]  }
 0x3c8   : > { %12056 = vst [vmem:[#allocation2_spill] sm:$0xff] %v10988_v43 }
 0x3c9   : > { %v10971_v54 = vadd.f32 %v3920_v59, %v3629_v36  ;;  %v8118_v27 = vpop.f32.mrf.mxu0  ;;  %v8196_v22 = vpop.f32.mrf.mxu1  ;;  %v10993_v36 = vld [vmem:[%s8905_s27 + $0x1ec] sm:$0xff]  }
 0x3ca   : > { %12057 = vst [vmem:[#allocation3_spill] sm:$0xff] %v10993_v36 }
 0x3cb   : > { %v4028_v25 = vpop.f32.mrf.mxu0  ;;  %8376 = vmatmul.mubr.msk.bf16.gmra.mxu0 %vm444_vm3, %v10974_v17  ;;  %v4388_v62 = vpop.f32.mrf.mxu1  ;;  %8454 = vmatmul.mubr.msk.bf16.gmra.mxu1 %vm444_vm3, %v10979_v35 }
 0x3cc   : > { %8379 = vmatprep.mubr.msk.bf16.mxu0 %vm8841_vm2, %v11969_v19  ;;  %8457 = vmatprep.mubr.msk.bf16.mxu1 %vm8841_vm2, %v11969_v19 }
 0x3cd   : > { %v8201_v38 = vpop.f32.mrf.mxu0  ;;  %v8279_v60 = vpop.f32.mrf.mxu1 }
 0x3cf   : > { %v4030_v44 = vpop.f32.mrf.mxu0  ;;  %v4390_v58 = vpop.f32.mrf.mxu1 }
 0x3d1   : > { %v8202_v34 = vpop.f32.mrf.mxu0  ;;  %v8280_v33 = vpop.f32.mrf.mxu1 }
 0x3d3   : > { %v4034_v29 = vpop.f32.mrf.mxu0  ;;  %8380 = vmatmul.mubr.msk.bf16.gmra.mxu0 %vm444_vm3, %v10988_v43  ;;  %v4394_v50 = vpop.f32.mrf.mxu1  ;;  %8458 = vmatmul.mubr.msk.bf16.gmra.mxu1 %vm444_vm3, %v10993_v36  ;;  %v11005_v36 = vld [vmem:[%s8905_s27 + $0x160] sm:$0xff]   ;;  %v11029_v43 = vld [vmem:[%s8905_s27 + $0x168] sm:$0xff]  }
 0x3d4   : > { %8383 = vmatprep.mubr.msk.bf16.mxu0 %vm8841_vm2, %v11969_v19  ;;  %8461 = vmatprep.mubr.msk.bf16.mxu1 %vm8841_vm2, %v11969_v19  ;;  %v4212_v27 = vrot.slane %v4034_v29, 2  ;;  %v4571_v62 = vrot.slane %v4394_v50, 2  ;;  %12058 = vst [vmem:[#allocation4_spill] sm:$0xff] %v11005_v36  ;;  %12061 = vst [vmem:[#allocation7_spill] sm:$0xff] %v11029_v43 }
 0x3d5   : > { %v8205_v59 = vpop.f32.mrf.mxu0  ;;  %v8283_v52 = vpop.f32.mrf.mxu1 }
 0x3d7   : > { %v4037_v3 = vpop.f32.mrf.mxu0  ;;  %v4397_v25 = vpop.f32.mrf.mxu1 }
 0x3d8   : > { %v4213_v22 = vrot.slane %v4037_v3, 2  ;;  %v4572_v38 = vrot.slane %v4397_v25, 2  ;;  %v11010_v3 = vld [vmem:[%s8905_s27 + $0x1f4] sm:$0xff]  }
 0x3d9   : > { %v8206_v60 = vpop.f32.mrf.mxu0  ;;  %v8284_v58 = vpop.f32.mrf.mxu1  ;;  %12059 = vst [vmem:[#allocation5_spill] sm:$0xff] %v11010_v3 }
 0x3da   : > { %v4214_v44 = vsel %vm4211_vm5, %v4212_v27, %v4213_v22  ;;  %v4573_v33 = vsel %vm4211_vm5, %v4571_v62, %v4572_v38 }
 0x3db   : > { %v4315_v34 = vadd.f32 %v4214_v44, %v10638_v2  ;;  %v4042_v59 = vpop.f32.mrf.mxu0  ;;  %8384 = vmatmul.mubr.msk.bf16.gmra.mxu0 %vm444_vm3, %v11005_v36  ;;  %v4402_v29 = vpop.f32.mrf.mxu1  ;;  %8462 = vmatmul.mubr.msk.bf16.gmra.mxu1 %vm444_vm3, %v11010_v3 }
 0x3dc   : > { %v4215_v52 = vrot.slane %v4042_v59, 2  ;;  %8387 = vmatprep.mubr.msk.bf16.mxu0 %vm8841_vm2, %v11969_v19  ;;  %v4574_v2 = vrot.slane %v4402_v29, 2  ;;  %8465 = vmatprep.mubr.msk.bf16.mxu1 %vm8841_vm2, %v11969_v19 }
 0x3dd   : > { %v11016_v50 = vadd.f32 %v4573_v33, %v4315_v34  ;;  %v8209_v27 = vpop.f32.mrf.mxu0  ;;  %v8287_v62 = vpop.f32.mrf.mxu1 }
 0x3de   : > { %v4216_v25 = vsel %vm4211_vm5, %v4213_v22, %v4215_v52  ;;  %v4575_v44 = vsel %vm4211_vm5, %v4572_v38, %v4574_v2 }
 0x3df   : > { %12060 = vst [vmem:[#allocation6_spill] sm:$0xff] %v11016_v50  ;;  %v4316_v60 = vadd.f32 %v4216_v25, %v10645_v55  ;;  %v4045_v58 = vpop.f32.mrf.mxu0  ;;  %v4405_v3 = vpop.f32.mrf.mxu1  ;;  %v11034_v25 = vld [vmem:[%s8905_s27 + $0x1fc] sm:$0xff]  }
 0x3e0   : > { %v4217_v59 = vrot.slane %v4045_v58, 2  ;;  %v4576_v34 = vrot.slane %v4405_v3, 2  ;;  %12062 = vst [vmem:[#allocation8_spill] sm:$0xff] %v11034_v25 }
 0x3e1   : > { %v11023_v36 = vadd.f32 %v4575_v44, %v4316_v60  ;;  %v8210_v33 = vpop.f32.mrf.mxu0  ;;  %v8288_v27 = vpop.f32.mrf.mxu1 }
 0x3e2   : > { %v4218_v29 = vsel %vm4211_vm5, %v4215_v52, %v4217_v59  ;;  %v4577_v22 = vsel %vm4211_vm5, %v4574_v2, %v4576_v34 }
 0x3e3   : > { %v4317_v50 = vadd.f32 %v4218_v29, %v10656_v57  ;;  %v4050_v62 = vpop.f32.mrf.mxu0  ;;  %8388 = vmatmul.mubr.msk.bf16.gmra.mxu0 %vm444_vm3, %v11029_v43  ;;  %v4410_v38 = vpop.f32.mrf.mxu1  ;;  %8466 = vmatmul.mubr.msk.bf16.gmra.mxu1 %vm444_vm3, %v11034_v25  ;;  %v11053_v43 = vld [vmem:[%s8905_s27 + $0x170] sm:$0xff]  }
 0x3e4   : > { %v4219_v55 = vrot.slane %v4050_v62, 2  ;;  %8391 = vmatprep.mubr.msk.bf16.mxu0 %vm8841_vm2, %v11969_v19  ;;  %v4578_v57 = vrot.slane %v4410_v38, 2  ;;  %8469 = vmatprep.mubr.msk.bf16.mxu1 %vm8841_vm2, %v11969_v19  ;;  %12063 = vst [vmem:[#allocation9_spill] sm:$0xff] %v11053_v43 }
 0x3e5   : > { %v11040_v52 = vadd.f32 %v4577_v22, %v4317_v50  ;;  %v8213_v3 = vpop.f32.mrf.mxu0  ;;  %v8291_v60 = vpop.f32.mrf.mxu1 }
 0x3e6   : > { %v4220_v2 = vsel %vm4211_vm5, %v4217_v59, %v4219_v55  ;;  %v4579_v58 = vsel %vm4211_vm5, %v4576_v34, %v4578_v57 }
 0x3e7   : > { %v4318_v44 = vadd.f32 %v4220_v2, %v10663_v4  ;;  %v4053_v33 = vpop.f32.mrf.mxu0  ;;  %v4413_v27 = vpop.f32.mrf.mxu1  ;;  %v11058_v2 = vld [vmem:[%s8905_s27 + $0x204] sm:$0xff]  }
 0x3e8   : > { %v4221_v29 = vrot.slane %v4053_v33, 2  ;;  %v4580_v50 = vrot.slane %v4413_v27, 2  ;;  %12064 = vst [vmem:[#allocation10_spill] sm:$0xff] %v11058_v2 }
 0x3e9   : > { %v11047_v62 = vadd.f32 %v4579_v58, %v4318_v44  ;;  %v8214_v22 = vpop.f32.mrf.mxu0  ;;  %v8292_v3 = vpop.f32.mrf.mxu1 }
 0x3ea   : > { %v4222_v38 = vsel %vm4211_vm5, %v4219_v55, %v4221_v29  ;;  %v4581_v59 = vsel %vm4211_vm5, %v4578_v57, %v4580_v50 }
 0x3eb   : > { %v4319_v25 = vadd.f32 %v4222_v38, %v10674_v26  ;;  %v4058_v60 = vpop.f32.mrf.mxu0  ;;  %8392 = vmatmul.mubr.msk.bf16.gmra.mxu0 %vm444_vm3, %v11053_v43  ;;  %v4418_v34 = vpop.f32.mrf.mxu1  ;;  %8470 = vmatmul.mubr.msk.bf16.gmra.mxu1 %vm444_vm3, %v11058_v2  ;;  %v11077_v43 = vld [vmem:[%s8905_s27 + $0x178] sm:$0xff]  }
 0x3ec   : > { %v4223_v4 = vrot.slane %v4058_v60, 2  ;;  %8395 = vmatprep.mubr.msk.bf16.mxu0 %vm8841_vm2, %v11969_v19  ;;  %v4582_v26 = vrot.slane %v4418_v34, 2  ;;  %8473 = vmatprep.mubr.msk.bf16.mxu1 %vm8841_vm2, %v11969_v19  ;;  %12065 = vst [vmem:[#allocation11_spill] sm:$0xff] %v11077_v43 }
 0x3ed   : > { %v11064_v55 = vadd.f32 %v4581_v59, %v4319_v25  ;;  %v8217_v57 = vpop.f32.mrf.mxu0  ;;  %v8295_v58 = vpop.f32.mrf.mxu1 }
 0x3ee   : > { %v4224_v44 = vsel %vm4211_vm5, %v4221_v29, %v4223_v4  ;;  %v4583_v27 = vsel %vm4211_vm5, %v4580_v50, %v4582_v26 }
 0x3ef   : > { %v4320_v33 = vadd.f32 %v4224_v44, %v10681_v24  ;;  %v4061_v22 = vpop.f32.mrf.mxu0  ;;  %v4421_v3 = vpop.f32.mrf.mxu1  ;;  %v11082_v44 = vld [vmem:[%s8905_s27 + $0x20c] sm:$0xff]  }
 0x3f0   : > { %v4225_v38 = vrot.slane %v4061_v22, 2  ;;  %v4584_v25 = vrot.slane %v4421_v3, 2  ;;  %12066 = vst [vmem:[#allocation12_spill] sm:$0xff] %v11082_v44 }
 0x3f1   : > { %v11071_v60 = vadd.f32 %v4583_v27, %v4320_v33  ;;  %v8218_v59 = vpop.f32.mrf.mxu0  ;;  %v8296_v57 = vpop.f32.mrf.mxu1 }
 0x3f2   : > { %v4226_v34 = vsel %vm4211_vm5, %v4223_v4, %v4225_v38  ;;  %v4585_v29 = vsel %vm4211_vm5, %v4582_v26, %v4584_v25 }
 0x3f3   : > { %v4321_v2 = vadd.f32 %v4226_v34, %v10692_v9  ;;  %v4066_v58 = vpop.f32.mrf.mxu0  ;;  %8396 = vmatmul.mubr.msk.bf16.gmra.mxu0 %vm444_vm3, %v11077_v43  ;;  %v4426_v50 = vpop.f32.mrf.mxu1  ;;  %8474 = vmatmul.mubr.msk.bf16.gmra.mxu1 %vm444_vm3, %v11082_v44  ;;  %v11101_v43 = vld [vmem:[%s8905_s27 + $0x180] sm:$0xff]  }
 0x3f4   : > { %v4227_v24 = vrot.slane %v4066_v58, 2  ;;  %8399 = vmatprep.mubr.msk.bf16.mxu0 %vm8841_vm2, %v11969_v19  ;;  %v4586_v9 = vrot.slane %v4426_v50, 2  ;;  %8477 = vmatprep.mubr.msk.bf16.mxu1 %vm8841_vm2, %v11969_v19  ;;  %12067 = vst [vmem:[#allocation13_spill] sm:$0xff] %v11101_v43 }
 0x3f5   : > { %v11088_v4 = vadd.f32 %v4585_v29, %v4321_v2  ;;  %v8221_v26 = vpop.f32.mrf.mxu0  ;;  %v8299_v27 = vpop.f32.mrf.mxu1 }
 0x3f6   : > { %v4228_v33 = vsel %vm4211_vm5, %v4225_v38, %v4227_v24  ;;  %v4587_v3 = vsel %vm4211_vm5, %v4584_v25, %v4586_v9 }
 0x3f7   : > { %v4322_v22 = vadd.f32 %v4228_v33, %v10699_v45  ;;  %v4069_v59 = vpop.f32.mrf.mxu0  ;;  %v4429_v57 = vpop.f32.mrf.mxu1  ;;  %v11106_v33 = vld [vmem:[%s8905_s27 + $0x214] sm:$0xff]  }
 0x3f8   : > { %v4229_v34 = vrot.slane %v4069_v59, 2  ;;  %v4588_v2 = vrot.slane %v4429_v57, 2  ;;  %12068 = vst [vmem:[#allocation14_spill] sm:$0xff] %v11106_v33 }
 0x3f9   : > { %v11095_v58 = vadd.f32 %v4587_v3, %v4322_v22  ;;  %v8222_v29 = vpop.f32.mrf.mxu0  ;;  %v8300_v26 = vpop.f32.mrf.mxu1 }
 0x3fa   : > { %v4230_v50 = vsel %vm4211_vm5, %v4227_v24, %v4229_v34  ;;  %v4589_v38 = vsel %vm4211_vm5, %v4586_v9, %v4588_v2 }
 0x3fb   : > { %v4323_v44 = vadd.f32 %v4230_v50, %v10710_v28  ;;  %v4074_v27 = vpop.f32.mrf.mxu0  ;;  %8400 = vmatmul.mubr.msk.bf16.gmra.mxu0 %vm444_vm3, %v11101_v43  ;;  %v4434_v25 = vpop.f32.mrf.mxu1  ;;  %8478 = vmatmul.mubr.msk.bf16.gmra.mxu1 %vm444_vm3, %v11106_v33  ;;  %v11125_v43 = vld [vmem:[%s8905_s27 + $0x188] sm:$0xff]  }
 0x3fc   : > { %v4231_v45 = vrot.slane %v4074_v27, 2  ;;  %8403 = vmatprep.mubr.msk.bf16.mxu0 %vm8841_vm2, %v11969_v19  ;;  %v4590_v28 = vrot.slane %v4434_v25, 2  ;;  %8481 = vmatprep.mubr.msk.bf16.mxu1 %vm8841_vm2, %v11969_v19  ;;  %12069 = vst [vmem:[#allocation15_spill] sm:$0xff] %v11125_v43 }
 0x3fd   : > { %v11112_v24 = vadd.f32 %v4589_v38, %v4323_v44  ;;  %v8225_v9 = vpop.f32.mrf.mxu0  ;;  %v8303_v3 = vpop.f32.mrf.mxu1 }
 0x3fe   : > { %v4232_v22 = vsel %vm4211_vm5, %v4229_v34, %v4231_v45  ;;  %v4591_v57 = vsel %vm4211_vm5, %v4588_v2, %v4590_v28 }
 0x3ff   : > { %v4324_v59 = vadd.f32 %v4232_v22, %v10717_v30  ;;  %v4077_v29 = vpop.f32.mrf.mxu0  ;;  %v4437_v26 = vpop.f32.mrf.mxu1  ;;  %v11130_v22 = vld [vmem:[%s8905_s27 + $0x21c] sm:$0xff]  }
 0x400   : > { %v4233_v50 = vrot.slane %v4077_v29, 2  ;;  %v4592_v44 = vrot.slane %v4437_v26, 2  ;;  %12070 = vst [vmem:[#allocation16_spill] sm:$0xff] %v11130_v22 }
 0x401   : > { %v11119_v27 = vadd.f32 %v4591_v57, %v4324_v59  ;;  %v8226_v38 = vpop.f32.mrf.mxu0  ;;  %v8304_v9 = vpop.f32.mrf.mxu1 }
 0x402   : > { %v4234_v25 = vsel %vm4211_vm5, %v4231_v45, %v4233_v50  ;;  %v4593_v34 = vsel %vm4211_vm5, %v4590_v28, %v4592_v44 }
 0x403   : > { %v4325_v33 = vadd.f32 %v4234_v25, %v10728_v37  ;;  %v4082_v3 = vpop.f32.mrf.mxu0  ;;  %8404 = vmatmul.mubr.msk.bf16.gmra.mxu0 %vm444_vm3, %v11125_v43  ;;  %v4442_v2 = vpop.f32.mrf.mxu1  ;;  %8482 = vmatmul.mubr.msk.bf16.gmra.mxu1 %vm444_vm3, %v11130_v22  ;;  %v11149_v43 = vld [vmem:[%s8905_s27 + $0x190] sm:$0xff]  }
 0x404   : > { %v4235_v30 = vrot.slane %v4082_v3, 2  ;;  %8407 = vmatprep.mubr.msk.bf16.mxu0 %vm8841_vm2, %v11969_v19  ;;  %v4594_v37 = vrot.slane %v4442_v2, 2  ;;  %8485 = vmatprep.mubr.msk.bf16.mxu1 %vm8841_vm2, %v11969_v19  ;;  %12071 = vst [vmem:[#allocation17_spill] sm:$0xff] %v11149_v43 }
 0x405   : > { %v11136_v45 = vadd.f32 %v4593_v34, %v4325_v33  ;;  %v8229_v28 = vpop.f32.mrf.mxu0  ;;  %v8307_v57 = vpop.f32.mrf.mxu1 }
 0x406   : > { %v4236_v59 = vsel %vm4211_vm5, %v4233_v50, %v4235_v30  ;;  %v4595_v26 = vsel %vm4211_vm5, %v4592_v44, %v4594_v37 }
 0x407   : > { %v4326_v29 = vadd.f32 %v4236_v59, %v10735_v13  ;;  %v4085_v38 = vpop.f32.mrf.mxu0  ;;  %v4445_v9 = vpop.f32.mrf.mxu1  ;;  %v11154_v59 = vld [vmem:[%s8905_s27 + $0x224] sm:$0xff]  }
 0x408   : > { %v4237_v25 = vrot.slane %v4085_v38, 2  ;;  %v4596_v33 = vrot.slane %v4445_v9, 2  ;;  %12072 = vst [vmem:[#allocation18_spill] sm:$0xff] %v11154_v59 }
 0x409   : > { %v11143_v3 = vadd.f32 %v4595_v26, %v4326_v29  ;;  %v8230_v34 = vpop.f32.mrf.mxu0  ;;  %v8308_v28 = vpop.f32.mrf.mxu1 }
 0x40a   : > { %v4238_v2 = vsel %vm4211_vm5, %v4235_v30, %v4237_v25  ;;  %v4597_v50 = vsel %vm4211_vm5, %v4594_v37, %v4596_v33 }
 0x40b   : > { %v4327_v22 = vadd.f32 %v4238_v2, %v10746_v11  ;;  %v4090_v57 = vpop.f32.mrf.mxu0  ;;  %8408 = vmatmul.mubr.msk.bf16.gmra.mxu0 %vm444_vm3, %v11149_v43  ;;  %v4450_v44 = vpop.f32.mrf.mxu1  ;;  %8486 = vmatmul.mubr.msk.bf16.gmra.mxu1 %vm444_vm3, %v11154_v59  ;;  %v11173_v43 = vld [vmem:[%s8905_s27 + $0x198] sm:$0xff]  }
 0x40c   : > { %v4239_v13 = vrot.slane %v4090_v57, 2  ;;  %8411 = vmatprep.mubr.msk.bf16.mxu0 %vm8841_vm2, %v11969_v19  ;;  %v4598_v11 = vrot.slane %v4450_v44, 2  ;;  %8489 = vmatprep.mubr.msk.bf16.mxu1 %vm8841_vm2, %v11969_v19  ;;  %12073 = vst [vmem:[#allocation19_spill] sm:$0xff] %v11173_v43 }
 0x40d   : > { %v11160_v30 = vadd.f32 %v4597_v50, %v4327_v22  ;;  %v8233_v37 = vpop.f32.mrf.mxu0  ;;  %v8311_v26 = vpop.f32.mrf.mxu1 }
 0x40e   : > { %v4240_v29 = vsel %vm4211_vm5, %v4237_v25, %v4239_v13  ;;  %v4599_v9 = vsel %vm4211_vm5, %v4596_v33, %v4598_v11 }
 0x40f   : > { %v4328_v38 = vadd.f32 %v4240_v29, %v10753_v53  ;;  %v4093_v34 = vpop.f32.mrf.mxu0  ;;  %v4453_v28 = vpop.f32.mrf.mxu1  ;;  %v11178_v29 = vld [vmem:[%s8905_s27 + $0x22c] sm:$0xff]  }
 0x410   : > { %v4241_v2 = vrot.slane %v4093_v34, 2  ;;  %v4600_v22 = vrot.slane %v4453_v28, 2  ;;  %12074 = vst [vmem:[#allocation20_spill] sm:$0xff] %v11178_v29 }
 0x411   : > { %v11167_v57 = vadd.f32 %v4599_v9, %v4328_v38  ;;  %v8234_v50 = vpop.f32.mrf.mxu0  ;;  %v8312_v37 = vpop.f32.mrf.mxu1 }
 0x412   : > { %v4242_v44 = vsel %vm4211_vm5, %v4239_v13, %v4241_v2  ;;  %v4601_v25 = vsel %vm4211_vm5, %v4598_v11, %v4600_v22 }
 0x413   : > { %v4329_v59 = vadd.f32 %v4242_v44, %v10764_v20  ;;  %v4098_v26 = vpop.f32.mrf.mxu0  ;;  %8412 = vmatmul.mubr.msk.bf16.gmra.mxu0 %vm444_vm3, %v11173_v43  ;;  %v4458_v33 = vpop.f32.mrf.mxu1  ;;  %8490 = vmatmul.mubr.msk.bf16.gmra.mxu1 %vm444_vm3, %v11178_v29  ;;  %v11197_v43 = vld [vmem:[%s8905_s27 + $0x1a0] sm:$0xff]  }
 0x414   : > { %v4243_v53 = vrot.slane %v4098_v26, 2  ;;  %8415 = vmatprep.mubr.msk.bf16.mxu0 %vm8841_vm2, %v11969_v19  ;;  %v4602_v20 = vrot.slane %v4458_v33, 2  ;;  %8493 = vmatprep.mubr.msk.bf16.mxu1 %vm8841_vm2, %v11969_v19  ;;  %12075 = vst [vmem:[#allocation21_spill] sm:$0xff] %v11197_v43 }
 0x415   : > { %v11184_v13 = vadd.f32 %v4601_v25, %v4329_v59  ;;  %v8237_v11 = vpop.f32.mrf.mxu0  ;;  %v8315_v9 = vpop.f32.mrf.mxu1 }
 0x416   : > { %v4244_v38 = vsel %vm4211_vm5, %v4241_v2, %v4243_v53  ;;  %v4603_v28 = vsel %vm4211_vm5, %v4600_v22, %v4602_v20 }
 0x417   : > { %v4330_v34 = vadd.f32 %v4244_v38, %v10771_v1  ;;  %v4101_v50 = vpop.f32.mrf.mxu0  ;;  %v4461_v37 = vpop.f32.mrf.mxu1  ;;  %v11202_v38 = vld [vmem:[%s8905_s27 + $0x234] sm:$0xff]  }
 0x418   : > { %v4245_v44 = vrot.slane %v4101_v50, 2  ;;  %v4604_v59 = vrot.slane %v4461_v37, 2  ;;  %12076 = vst [vmem:[#allocation22_spill] sm:$0xff] %v11202_v38 }
 0x419   : > { %v11191_v26 = vadd.f32 %v4603_v28, %v4330_v34  ;;  %v8238_v25 = vpop.f32.mrf.mxu0  ;;  %v8316_v11 = vpop.f32.mrf.mxu1 }
 0x41a   : > { %v4246_v33 = vsel %vm4211_vm5, %v4243_v53, %v4245_v44  ;;  %v4605_v2 = vsel %vm4211_vm5, %v4602_v20, %v4604_v59 }
 0x41b   : > { %v4331_v29 = vadd.f32 %v4246_v33, %v10782_v23  ;;  %v4106_v9 = vpop.f32.mrf.mxu0  ;;  %8416 = vmatmul.mubr.msk.bf16.gmra.mxu0 %vm444_vm3, %v11197_v43  ;;  %v4466_v22 = vpop.f32.mrf.mxu1  ;;  %8494 = vmatmul.mubr.msk.bf16.gmra.mxu1 %vm444_vm3, %v11202_v38  ;;  %v11221_v43 = vld [vmem:[%s8905_s27 + $0x1a8] sm:$0xff]  }
 0x41c   : > { %v4247_v1 = vrot.slane %v4106_v9, 2  ;;  %8419 = vmatprep.mubr.msk.bf16.mxu0 %vm8841_vm2, %v11969_v19  ;;  %v4606_v23 = vrot.slane %v4466_v22, 2  ;;  %8497 = vmatprep.mubr.msk.bf16.mxu1 %vm8841_vm2, %v11969_v19  ;;  %12077 = vst [vmem:[#allocation23_spill] sm:$0xff] %v11221_v43 }
 0x41d   : > { %v11208_v53 = vadd.f32 %v4605_v2, %v4331_v29  ;;  %v8241_v20 = vpop.f32.mrf.mxu0  ;;  %v8319_v28 = vpop.f32.mrf.mxu1 }
 0x41e   : > { %v4248_v34 = vsel %vm4211_vm5, %v4245_v44, %v4247_v1  ;;  %v4607_v37 = vsel %vm4211_vm5, %v4604_v59, %v4606_v23 }
 0x41f   : > { %v4332_v50 = vadd.f32 %v4248_v34, %v10789_v63  ;;  %v4109_v25 = vpop.f32.mrf.mxu0  ;;  %v4469_v11 = vpop.f32.mrf.mxu1  ;;  %v11226_v34 = vld [vmem:[%s8905_s27 + $0x23c] sm:$0xff]  }
 0x420   : > { %v4249_v33 = vrot.slane %v4109_v25, 2  ;;  %v4608_v29 = vrot.slane %v4469_v11, 2  ;;  %12078 = vst [vmem:[#allocation24_spill] sm:$0xff] %v11226_v34 }
 0x421   : > { %v11215_v9 = vadd.f32 %v4607_v37, %v4332_v50  ;;  %v8242_v2 = vpop.f32.mrf.mxu0  ;;  %v8320_v20 = vpop.f32.mrf.mxu1 }
 0x422   : > { %v4250_v22 = vsel %vm4211_vm5, %v4247_v1, %v4249_v33  ;;  %v4609_v44 = vsel %vm4211_vm5, %v4606_v23, %v4608_v29 }
 0x423   : > { %v4333_v38 = vadd.f32 %v4250_v22, %v10800_v10  ;;  %v4114_v28 = vpop.f32.mrf.mxu0  ;;  %8420 = vmatmul.mubr.msk.bf16.gmra.mxu0 %vm444_vm3, %v11221_v43  ;;  %v4474_v59 = vpop.f32.mrf.mxu1  ;;  %8498 = vmatmul.mubr.msk.bf16.gmra.mxu1 %vm444_vm3, %v11226_v34  ;;  %v11245_v43 = vld [vmem:[%s8905_s27 + $0x1b0] sm:$0xff]  }
 0x424   : > { %v4251_v63 = vrot.slane %v4114_v28, 2  ;;  %8423 = vmatprep.mubr.msk.bf16.mxu0 %vm8841_vm2, %v11969_v19  ;;  %v4610_v10 = vrot.slane %v4474_v59, 2  ;;  %8501 = vmatprep.mubr.msk.bf16.mxu1 %vm8841_vm2, %v11969_v19  ;;  %12079 = vst [vmem:[#allocation25_spill] sm:$0xff] %v11245_v43 }
 0x425   : > { %v11232_v1 = vadd.f32 %v4609_v44, %v4333_v38  ;;  %v8245_v23 = vpop.f32.mrf.mxu0  ;;  %v8323_v37 = vpop.f32.mrf.mxu1 }
 0x426   : > { %v4252_v50 = vsel %vm4211_vm5, %v4249_v33, %v4251_v63  ;;  %v4611_v11 = vsel %vm4211_vm5, %v4608_v29, %v4610_v10 }
 0x427   : > { %v4334_v25 = vadd.f32 %v4252_v50, %v10807_v15  ;;  %v4117_v2 = vpop.f32.mrf.mxu0  ;;  %v4477_v20 = vpop.f32.mrf.mxu1  ;;  %v11250_v50 = vld [vmem:[%s8905_s27 + $0x244] sm:$0xff]  }
 0x428   : > { %v4253_v22 = vrot.slane %v4117_v2, 2  ;;  %v4612_v38 = vrot.slane %v4477_v20, 2  ;;  %12080 = vst [vmem:[#allocation26_spill] sm:$0xff] %v11250_v50 }
 0x429   : > { %v11239_v28 = vadd.f32 %v4611_v11, %v4334_v25  ;;  %v8246_v44 = vpop.f32.mrf.mxu0  ;;  %v8324_v23 = vpop.f32.mrf.mxu1 }
 0x42a   : > { %v4254_v59 = vsel %vm4211_vm5, %v4251_v63, %v4253_v22  ;;  %v4613_v33 = vsel %vm4211_vm5, %v4610_v10, %v4612_v38 }
 0x42b   : > { %v4335_v34 = vadd.f32 %v4254_v59, %v10818_v51  ;;  %v4122_v37 = vpop.f32.mrf.mxu0  ;;  %8424 = vmatmul.mubr.msk.bf16.gmra.mxu0 %vm444_vm3, %v11245_v43  ;;  %v4482_v29 = vpop.f32.mrf.mxu1  ;;  %8502 = vmatmul.mubr.msk.bf16.gmra.mxu1 %vm444_vm3, %v11250_v50  ;;  %v11269_v43 = vld [vmem:[%s8905_s27 + $0x1b8] ss:$0 sps:$4 sm:$0x11]  }
 0x42c   : > { %v4255_v15 = vrot.slane %v4122_v37, 2  ;;  %8427 = vmatprep.mubr.msk.bf16.mxu0 %vm8841_vm2, %v11969_v19  ;;  %v4614_v51 = vrot.slane %v4482_v29, 2  ;;  %8505 = vmatprep.mubr.msk.bf16.mxu1 %vm8841_vm2, %v11969_v19  ;;  %12081 = vst [vmem:[#allocation27_spill] sm:$0xff] %v11269_v43 }
 0x42d   : > { %v11256_v63 = vadd.f32 %v4613_v33, %v4335_v34  ;;  %v8249_v10 = vpop.f32.mrf.mxu0  ;;  %v8327_v11 = vpop.f32.mrf.mxu1 }
 0x42e   : > { %v4256_v25 = vsel %vm4211_vm5, %v4253_v22, %v4255_v15  ;;  %v4615_v20 = vsel %vm4211_vm5, %v4612_v38, %v4614_v51 }
 0x42f   : > { %v4336_v2 = vadd.f32 %v4256_v25, %v10825_v12  ;;  %v4125_v44 = vpop.f32.mrf.mxu0  ;;  %v4485_v23 = vpop.f32.mrf.mxu1  ;;  %v11274_v25 = vld [vmem:[%s8905_s27 + $0x24c] ss:$0 sps:$4 sm:$0x11]  }
 0x430   : > { %v4257_v59 = vrot.slane %v4125_v44, 2  ;;  %v4616_v34 = vrot.slane %v4485_v23, 2  ;;  %12082 = vst [vmem:[#allocation29_spill] sm:$0xff] %v11274_v25 }
 0x431   : > { %v11263_v37 = vadd.f32 %v4615_v20, %v4336_v2  ;;  %v8250_v33 = vpop.f32.mrf.mxu0  ;;  %v8328_v10 = vpop.f32.mrf.mxu1 }
 0x432   : > { %v4258_v29 = vsel %vm4211_vm5, %v4255_v15, %v4257_v59  ;;  %v4617_v22 = vsel %vm4211_vm5, %v4614_v51, %v4616_v34 }
 0x433   : > { %v4337_v50 = vadd.f32 %v4258_v29, %v10836_v7  ;;  %v4130_v11 = vpop.f32.mrf.mxu0  ;;  %8428 = vmatmul.mubr.msk.bf16.gmra.mxu0 %vm444_vm3, %v11269_v43  ;;  %v4490_v38 = vpop.f32.mrf.mxu1  ;;  %8506 = vmatmul.mubr.msk.bf16.gmra.mxu1 %vm444_vm3, %v11274_v25 }
 0x434   : > { %v4259_v12 = vrot.slane %v4130_v11, 2  ;;  %8511 = vmatprep.mubr.msk.bf16.mxu0 %vm8841_vm2, %v11969_v19  ;;  %v4618_v7 = vrot.slane %v4490_v38, 2  ;;  %8589 = vmatprep.mubr.msk.bf16.mxu1 %vm8841_vm2, %v11969_v19 }
 0x435   : > { %v11280_v15 = vadd.f32 %v4617_v22, %v4337_v50  ;;  %v8253_v51 = vpop.f32.mrf.mxu0  ;;  %v8331_v20 = vpop.f32.mrf.mxu1 }
 0x436   : > { %v4260_v2 = vsel %vm4211_vm5, %v4257_v59, %v4259_v12  ;;  %v4619_v23 = vsel %vm4211_vm5, %v4616_v34, %v4618_v7 }
 0x437   : > { %v4338_v44 = vadd.f32 %v4260_v2, %v10850_v40  ;;  %v4133_v33 = vpop.f32.mrf.mxu0  ;;  %v4493_v10 = vpop.f32.mrf.mxu1 }
 0x438   : > { %v4261_v29 = vrot.slane %v4133_v33, 2  ;;  %v4620_v25 = vrot.slane %v4493_v10, 2 }
 0x439   : > { %v11287_v11 = vadd.f32 %v4619_v23, %v4338_v44  ;;  %v8254_v50 = vpop.f32.mrf.mxu0  ;;  %v8332_v38 = vpop.f32.mrf.mxu1 }
 0x43a   : > { %v4262_v22 = vsel %vm4211_vm5, %v4259_v12, %v4261_v29  ;;  %v4621_v43 = vsel %vm4211_vm5, %v4618_v7, %v4620_v25 }
 0x43b   : > { %v4339_v51 = vadd.f32 %v4262_v22, %v10866_v5  ;;  %v4138_v59 = vpop.f32.mrf.mxu0  ;;  %8512 = vmatmul.mubr.msk.bf16.vlgmr.msra.gmra.mxu0 %vm444_vm3, %v10857_v18  ;;  %v4498_v34 = vpop.f32.mrf.mxu1  ;;  %8590 = vmatmul.mubr.msk.bf16.vlgmr.msra.gmra.mxu1 %vm444_vm3, %v10862_v0 }
 0x43c   : > { %v4263_v40 = vrot.slane %v4138_v59, 2  ;;  %8515 = vmatprep.mubr.msk.bf16.mxu0 %vm8841_vm2, %v11969_v19  ;;  %v4622_v12 = vrot.slane %v4498_v34, 2  ;;  %8593 = vmatprep.mubr.msk.bf16.mxu1 %vm8841_vm2, %v11969_v19 }
 0x43d   : > { %v11298_v2 = vadd.f32 %v4621_v43, %v4339_v51  ;;  %v8257_v20 = vpop.f32.mrf.mxu0  ;;  %v8335_v7 = vpop.f32.mrf.mxu1 }
 0x43e   : > { %v4264_v5 = vsel %vm4211_vm5, %v4261_v29, %v4263_v40  ;;  %v4623_v44 = vsel %vm4211_vm5, %v4620_v25, %v4622_v12 }
 0x43f   : > { %v4340_v18 = vadd.f32 %v4264_v5, %v10875_v39  ;;  %v4141_v23 = vpop.f32.mrf.mxu0  ;;  %v4501_v0 = vpop.f32.mrf.mxu1 }
 0x440   : > { %v4265_v33 = vrot.slane %v4141_v23, 2  ;;  %v4624_v50 = vrot.slane %v4501_v0, 2 }
 0x441   : > { %v11305_v10 = vadd.f32 %v4623_v44, %v4340_v18  ;;  %v8258_v43 = vpop.f32.mrf.mxu0  ;;  %v8336_v38 = vpop.f32.mrf.mxu1 }
 0x442   : > { %v4266_v22 = vsel %vm4211_vm5, %v4263_v40, %v4265_v33  ;;  %v4625_v59 = vsel %vm4211_vm5, %v4622_v12, %v4624_v50 }
 0x443   : > { %v4341_v51 = vadd.f32 %v4266_v22, %v10892_v8  ;;  %v4146_v29 = vpop.f32.mrf.mxu0  ;;  %8516 = vmatmul.mubr.msk.bf16.gmra.mxu0 %vm444_vm3, %v10881_v14  ;;  %v4506_v25 = vpop.f32.mrf.mxu1  ;;  %8594 = vmatmul.mubr.msk.bf16.gmra.mxu1 %vm444_vm3, %v10886_v56 }
 0x444   : > { %v4267_v39 = vrot.slane %v4146_v29, 2  ;;  %8519 = vmatprep.mubr.msk.bf16.mxu0 %vm8841_vm2, %v11969_v19  ;;  %v4626_v40 = vrot.slane %v4506_v25, 2  ;;  %8597 = vmatprep.mubr.msk.bf16.mxu1 %vm8841_vm2, %v11969_v19 }
 0x445   : > { %v11316_v34 = vadd.f32 %v4625_v59, %v4341_v51  ;;  %v8261_v20 = vpop.f32.mrf.mxu0  ;;  %v8339_v12 = vpop.f32.mrf.mxu1 }
 0x446   : > { %v4268_v8 = vsel %vm4211_vm5, %v4265_v33, %v4267_v39  ;;  %v4627_v5 = vsel %vm4211_vm5, %v4624_v50, %v4626_v40 }
 0x447   : > { %v4342_v14 = vadd.f32 %v4268_v8, %v10899_v42  ;;  %v4149_v7 = vpop.f32.mrf.mxu0  ;;  %v4509_v56 = vpop.f32.mrf.mxu1 }
 0x448   : > { %v4269_v18 = vrot.slane %v4149_v7, 2  ;;  %v4628_v23 = vrot.slane %v4509_v56, 2 }
 0x449   : > { %v11323_v44 = vadd.f32 %v4627_v5, %v4342_v14  ;;  %v8262_v0 = vpop.f32.mrf.mxu0  ;;  %v8340_v22 = vpop.f32.mrf.mxu1 }
 0x44a   : > { %v4270_v43 = vsel %vm4211_vm5, %v4267_v39, %v4269_v18  ;;  %v4629_v51 = vsel %vm4211_vm5, %v4626_v40, %v4628_v23 }
 0x44b   : > { %v4343_v38 = vadd.f32 %v4270_v43, %v10916_v32  ;;  %v4154_v33 = vpop.f32.mrf.mxu0  ;;  %8520 = vmatmul.mubr.msk.bf16.gmra.mxu0 %vm444_vm3, %v10905_v46  ;;  %v4514_v50 = vpop.f32.mrf.mxu1  ;;  %8598 = vmatmul.mubr.msk.bf16.gmra.mxu1 %vm444_vm3, %v10910_v47 }
 0x44c   : > { %v4271_v42 = vrot.slane %v4154_v33, 2  ;;  %8523 = vmatprep.mubr.msk.bf16.mxu0 %vm8841_vm2, %v11969_v19  ;;  %v4630_v29 = vrot.slane %v4514_v50, 2  ;;  %8601 = vmatprep.mubr.msk.bf16.mxu1 %vm8841_vm2, %v11969_v19 }
 0x44d   : > { %v11334_v59 = vadd.f32 %v4629_v51, %v4343_v38  ;;  %v8265_v39 = vpop.f32.mrf.mxu0  ;;  %v8343_v25 = vpop.f32.mrf.mxu1 }
 0x44e   : > { %v4272_v32 = vsel %vm4211_vm5, %v4269_v18, %v4271_v42  ;;  %v4631_v40 = vsel %vm4211_vm5, %v4628_v23, %v4630_v29 }
 0x44f   : > { %v4344_v46 = vadd.f32 %v4272_v32, %v10923_v6  ;;  %v4157_v20 = vpop.f32.mrf.mxu0  ;;  %v4517_v47 = vpop.f32.mrf.mxu1 }
 0x450   : > { %v4273_v8 = vrot.slane %v4157_v20, 2  ;;  %v4632_v14 = vrot.slane %v4517_v47, 2 }
 0x451   : > { %v11341_v12 = vadd.f32 %v4631_v40, %v4344_v46  ;;  %v8266_v5 = vpop.f32.mrf.mxu0  ;;  %v8344_v56 = vpop.f32.mrf.mxu1 }
 0x452   : > { %v4274_v7 = vsel %vm4211_vm5, %v4271_v42, %v4273_v8  ;;  %v4633_v43 = vsel %vm4211_vm5, %v4630_v29, %v4632_v14 }
 0x453   : > { %v4345_v0 = vadd.f32 %v4274_v7, %v10940_v21  ;;  %v4162_v18 = vpop.f32.mrf.mxu0  ;;  %8524 = vmatmul.mubr.msk.bf16.gmra.mxu0 %vm444_vm3, %v10929_v16  ;;  %v4522_v23 = vpop.f32.mrf.mxu1  ;;  %8602 = vmatmul.mubr.msk.bf16.gmra.mxu1 %vm444_vm3, %v10934_v41 }
 0x454   : > { %v4275_v6 = vrot.slane %v4162_v18, 2  ;;  %8527 = vmatprep.mubr.msk.bf16.mxu0 %vm8841_vm2, %v11969_v19  ;;  %v4634_v38 = vrot.slane %v4522_v23, 2  ;;  %8605 = vmatprep.mubr.msk.bf16.mxu1 %vm8841_vm2, %v11969_v19 }
 0x455   : > { %v11352_v22 = vadd.f32 %v4633_v43, %v4345_v0  ;;  %v8269_v51 = vpop.f32.mrf.mxu0  ;;  %v8347_v33 = vpop.f32.mrf.mxu1 }
 0x456   : > { %v4276_v21 = vsel %vm4211_vm5, %v4273_v8, %v4275_v6  ;;  %v4635_v42 = vsel %vm4211_vm5, %v4632_v14, %v4634_v38 }
 0x457   : > { %v4346_v16 = vadd.f32 %v4276_v21, %v10947_v49  ;;  %v4165_v50 = vpop.f32.mrf.mxu0  ;;  %v4525_v41 = vpop.f32.mrf.mxu1 }
 0x458   : > { %v4277_v29 = vrot.slane %v4165_v50, 2  ;;  %v4636_v32 = vrot.slane %v4525_v41, 2 }
 0x459   : > { %v11359_v39 = vadd.f32 %v4635_v42, %v4346_v16  ;;  %v8270_v25 = vpop.f32.mrf.mxu0  ;;  %v8348_v40 = vpop.f32.mrf.mxu1 }
 0x45a   : > { %v4278_v46 = vsel %vm4211_vm5, %v4275_v6, %v4277_v29  ;;  %v4637_v47 = vsel %vm4211_vm5, %v4634_v38, %v4636_v32  ;;  %v12084_v25 = vld [vmem:[#allocation3_spill] sm:$0xff] }
 0x45b   : > { %v4347_v20 = vadd.f32 %v4278_v46, %v10964_v61  ;;  %v4170_v8 = vpop.f32.mrf.mxu0  ;;  %8528 = vmatmul.mubr.msk.bf16.gmra.mxu0 %vm444_vm3, %v10953_v31  ;;  %v4530_v14 = vpop.f32.mrf.mxu1  ;;  %8606 = vmatmul.mubr.msk.bf16.gmra.mxu1 %vm444_vm3, %v10958_v48 }
 0x45c   : > { %v4279_v49 = vrot.slane %v4170_v8, 2  ;;  %8531 = vmatprep.mubr.msk.bf16.mxu0 %vm8841_vm2, %v11969_v19  ;;  %v4638_v7 = vrot.slane %v4530_v14, 2  ;;  %8609 = vmatprep.mubr.msk.bf16.mxu1 %vm8841_vm2, %v11969_v19 }
 0x45d   : > { %v11370_v5 = vadd.f32 %v4637_v47, %v4347_v20  ;;  %v8273_v56 = vpop.f32.mrf.mxu0  ;;  %v8351_v0 = vpop.f32.mrf.mxu1 }
 0x45e   : > { %v4280_v61 = vsel %vm4211_vm5, %v4277_v29, %v4279_v49  ;;  %v4639_v43 = vsel %vm4211_vm5, %v4636_v32, %v4638_v7  ;;  %v12083_v32 = vld [vmem:[#allocation2_spill] sm:$0xff] }
 0x45f   : > { %v4348_v31 = vadd.f32 %v4280_v61, %v10971_v54  ;;  %v4173_v18 = vpop.f32.mrf.mxu0  ;;  %v4533_v6 = vpop.f32.mrf.mxu1  ;;  %v12085_v0 = vld [vmem:[#allocation6_spill] sm:$0xff] }
 0x460   : > { %v12086_v6 = vld [vmem:[#allocation4_spill] sm:$0xff] }
 0x461   : > { %v11377_v48 = vadd.f32 %v4639_v43, %v4348_v31  ;;  %v8274_v23 = vpop.f32.mrf.mxu0  ;;  %v8352_v38 = vpop.f32.mrf.mxu1 }
 0x463   : > { %v4747_v51 = vpop.f32.mrf.mxu0  ;;  %8532 = vmatmul.mubr.msk.bf16.gmra.mxu0 %vm444_vm3, %v10974_v17  ;;  %v5106_v21 = vpop.f32.mrf.mxu1  ;;  %8610 = vmatmul.mubr.msk.bf16.gmra.mxu1 %vm444_vm3, %v10979_v35 }
 0x464   : > { %8535 = vmatprep.mubr.msk.bf16.mxu0 %vm8841_vm2, %v11969_v19  ;;  %8613 = vmatprep.mubr.msk.bf16.mxu1 %vm8841_vm2, %v11969_v19  ;;  %v12087_v51 = vld [vmem:[#allocation5_spill] sm:$0xff] }
 0x465   : > { %v8357_v54 = vpop.f32.mrf.mxu0  ;;  %v8435_v33 = vpop.f32.mrf.mxu1 }
 0x467   : > { %v4749_v16 = vpop.f32.mrf.mxu0  ;;  %v5108_v42 = vpop.f32.mrf.mxu1 }
 0x469   : > { %v8358_v50 = vpop.f32.mrf.mxu0  ;;  %v8436_v29 = vpop.f32.mrf.mxu1 }
 0x46b   : > { %v4753_v41 = vpop.f32.mrf.mxu0  ;;  %8536 = vmatmul.mubr.msk.bf16.gmra.mxu0 %vm444_vm3, %v12083_v32  ;;  %v5112_v17 = vpop.f32.mrf.mxu1  ;;  %8614 = vmatmul.mubr.msk.bf16.gmra.mxu1 %vm444_vm3, %v12084_v25 }
 0x46c   : > { %8539 = vmatprep.mubr.msk.bf16.mxu0 %vm8841_vm2, %v11969_v19  ;;  %8617 = vmatprep.mubr.msk.bf16.mxu1 %vm8841_vm2, %v11969_v19  ;;  %v4930_v20 = vrot.slane %v4753_v41, 1  ;;  %v5289_v49 = vrot.slane %v5112_v17, 1 }
 0x46d   : > { %v8361_v35 = vpop.f32.mrf.mxu0  ;;  %v8439_v46 = vpop.f32.mrf.mxu1 }
 0x46f   : > { %v4756_v40 = vpop.f32.mrf.mxu0  ;;  %v5115_v8 = vpop.f32.mrf.mxu1 }
 0x470   : > { %v4931_v47 = vrot.slane %v4756_v40, 1  ;;  %v5290_v14 = vrot.slane %v5115_v8, 1 }
 0x471   : > { %v8362_v7 = vpop.f32.mrf.mxu0  ;;  %v8440_v61 = vpop.f32.mrf.mxu1 }
 0x472   : > { %v4932_v56 = vsel %vm1316_vm4, %v4930_v20, %v4931_v47  ;;  %v5291_v43 = vsel %vm1316_vm4, %v5289_v49, %v5290_v14  ;;  %v12088_v7 = vld [vmem:[#allocation7_spill] sm:$0xff] }
 0x473   : > { %v5033_v31 = vadd.f32 %v4932_v56, %v12085_v0  ;;  %v4761_v18 = vpop.f32.mrf.mxu0  ;;  %8540 = vmatmul.mubr.msk.bf16.gmra.mxu0 %vm444_vm3, %v12086_v6  ;;  %v5120_v38 = vpop.f32.mrf.mxu1  ;;  %8618 = vmatmul.mubr.msk.bf16.gmra.mxu1 %vm444_vm3, %v12087_v51  ;;  %v12089_v56 = vld [vmem:[#allocation8_spill] sm:$0xff] }
 0x474   : > { %v4933_v23 = vrot.slane %v4761_v18, 1  ;;  %8543 = vmatprep.mubr.msk.bf16.mxu0 %vm8841_vm2, %v11969_v19  ;;  %v5292_v54 = vrot.slane %v5120_v38, 1  ;;  %8621 = vmatprep.mubr.msk.bf16.mxu1 %vm8841_vm2, %v11969_v19 }
 0x475   : > { %v11404_v21 = vadd.f32 %v5291_v43, %v5033_v31  ;;  %v8365_v33 = vpop.f32.mrf.mxu0  ;;  %v8443_v42 = vpop.f32.mrf.mxu1 }
 0x476   : > { %v4934_v16 = vsel %vm1316_vm4, %v4931_v47, %v4933_v23  ;;  %v5293_v29 = vsel %vm1316_vm4, %v5290_v14, %v5292_v54 }
 0x477   : > { %v5034_v50 = vadd.f32 %v4934_v16, %v11023_v36  ;;  %v4764_v41 = vpop.f32.mrf.mxu0  ;;  %v5123_v17 = vpop.f32.mrf.mxu1 }
 0x478   : > { %v4935_v32 = vrot.slane %v4764_v41, 1  ;;  %v5294_v35 = vrot.slane %v5123_v17, 1  ;;  %v12090_v17 = vld [vmem:[#allocation9_spill] sm:$0xff] }
 0x479   : > { %v11411_v25 = vadd.f32 %v5293_v29, %v5034_v50  ;;  %v8366_v46 = vpop.f32.mrf.mxu0  ;;  %v8444_v20 = vpop.f32.mrf.mxu1 }
 0x47a   : > { %v4936_v40 = vsel %vm1316_vm4, %v4933_v23, %v4935_v32  ;;  %v5295_v49 = vsel %vm1316_vm4, %v5292_v54, %v5294_v35  ;;  %v12091_v46 = vld [vmem:[#allocation10_spill] sm:$0xff] }
 0x47b   : > { %v5035_v8 = vadd.f32 %v4936_v40, %v11040_v52  ;;  %v4769_v47 = vpop.f32.mrf.mxu0  ;;  %8544 = vmatmul.mubr.msk.bf16.gmra.mxu0 %vm444_vm3, %v12088_v7  ;;  %v5128_v14 = vpop.f32.mrf.mxu1  ;;  %8622 = vmatmul.mubr.msk.bf16.gmra.mxu1 %vm444_vm3, %v12089_v56 }
 0x47c   : > { %v4937_v36 = vrot.slane %v4769_v47, 1  ;;  %8547 = vmatprep.mubr.msk.bf16.mxu0 %vm8841_vm2, %v11969_v19  ;;  %v5296_v0 = vrot.slane %v5128_v14, 1  ;;  %8625 = vmatprep.mubr.msk.bf16.mxu1 %vm8841_vm2, %v11969_v19 }
 0x47d   : > { %v11422_v61 = vadd.f32 %v5295_v49, %v5035_v8  ;;  %v8369_v31 = vpop.f32.mrf.mxu0  ;;  %v8447_v43 = vpop.f32.mrf.mxu1 }
 0x47e   : > { %v4938_v52 = vsel %vm1316_vm4, %v4935_v32, %v4937_v36  ;;  %v5297_v6 = vsel %vm1316_vm4, %v5294_v35, %v5296_v0 }
 0x47f   : > { %v5036_v18 = vadd.f32 %v4938_v52, %v11047_v62  ;;  %v4772_v23 = vpop.f32.mrf.mxu0  ;;  %v5131_v51 = vpop.f32.mrf.mxu1 }
 0x480   : > { %v4939_v38 = vrot.slane %v4772_v23, 1  ;;  %v5298_v33 = vrot.slane %v5131_v51, 1  ;;  %v12092_v51 = vld [vmem:[#allocation11_spill] sm:$0xff] }
 0x481   : > { %v11429_v54 = vadd.f32 %v5297_v6, %v5036_v18  ;;  %v8370_v16 = vpop.f32.mrf.mxu0  ;;  %v8448_v50 = vpop.f32.mrf.mxu1 }
 0x482   : > { %v4940_v42 = vsel %vm1316_vm4, %v4937_v36, %v4939_v38  ;;  %v5299_v41 = vsel %vm1316_vm4, %v5296_v0, %v5298_v33  ;;  %v12093_v16 = vld [vmem:[#allocation12_spill] sm:$0xff] }
 0x483   : > { %v5037_v29 = vadd.f32 %v4940_v42, %v11064_v55  ;;  %v4777_v32 = vpop.f32.mrf.mxu0  ;;  %8548 = vmatmul.mubr.msk.bf16.gmra.mxu0 %vm444_vm3, %v12090_v17  ;;  %v5136_v35 = vpop.f32.mrf.mxu1  ;;  %8626 = vmatmul.mubr.msk.bf16.gmra.mxu1 %vm444_vm3, %v12091_v46 }
 0x484   : > { %v4941_v62 = vrot.slane %v4777_v32, 1  ;;  %8551 = vmatprep.mubr.msk.bf16.mxu0 %vm8841_vm2, %v11969_v19  ;;  %v5300_v20 = vrot.slane %v5136_v35, 1  ;;  %8629 = vmatprep.mubr.msk.bf16.mxu1 %vm8841_vm2, %v11969_v19 }
 0x485   : > { %v11440_v40 = vadd.f32 %v5299_v41, %v5037_v29  ;;  %v8373_v8 = vpop.f32.mrf.mxu0  ;;  %v8451_v49 = vpop.f32.mrf.mxu1 }
 0x486   : > { %v4942_v55 = vsel %vm1316_vm4, %v4939_v38, %v4941_v62  ;;  %v5301_v7 = vsel %vm1316_vm4, %v5298_v33, %v5300_v20 }
 0x487   : > { %v5038_v47 = vadd.f32 %v4942_v55, %v11071_v60  ;;  %v4780_v36 = vpop.f32.mrf.mxu0  ;;  %v5139_v56 = vpop.f32.mrf.mxu1 }
 0x488   : > { %v4943_v14 = vrot.slane %v4780_v36, 1  ;;  %v5302_v31 = vrot.slane %v5139_v56, 1  ;;  %v12094_v56 = vld [vmem:[#allocation13_spill] sm:$0xff] }
 0x489   : > { %v11447_v0 = vadd.f32 %v5301_v7, %v5038_v47  ;;  %v8374_v52 = vpop.f32.mrf.mxu0  ;;  %v8452_v18 = vpop.f32.mrf.mxu1 }
 0x48a   : > { %v4944_v43 = vsel %vm1316_vm4, %v4941_v62, %v4943_v14  ;;  %v5303_v23 = vsel %vm1316_vm4, %v5300_v20, %v5302_v31  ;;  %v12095_v52 = vld [vmem:[#allocation14_spill] sm:$0xff] }
 0x48b   : > { %v5039_v6 = vadd.f32 %v4944_v43, %v11088_v4  ;;  %v4785_v38 = vpop.f32.mrf.mxu0  ;;  %8552 = vmatmul.mubr.msk.bf16.gmra.mxu0 %vm444_vm3, %v12092_v51  ;;  %v5144_v33 = vpop.f32.mrf.mxu1  ;;  %8630 = vmatmul.mubr.msk.bf16.gmra.mxu1 %vm444_vm3, %v12093_v16 }
 0x48c   : > { %v4945_v60 = vrot.slane %v4785_v38, 1  ;;  %8555 = vmatprep.mubr.msk.bf16.mxu0 %vm8841_vm2, %v11969_v19  ;;  %v5304_v50 = vrot.slane %v5144_v33, 1  ;;  %8633 = vmatprep.mubr.msk.bf16.mxu1 %vm8841_vm2, %v11969_v19 }
 0x48d   : > { %v11458_v42 = vadd.f32 %v5303_v23, %v5039_v6  ;;  %v8377_v29 = vpop.f32.mrf.mxu0  ;;  %v8455_v41 = vpop.f32.mrf.mxu1 }
 0x48e   : > { %v4946_v4 = vsel %vm1316_vm4, %v4943_v14, %v4945_v60  ;;  %v5305_v17 = vsel %vm1316_vm4, %v5302_v31, %v5304_v50 }
 0x48f   : > { %v5040_v32 = vadd.f32 %v4946_v4, %v11095_v58  ;;  %v4788_v62 = vpop.f32.mrf.mxu0  ;;  %v5147_v46 = vpop.f32.mrf.mxu1 }
 0x490   : > { %v4947_v35 = vrot.slane %v4788_v62, 1  ;;  %v5306_v8 = vrot.slane %v5147_v46, 1  ;;  %v12096_v46 = vld [vmem:[#allocation15_spill] sm:$0xff] }
 0x491   : > { %v11465_v20 = vadd.f32 %v5305_v17, %v5040_v32  ;;  %v8378_v55 = vpop.f32.mrf.mxu0  ;;  %v8456_v47 = vpop.f32.mrf.mxu1 }
 0x492   : > { %v4948_v49 = vsel %vm1316_vm4, %v4945_v60, %v4947_v35  ;;  %v5307_v36 = vsel %vm1316_vm4, %v5304_v50, %v5306_v8  ;;  %v12097_v55 = vld [vmem:[#allocation16_spill] sm:$0xff] }
 0x493   : > { %v5041_v7 = vadd.f32 %v4948_v49, %v11112_v24  ;;  %v4793_v14 = vpop.f32.mrf.mxu0  ;;  %8556 = vmatmul.mubr.msk.bf16.gmra.mxu0 %vm444_vm3, %v12094_v56  ;;  %v5152_v31 = vpop.f32.mrf.mxu1  ;;  %8634 = vmatmul.mubr.msk.bf16.gmra.mxu1 %vm444_vm3, %v12095_v52 }
 0x494   : > { %v4949_v58 = vrot.slane %v4793_v14, 1  ;;  %8559 = vmatprep.mubr.msk.bf16.mxu0 %vm8841_vm2, %v11969_v19  ;;  %v5308_v18 = vrot.slane %v5152_v31, 1  ;;  %8637 = vmatprep.mubr.msk.bf16.mxu1 %vm8841_vm2, %v11969_v19 }
 0x495   : > { %v11476_v43 = vadd.f32 %v5307_v36, %v5041_v7  ;;  %v8381_v6 = vpop.f32.mrf.mxu0  ;;  %v8459_v23 = vpop.f32.mrf.mxu1 }
 0x496   : > { %v4950_v24 = vsel %vm1316_vm4, %v4947_v35, %v4949_v58  ;;  %v5309_v51 = vsel %vm1316_vm4, %v5306_v8, %v5308_v18 }
 0x497   : > { %v5042_v38 = vadd.f32 %v4950_v24, %v11119_v27  ;;  %v4796_v60 = vpop.f32.mrf.mxu0  ;;  %v5155_v16 = vpop.f32.mrf.mxu1 }
 0x498   : > { %v4951_v33 = vrot.slane %v4796_v60, 1  ;;  %v5310_v29 = vrot.slane %v5155_v16, 1  ;;  %v12098_v16 = vld [vmem:[#allocation17_spill] sm:$0xff] }
 0x499   : > { %v11483_v50 = vadd.f32 %v5309_v51, %v5042_v38  ;;  %v8382_v4 = vpop.f32.mrf.mxu0  ;;  %v8460_v32 = vpop.f32.mrf.mxu1 }
 0x49a   : > { %v4952_v41 = vsel %vm1316_vm4, %v4949_v58, %v4951_v33  ;;  %v5311_v62 = vsel %vm1316_vm4, %v5308_v18, %v5310_v29  ;;  %v12099_v4 = vld [vmem:[#allocation18_spill] sm:$0xff] }
 0x49b   : > { %v5043_v17 = vadd.f32 %v4952_v41, %v11136_v45  ;;  %v4801_v35 = vpop.f32.mrf.mxu0  ;;  %8560 = vmatmul.mubr.msk.bf16.gmra.mxu0 %vm444_vm3, %v12096_v46  ;;  %v5160_v8 = vpop.f32.mrf.mxu1  ;;  %8638 = vmatmul.mubr.msk.bf16.gmra.mxu1 %vm444_vm3, %v12097_v55 }
 0x49c   : > { %v4953_v27 = vrot.slane %v4801_v35, 1  ;;  %8563 = vmatprep.mubr.msk.bf16.mxu0 %vm8841_vm2, %v11969_v19  ;;  %v5312_v47 = vrot.slane %v5160_v8, 1  ;;  %8641 = vmatprep.mubr.msk.bf16.mxu1 %vm8841_vm2, %v11969_v19 }
 0x49d   : > { %v11494_v49 = vadd.f32 %v5311_v62, %v5043_v17  ;;  %v8385_v7 = vpop.f32.mrf.mxu0  ;;  %v8463_v36 = vpop.f32.mrf.mxu1 }
 0x49e   : > { %v4954_v45 = vsel %vm1316_vm4, %v4951_v33, %v4953_v27  ;;  %v5313_v56 = vsel %vm1316_vm4, %v5310_v29, %v5312_v47 }
 0x49f   : > { %v5044_v14 = vadd.f32 %v4954_v45, %v11143_v3  ;;  %v4804_v58 = vpop.f32.mrf.mxu0  ;;  %v5163_v52 = vpop.f32.mrf.mxu1 }
 0x4a0   : > { %v4955_v31 = vrot.slane %v4804_v58, 1  ;;  %v5314_v6 = vrot.slane %v5163_v52, 1  ;;  %v12100_v52 = vld [vmem:[#allocation19_spill] sm:$0xff] }
 0x4a1   : > { %v11501_v18 = vadd.f32 %v5313_v56, %v5044_v14  ;;  %v8386_v24 = vpop.f32.mrf.mxu0  ;;  %v8464_v38 = vpop.f32.mrf.mxu1 }
 0x4a2   : > { %v4956_v23 = vsel %vm1316_vm4, %v4953_v27, %v4955_v31  ;;  %v5315_v60 = vsel %vm1316_vm4, %v5312_v47, %v5314_v6  ;;  %v12101_v24 = vld [vmem:[#allocation20_spill] sm:$0xff] }
 0x4a3   : > { %v5045_v51 = vadd.f32 %v4956_v23, %v11160_v30  ;;  %v4809_v33 = vpop.f32.mrf.mxu0  ;;  %8564 = vmatmul.mubr.msk.bf16.gmra.mxu0 %vm444_vm3, %v12098_v16  ;;  %v5168_v29 = vpop.f32.mrf.mxu1  ;;  %8642 = vmatmul.mubr.msk.bf16.gmra.mxu1 %vm444_vm3, %v12099_v4 }
 0x4a4   : > { %v4957_v3 = vrot.slane %v4809_v33, 1  ;;  %8567 = vmatprep.mubr.msk.bf16.mxu0 %vm8841_vm2, %v11969_v19  ;;  %v5316_v32 = vrot.slane %v5168_v29, 1  ;;  %8645 = vmatprep.mubr.msk.bf16.mxu1 %vm8841_vm2, %v11969_v19 }
 0x4a5   : > { %v11512_v41 = vadd.f32 %v5315_v60, %v5045_v51  ;;  %v8389_v17 = vpop.f32.mrf.mxu0  ;;  %v8467_v62 = vpop.f32.mrf.mxu1 }
 0x4a6   : > { %v4958_v30 = vsel %vm1316_vm4, %v4955_v31, %v4957_v3  ;;  %v5317_v46 = vsel %vm1316_vm4, %v5314_v6, %v5316_v32 }
 0x4a7   : > { %v5046_v35 = vadd.f32 %v4958_v30, %v11167_v57  ;;  %v4812_v27 = vpop.f32.mrf.mxu0  ;;  %v5171_v55 = vpop.f32.mrf.mxu1 }
 0x4a8   : > { %v4959_v8 = vrot.slane %v4812_v27, 1  ;;  %v5318_v7 = vrot.slane %v5171_v55, 1  ;;  %v12102_v55 = vld [vmem:[#allocation21_spill] sm:$0xff] }
 0x4a9   : > { %v11519_v47 = vadd.f32 %v5317_v46, %v5046_v35  ;;  %v8390_v45 = vpop.f32.mrf.mxu0  ;;  %v8468_v14 = vpop.f32.mrf.mxu1 }
 0x4aa   : > { %v4960_v36 = vsel %vm1316_vm4, %v4957_v3, %v4959_v8  ;;  %v5319_v58 = vsel %vm1316_vm4, %v5316_v32, %v5318_v7  ;;  %v12103_v45 = vld [vmem:[#allocation22_spill] sm:$0xff] }
 0x4ab   : > { %v5047_v56 = vadd.f32 %v4960_v36, %v11184_v13  ;;  %v4817_v31 = vpop.f32.mrf.mxu0  ;;  %8568 = vmatmul.mubr.msk.bf16.gmra.mxu0 %vm444_vm3, %v12100_v52  ;;  %v5176_v6 = vpop.f32.mrf.mxu1  ;;  %8646 = vmatmul.mubr.msk.bf16.gmra.mxu1 %vm444_vm3, %v12101_v24 }
 0x4ac   : > { %v4961_v57 = vrot.slane %v4817_v31, 1  ;;  %8571 = vmatprep.mubr.msk.bf16.mxu0 %vm8841_vm2, %v11969_v19  ;;  %v5320_v38 = vrot.slane %v5176_v6, 1  ;;  %8649 = vmatprep.mubr.msk.bf16.mxu1 %vm8841_vm2, %v11969_v19 }
 0x4ad   : > { %v11530_v23 = vadd.f32 %v5319_v58, %v5047_v56  ;;  %v8393_v51 = vpop.f32.mrf.mxu0  ;;  %v8471_v60 = vpop.f32.mrf.mxu1 }
 0x4ae   : > { %v4962_v13 = vsel %vm1316_vm4, %v4959_v8, %v4961_v57  ;;  %v5321_v16 = vsel %vm1316_vm4, %v5318_v7, %v5320_v38 }
 0x4af   : > { %v5048_v33 = vadd.f32 %v4962_v13, %v11191_v26  ;;  %v4820_v3 = vpop.f32.mrf.mxu0  ;;  %v5179_v4 = vpop.f32.mrf.mxu1 }
 0x4b0   : > { %v4963_v29 = vrot.slane %v4820_v3, 1  ;;  %v5322_v17 = vrot.slane %v5179_v4, 1  ;;  %v12104_v4 = vld [vmem:[#allocation23_spill] sm:$0xff] }
 0x4b1   : > { %v11537_v32 = vadd.f32 %v5321_v16, %v5048_v33  ;;  %v8394_v30 = vpop.f32.mrf.mxu0  ;;  %v8472_v35 = vpop.f32.mrf.mxu1 }
 0x4b2   : > { %v4964_v62 = vsel %vm1316_vm4, %v4961_v57, %v4963_v29  ;;  %v5323_v27 = vsel %vm1316_vm4, %v5320_v38, %v5322_v17  ;;  %v12105_v30 = vld [vmem:[#allocation24_spill] sm:$0xff] }
 0x4b3   : > { %v5049_v46 = vadd.f32 %v4964_v62, %v11208_v53  ;;  %v4825_v8 = vpop.f32.mrf.mxu0  ;;  %8572 = vmatmul.mubr.msk.bf16.gmra.mxu0 %vm444_vm3, %v12102_v55  ;;  %v5184_v7 = vpop.f32.mrf.mxu1  ;;  %8650 = vmatmul.mubr.msk.bf16.gmra.mxu1 %vm444_vm3, %v12103_v45 }
 0x4b4   : > { %v4965_v26 = vrot.slane %v4825_v8, 1  ;;  %8575 = vmatprep.mubr.msk.bf16.mxu0 %vm8841_vm2, %v11969_v19  ;;  %v5324_v14 = vrot.slane %v5184_v7, 1  ;;  %8653 = vmatprep.mubr.msk.bf16.mxu1 %vm8841_vm2, %v11969_v19 }
 0x4b5   : > { %v11548_v36 = vadd.f32 %v5323_v27, %v5049_v46  ;;  %v8397_v56 = vpop.f32.mrf.mxu0  ;;  %v8475_v58 = vpop.f32.mrf.mxu1 }
 0x4b6   : > { %v4966_v53 = vsel %vm1316_vm4, %v4963_v29, %v4965_v26  ;;  %v5325_v52 = vsel %vm1316_vm4, %v5322_v17, %v5324_v14 }
 0x4b7   : > { %v5050_v31 = vadd.f32 %v4966_v53, %v11215_v9  ;;  %v4828_v57 = vpop.f32.mrf.mxu0  ;;  %v5187_v24 = vpop.f32.mrf.mxu1 }
 0x4b8   : > { %v4967_v6 = vrot.slane %v4828_v57, 1  ;;  %v5326_v51 = vrot.slane %v5187_v24, 1  ;;  %v12106_v24 = vld [vmem:[#allocation25_spill] sm:$0xff] }
 0x4b9   : > { %v11555_v38 = vadd.f32 %v5325_v52, %v5050_v31  ;;  %v8398_v13 = vpop.f32.mrf.mxu0  ;;  %v8476_v33 = vpop.f32.mrf.mxu1 }
 0x4ba   : > { %v4968_v60 = vsel %vm1316_vm4, %v4965_v26, %v4967_v6  ;;  %v5327_v3 = vsel %vm1316_vm4, %v5324_v14, %v5326_v51  ;;  %v12107_v13 = vld [vmem:[#allocation26_spill] sm:$0xff] }
 0x4bb   : > { %v5051_v16 = vadd.f32 %v4968_v60, %v11232_v1  ;;  %v4833_v29 = vpop.f32.mrf.mxu0  ;;  %8576 = vmatmul.mubr.msk.bf16.gmra.mxu0 %vm444_vm3, %v12104_v4  ;;  %v5192_v17 = vpop.f32.mrf.mxu1  ;;  %8654 = vmatmul.mubr.msk.bf16.gmra.mxu1 %vm444_vm3, %v12105_v30 }
 0x4bc   : > { %v4969_v9 = vrot.slane %v4833_v29, 1  ;;  %8579 = vmatprep.mubr.msk.bf16.mxu0 %vm8841_vm2, %v11969_v19  ;;  %v5328_v35 = vrot.slane %v5192_v17, 1  ;;  %8657 = vmatprep.mubr.msk.bf16.mxu1 %vm8841_vm2, %v11969_v19 }
 0x4bd   : > { %v11566_v62 = vadd.f32 %v5327_v3, %v5051_v16  ;;  %v8401_v46 = vpop.f32.mrf.mxu0  ;;  %v8479_v27 = vpop.f32.mrf.mxu1 }
 0x4be   : > { %v4970_v1 = vsel %vm1316_vm4, %v4967_v6, %v4969_v9  ;;  %v5329_v55 = vsel %vm1316_vm4, %v5326_v51, %v5328_v35 }
 0x4bf   : > { %v5052_v8 = vadd.f32 %v4970_v1, %v11239_v28  ;;  %v4836_v26 = vpop.f32.mrf.mxu0  ;;  %v5195_v45 = vpop.f32.mrf.mxu1 }
 0x4c0   : > { %v4971_v7 = vrot.slane %v4836_v26, 1  ;;  %v5330_v56 = vrot.slane %v5195_v45, 1 }
 0x4c1   : > { %v11573_v14 = vadd.f32 %v5329_v55, %v5052_v8  ;;  %v8402_v53 = vpop.f32.mrf.mxu0  ;;  %v8480_v31 = vpop.f32.mrf.mxu1 }
 0x4c2   : > { %v4972_v58 = vsel %vm1316_vm4, %v4969_v9, %v4971_v7  ;;  %v5331_v57 = vsel %vm1316_vm4, %v5328_v35, %v5330_v56 }
 0x4c3   : > { %v5053_v52 = vadd.f32 %v4972_v58, %v11256_v63  ;;  %v4841_v6 = vpop.f32.mrf.mxu0  ;;  %8580 = vmatmul.mubr.msk.bf16.gmra.mxu0 %vm444_vm3, %v12106_v24  ;;  %v5200_v51 = vpop.f32.mrf.mxu1  ;;  %8658 = vmatmul.mubr.msk.bf16.gmra.mxu1 %vm444_vm3, %v12107_v13 }
 0x4c4   : > { %v4973_v28 = vrot.slane %v4841_v6, 1  ;;  %8583 = vmatprep.mubr.msk.bf16.mxu0 %vm8841_vm2, %v11969_v19  ;;  %v5332_v33 = vrot.slane %v5200_v51, 1  ;;  %8661 = vmatprep.mubr.msk.bf16.mxu1 %vm8841_vm2, %v11969_v19 }
 0x4c5   : > { %v11584_v60 = vadd.f32 %v5331_v57, %v5053_v52  ;;  %v8405_v16 = vpop.f32.mrf.mxu0  ;;  %v8483_v3 = vpop.f32.mrf.mxu1 }
 0x4c6   : > { %v4974_v63 = vsel %vm1316_vm4, %v4971_v7, %v4973_v28  ;;  %v5333_v4 = vsel %vm1316_vm4, %v5330_v56, %v5332_v33  ;;  %v12108_v7 = vld [vmem:[#allocation27_spill] sm:$0xff]  ;;  %v12109_v56 = vld [vmem:[#allocation29_spill] sm:$0xff] }
 0x4c7   : > { %v5054_v29 = vadd.f32 %v4974_v63, %v11263_v37  ;;  %v4844_v9 = vpop.f32.mrf.mxu0  ;;  %v5203_v30 = vpop.f32.mrf.mxu1 }
 0x4c8   : > { %v4975_v17 = vrot.slane %v4844_v9, 1  ;;  %v5334_v46 = vrot.slane %v5203_v30, 1 }
 0x4c9   : > { %v11591_v35 = vadd.f32 %v5333_v4, %v5054_v29  ;;  %v8406_v1 = vpop.f32.mrf.mxu0  ;;  %v8484_v8 = vpop.f32.mrf.mxu1 }
 0x4ca   : > { %v4976_v27 = vsel %vm1316_vm4, %v4973_v28, %v4975_v17  ;;  %v5335_v19 = vsel %vm1316_vm4, %v5332_v33, %v5334_v46 }
 0x4cb   : > { %v5055_v55 = vadd.f32 %v4976_v27, %v11280_v15  ;;  %v4849_v26 = vpop.f32.mrf.mxu0  ;;  %8584 = vmatmul.mubr.msk.bf16.gmra.mxu0 %vm444_vm3, %v12108_v7  ;;  %v5208_v45 = vpop.f32.mrf.mxu1  ;;  %8662 = vmatmul.mubr.msk.bf16.gmra.mxu1 %vm444_vm3, %v12109_v56 }
 0x4cc   : > { %v4977_v37 = vrot.slane %v4849_v26, 1  ;;  %v5336_v58 = vrot.slane %v5208_v45, 1 }
 0x4cd   : > { %v11600_v53 = vadd.f32 %v5335_v19, %v5055_v55  ;;  %v8409_v31 = vpop.f32.mrf.mxu0  ;;  %v8487_v57 = vpop.f32.mrf.mxu1 }
 0x4ce   : > { %v4978_v52 = vsel %vm1316_vm4, %v4975_v17, %v4977_v37  ;;  %v5337_v6 = vsel %vm1316_vm4, %v5334_v46, %v5336_v58 }
 0x4cf   : > { %v5056_v15 = vadd.f32 %v4978_v52, %v11287_v11  ;;  %v4852_v24 = vpop.f32.mrf.mxu0  ;;  %v5211_v51 = vpop.f32.mrf.mxu1 }
 0x4d0   : > { %v4979_v28 = vrot.slane %v4852_v24, 1  ;;  %v5338_v33 = vrot.slane %v5211_v51, 1 }
 0x4d1   : > { %v11605_v13 = vadd.f32 %v5337_v6, %v5056_v15  ;;  %v8410_v16 = vpop.f32.mrf.mxu0  ;;  %v8488_v3 = vpop.f32.mrf.mxu1 }
 0x4d2   : > { %v4980_v63 = vsel %vm1316_vm4, %v4977_v37, %v4979_v28  ;;  %v5339_v4 = vsel %vm1316_vm4, %v5336_v58, %v5338_v33 }
 0x4d3   : > { %v5057_v29 = vadd.f32 %v4980_v63, %v11298_v2  ;;  %v4857_v9 = vpop.f32.mrf.mxu0  ;;  %v5216_v30 = vpop.f32.mrf.mxu1 }
 0x4d4   : > { %v4981_v17 = vrot.slane %v4857_v9, 1  ;;  %v5340_v46 = vrot.slane %v5216_v30, 1 }
 0x4d5   : > { %v11610_v11 = vadd.f32 %v5339_v4, %v5057_v29  ;;  %v8413_v1 = vpop.f32.mrf.mxu0  ;;  %v8491_v8 = vpop.f32.mrf.mxu1 }
 0x4d6   : > { %v4982_v27 = vsel %vm1316_vm4, %v4979_v28, %v4981_v17  ;;  %v5341_v19 = vsel %vm1316_vm4, %v5338_v33, %v5340_v46 }
 0x4d7   : > { %v5058_v55 = vadd.f32 %v4982_v27, %v11305_v10  ;;  %v4860_v26 = vpop.f32.mrf.mxu0  ;;  %v5219_v37 = vpop.f32.mrf.mxu1 }
 0x4d8   : > { %v4983_v7 = vrot.slane %v4860_v26, 1  ;;  %v5342_v45 = vrot.slane %v5219_v37, 1 }
 0x4d9   : > { %v11615_v2 = vadd.f32 %v5341_v19, %v5058_v55  ;;  %v8414_v56 = vpop.f32.mrf.mxu0  ;;  %v8492_v31 = vpop.f32.mrf.mxu1 }
 0x4da   : > { %v4984_v58 = vsel %vm1316_vm4, %v4981_v17, %v4983_v7  ;;  %v5343_v57 = vsel %vm1316_vm4, %v5340_v46, %v5342_v45 }
 0x4db   : > { %v5059_v52 = vadd.f32 %v4984_v58, %v11316_v34  ;;  %v4865_v15 = vpop.f32.mrf.mxu0  ;;  %v5224_v24 = vpop.f32.mrf.mxu1 }
 0x4dc   : > { %v4985_v6 = vrot.slane %v4865_v15, 1  ;;  %v5344_v28 = vrot.slane %v5224_v24, 1 }
 0x4dd   : > { %v11620_v10 = vadd.f32 %v5343_v57, %v5059_v52  ;;  %v8417_v51 = vpop.f32.mrf.mxu0  ;;  %v8495_v16 = vpop.f32.mrf.mxu1 }
 0x4de   : > { %v4986_v33 = vsel %vm1316_vm4, %v4983_v7, %v4985_v6  ;;  %v5345_v3 = vsel %vm1316_vm4, %v5342_v45, %v5344_v28 }
 0x4df   : > { %v5060_v63 = vadd.f32 %v4986_v33, %v11323_v44  ;;  %v4868_v29 = vpop.f32.mrf.mxu0  ;;  %v5227_v9 = vpop.f32.mrf.mxu1 }
 0x4e0   : > { %v4987_v4 = vrot.slane %v4868_v29, 1  ;;  %v5346_v17 = vrot.slane %v5227_v9, 1 }
 0x4e1   : > { %v11625_v34 = vadd.f32 %v5345_v3, %v5060_v63  ;;  %v8418_v30 = vpop.f32.mrf.mxu0  ;;  %v8496_v1 = vpop.f32.mrf.mxu1 }
 0x4e2   : > { %v4988_v46 = vsel %vm1316_vm4, %v4985_v6, %v4987_v4  ;;  %v5347_v8 = vsel %vm1316_vm4, %v5344_v28, %v5346_v17 }
 0x4e3   : > { %v5061_v27 = vadd.f32 %v4988_v46, %v11334_v59  ;;  %v4873_v55 = vpop.f32.mrf.mxu0  ;;  %v5232_v26 = vpop.f32.mrf.mxu1 }
 0x4e4   : > { %v4989_v19 = vrot.slane %v4873_v55, 1  ;;  %v5348_v7 = vrot.slane %v5232_v26, 1 }
 0x4e5   : > { %v11630_v44 = vadd.f32 %v5347_v8, %v5061_v27  ;;  %v8421_v37 = vpop.f32.mrf.mxu0  ;;  %v8499_v56 = vpop.f32.mrf.mxu1 }
 0x4e6   : > { %v4990_v45 = vsel %vm1316_vm4, %v4987_v4, %v4989_v19  ;;  %v5349_v31 = vsel %vm1316_vm4, %v5346_v17, %v5348_v7 }
 0x4e7   : > { %v5062_v58 = vadd.f32 %v4990_v45, %v11341_v12  ;;  %v4876_v52 = vpop.f32.mrf.mxu0  ;;  %v5235_v15 = vpop.f32.mrf.mxu1 }
 0x4e8   : > { %v4991_v57 = vrot.slane %v4876_v52, 1  ;;  %v5350_v6 = vrot.slane %v5235_v15, 1 }
 0x4e9   : > { %v11635_v59 = vadd.f32 %v5349_v31, %v5062_v58  ;;  %v8422_v24 = vpop.f32.mrf.mxu0  ;;  %v8500_v51 = vpop.f32.mrf.mxu1 }
 0x4ea   : > { %v4992_v28 = vsel %vm1316_vm4, %v4989_v19, %v4991_v57  ;;  %v5351_v16 = vsel %vm1316_vm4, %v5348_v7, %v5350_v6 }
 0x4eb   : > { %v5063_v33 = vadd.f32 %v4992_v28, %v11352_v22  ;;  %v4881_v63 = vpop.f32.mrf.mxu0  ;;  %v5240_v29 = vpop.f32.mrf.mxu1 }
 0x4ec   : > { %v4993_v3 = vrot.slane %v4881_v63, 1  ;;  %v5352_v4 = vrot.slane %v5240_v29, 1 }
 0x4ed   : > { %v11640_v12 = vadd.f32 %v5351_v16, %v5063_v33  ;;  %v8425_v9 = vpop.f32.mrf.mxu0  ;;  %v8503_v30 = vpop.f32.mrf.mxu1 }
 0x4ee   : > { %v4994_v17 = vsel %vm1316_vm4, %v4991_v57, %v4993_v3  ;;  %v5353_v1 = vsel %vm1316_vm4, %v5350_v6, %v5352_v4 }
 0x4ef   : > { %v5064_v46 = vadd.f32 %v4994_v17, %v11359_v39  ;;  %v4884_v27 = vpop.f32.mrf.mxu0  ;;  %v5243_v55 = vpop.f32.mrf.mxu1 }
 0x4f0   : > { %v4995_v8 = vrot.slane %v4884_v27, 1  ;;  %v5354_v19 = vrot.slane %v5243_v55, 1 }
 0x4f1   : > { %v11645_v22 = vadd.f32 %v5353_v1, %v5064_v46  ;;  %v8426_v26 = vpop.f32.mrf.mxu0  ;;  %v8504_v37 = vpop.f32.mrf.mxu1 }
 0x4f2   : > { %v4996_v7 = vsel %vm1316_vm4, %v4993_v3, %v4995_v8  ;;  %v5355_v56 = vsel %vm1316_vm4, %v5352_v4, %v5354_v19 }
 0x4f3   : > { %v5065_v45 = vadd.f32 %v4996_v7, %v11370_v5  ;;  %v4889_v58 = vpop.f32.mrf.mxu0  ;;  %v5248_v52 = vpop.f32.mrf.mxu1 }
 0x4f4   : > { %v4997_v31 = vrot.slane %v4889_v58, 1  ;;  %v5356_v57 = vrot.slane %v5248_v52, 1 }
 0x4f5   : > { %v11650_v39 = vadd.f32 %v5355_v56, %v5065_v45  ;;  %v8429_v15 = vpop.f32.mrf.mxu0  ;;  %v8507_v24 = vpop.f32.mrf.mxu1 }
 0x4f6   : > { %v4998_v6 = vsel %vm1316_vm4, %v4995_v8, %v4997_v31  ;;  %v5357_v51 = vsel %vm1316_vm4, %v5354_v19, %v5356_v57 }
 0x4f7   : > { %v5066_v28 = vadd.f32 %v4998_v6, %v11377_v48  ;;  %v4892_v33 = vpop.f32.mrf.mxu0  ;;  %v5251_v16 = vpop.f32.mrf.mxu1 }
 0x4f9   : > { %v11655_v63 = vadd.f32 %v5357_v51, %v5066_v28  ;;  %v8430_v5 = vpop.f32.mrf.mxu0  ;;  %v8508_v3 = vpop.f32.mrf.mxu1  ;;  %v11663_v28 = vld [vmem:[%s11878_s2] ss:$0 sm:$0xff] }
 0x4fb   : > { %v5465_v29 = vpop.f32.mrf.mxu0  ;;  %v5824_v4 = vpop.f32.mrf.mxu1 }
 0x4fd   : > { %v8513_v9 = vpop.f32.mrf.mxu0  ;;  %v8591_v17 = vpop.f32.mrf.mxu1 }
 0x4ff   : > { %v5467_v30 = vpop.f32.mrf.mxu0  ;;  %v5826_v46 = vpop.f32.mrf.mxu1 }
 0x501   : > { %v8514_v1 = vpop.f32.mrf.mxu0  ;;  %v8592_v27 = vpop.f32.mrf.mxu1 }
 0x503   : > { %v5471_v8 = vpop.f32.mrf.mxu0  ;;  %v5830_v55 = vpop.f32.mrf.mxu1 }
 0x504   : > { %v5648_v19 = vrot.slane %v5471_v8, 2  ;;  %v6007_v31 = vrot.slane %v5830_v55, 2 }
 0x505   : > { %v8517_v26 = vpop.f32.mrf.mxu0  ;;  %v8595_v48 = vpop.f32.mrf.mxu1 }
 0x507   : > { %v5474_v7 = vpop.f32.mrf.mxu0  ;;  %v5833_v45 = vpop.f32.mrf.mxu1 }
 0x508   : > { %v5649_v37 = vrot.slane %v5474_v7, 2  ;;  %v6008_v56 = vrot.slane %v5833_v45, 2 }
 0x509   : > { %v8518_v58 = vpop.f32.mrf.mxu0  ;;  %v8596_v57 = vpop.f32.mrf.mxu1 }
 0x50a   : > { %v5650_v52 = vsel %vm4211_vm5, %v5648_v19, %v5649_v37  ;;  %v6009_v24 = vsel %vm4211_vm5, %v6007_v31, %v6008_v56 }
 0x50b   : > { %v5751_v15 = vadd.f32 %v5650_v52, %v11404_v21  ;;  %v5479_v6 = vpop.f32.mrf.mxu0  ;;  %v5838_v33 = vpop.f32.mrf.mxu1 }
 0x50c   : > { %v5651_v51 = vrot.slane %v5479_v6, 2  ;;  %v6010_v5 = vrot.slane %v5838_v33, 2 }
 0x50d   : > { %v6110_v16 = vadd.f32 %v6009_v24, %v5751_v15  ;;  %v8521_v3 = vpop.f32.mrf.mxu0  ;;  %v8599_v4 = vpop.f32.mrf.mxu1 }
 0x50e   : > { %v5652_v29 = vsel %vm4211_vm5, %v5649_v37, %v5651_v51  ;;  %v6011_v30 = vsel %vm4211_vm5, %v6008_v56, %v6010_v5 }
 0x50f   : > { %v6151_v9 = vadd.f32 %v11663_v28, %v6110_v16  ;;  %v5752_v21 = vadd.f32 %v5652_v29, %v11411_v25  ;;  %v5482_v17 = vpop.f32.mrf.mxu0  ;;  %v5841_v1 = vpop.f32.mrf.mxu1 }
 0x510   : > { %v5653_v46 = vrot.slane %v5482_v17, 2  ;;  %v6012_v55 = vrot.slane %v5841_v1, 2 }
 0x511   : > { %vm6185_vm6 = vcmp.gt.f32.partialorder %v6151_v9, 0.0  ;;  %v6219_v27 = vmul.f32 0.2, %v6151_v9  ;;  %v6111_v8 = vadd.f32 %v6011_v30, %v5752_v21  ;;  %v8522_v26 = vpop.f32.mrf.mxu0  ;;  %v8600_v7 = vpop.f32.mrf.mxu1 }
 0x512   : > { %v5654_v48 = vsel %vm4211_vm5, %v5651_v51, %v5653_v46  ;;  %v6013_v58 = vsel %vm4211_vm5, %v6010_v5, %v6012_v55 }
 0x513   : > { %v6253_v25 = vsel %vm6185_vm6, %v6151_v9, %v6219_v27  ;;  %v6152_v19 = vadd.f32 %v11663_v28, %v6111_v8  ;;  %v5753_v37 = vadd.f32 %v5654_v48, %v11422_v61  ;;  %v5487_v45 = vpop.f32.mrf.mxu0  ;;  %v5846_v52 = vpop.f32.mrf.mxu1 }
 0x514   : > { %v7063_v56 = vpack.c.bf16 %v6253_v25, %v6253_v25  ;;  %v5655_v31 = vrot.slane %v5487_v45, 2  ;;  %v6014_v6 = vrot.slane %v5846_v52, 2 }
 0x515   : > { %vm6186_vm8 = vcmp.gt.f32.partialorder %v6152_v19, 0.0  ;;  %v6220_v57 = vmul.f32 0.2, %v6152_v19  ;;  %v6112_v15 = vadd.f32 %v6013_v58, %v5753_v37  ;;  %v8525_v24 = vpop.f32.mrf.mxu0  ;;  %v8603_v33 = vpop.f32.mrf.mxu1 }
 0x516   : > { %6424 = vst.msk [vmem:[%s11674_s16] sm:$0xf] %vm6423_vm7, %v7063_v56  ;;  %v5656_v51 = vsel %vm4211_vm5, %v5653_v46, %v5655_v31  ;;  %v6015_v4 = vsel %vm4211_vm5, %v6012_v55, %v6014_v6 }
 0x517   : > { %v6254_v16 = vsel %vm6186_vm8, %v6152_v19, %v6220_v57  ;;  %v6153_v61 = vadd.f32 %v11663_v28, %v6112_v15  ;;  %v5754_v3 = vadd.f32 %v5656_v51, %v11429_v54  ;;  %v5490_v29 = vpop.f32.mrf.mxu0  ;;  %v5849_v21 = vpop.f32.mrf.mxu1 }
 0x518   : > { %v7064_v5 = vpack.c.bf16 %v6254_v16, %v6254_v16  ;;  %v5657_v9 = vrot.slane %v5490_v29, 2  ;;  %v6016_v1 = vrot.slane %v5849_v21, 2 }
 0x519   : > { %vm6187_vm9 = vcmp.gt.f32.partialorder %v6153_v61, 0.0  ;;  %v6221_v17 = vmul.f32 0.2, %v6153_v61  ;;  %v6113_v30 = vadd.f32 %v6015_v4, %v5754_v3  ;;  %v8526_v27 = vpop.f32.mrf.mxu0  ;;  %v8604_v8 = vpop.f32.mrf.mxu1 }
 0x51a   : > { %6425 = vst.msk [vmem:[%s11674_s16 + $0x4] sm:$0xf] %vm6423_vm7, %v7064_v5  ;;  %v5658_v46 = vsel %vm4211_vm5, %v5655_v31, %v5657_v9  ;;  %v6017_v25 = vsel %vm4211_vm5, %v6014_v6, %v6016_v1 }
 0x51b   : > { %v6255_v26 = vsel %vm6187_vm9, %v6153_v61, %v6221_v17  ;;  %v6154_v54 = vadd.f32 %v11663_v28, %v6113_v30  ;;  %v5755_v48 = vadd.f32 %v5658_v46, %v11440_v40  ;;  %v5495_v7 = vpop.f32.mrf.mxu0  ;;  %v5854_v37 = vpop.f32.mrf.mxu1 }
 0x51c   : > { %v7065_v55 = vpack.c.bf16 %v6255_v26, %v6255_v26  ;;  %v5659_v19 = vrot.slane %v5495_v7, 2  ;;  %v6018_v58 = vrot.slane %v5854_v37, 2 }
 0x51d   : > { %vm6188_vm10 = vcmp.gt.f32.partialorder %v6154_v54, 0.0  ;;  %v6222_v45 = vmul.f32 0.2, %v6154_v54  ;;  %v6114_v56 = vadd.f32 %v6017_v25, %v5755_v48  ;;  %v8529_v52 = vpop.f32.mrf.mxu0  ;;  %v8607_v57 = vpop.f32.mrf.mxu1 }
 0x51e   : > { %6426 = vst.msk [vmem:[%s11674_s16 + $0x8] sm:$0xf] %vm6423_vm7, %v7065_v55  ;;  %v5660_v31 = vsel %vm4211_vm5, %v5657_v9, %v5659_v19  ;;  %v6019_v33 = vsel %vm4211_vm5, %v6016_v1, %v6018_v58 }
 0x51f   : > { %v6256_v15 = vsel %vm6188_vm10, %v6154_v54, %v6222_v45  ;;  %v6155_v40 = vadd.f32 %v11663_v28, %v6114_v56  ;;  %v5756_v24 = vadd.f32 %v5660_v31, %v11447_v0  ;;  %v5498_v51 = vpop.f32.mrf.mxu0  ;;  %v5857_v61 = vpop.f32.mrf.mxu1 }
 0x520   : > { %v7066_v6 = vpack.c.bf16 %v6256_v15, %v6256_v15  ;;  %v5661_v16 = vrot.slane %v5498_v51, 2  ;;  %v6020_v5 = vrot.slane %v5857_v61, 2 }
 0x521   : > { %vm6189_vm11 = vcmp.gt.f32.partialorder %v6155_v40, 0.0  ;;  %v6223_v3 = vmul.f32 0.2, %v6155_v40  ;;  %v6115_v29 = vadd.f32 %v6019_v33, %v5756_v24  ;;  %v8530_v4 = vpop.f32.mrf.mxu0  ;;  %v8608_v21 = vpop.f32.mrf.mxu1 }
 0x522   : > { %6427 = vst.msk [vmem:[%s11674_s16 + $0xc] sm:$0xf] %vm6423_vm7, %v7066_v6  ;;  %v5662_v9 = vsel %vm4211_vm5, %v5659_v19, %v5661_v16  ;;  %v6021_v46 = vsel %vm4211_vm5, %v6018_v58, %v6020_v5 }
 0x523   : > { %v6257_v17 = vsel %vm6189_vm11, %v6155_v40, %v6223_v3  ;;  %v6156_v0 = vadd.f32 %v11663_v28, %v6115_v29  ;;  %v5757_v30 = vadd.f32 %v5662_v9, %v11458_v42  ;;  %v5503_v27 = vpop.f32.mrf.mxu0  ;;  %v5862_v26 = vpop.f32.mrf.mxu1 }
 0x524   : > { %v7067_v1 = vpack.c.bf16 %v6257_v17, %v6257_v17  ;;  %v5663_v8 = vrot.slane %v5503_v27, 2  ;;  %v6022_v7 = vrot.slane %v5862_v26, 2 }
 0x525   : > { %vm6190_vm12 = vcmp.gt.f32.partialorder %v6156_v0, 0.0  ;;  %v6224_v54 = vmul.f32 0.2, %v6156_v0  ;;  %v6116_v48 = vadd.f32 %v6021_v46, %v5757_v30  ;;  %v8533_v55 = vpop.f32.mrf.mxu0  ;;  %v8611_v19 = vpop.f32.mrf.mxu1 }
 0x526   : > { %6428 = vst.msk [vmem:[%s11674_s16 + $0x10] sm:$0xf] %vm6423_vm7, %v7067_v1  ;;  %v5664_v25 = vsel %vm4211_vm5, %v5661_v16, %v5663_v8  ;;  %v6023_v52 = vsel %vm4211_vm5, %v6020_v5, %v6022_v7 }
 0x527   : > { %v6258_v37 = vsel %vm6190_vm12, %v6156_v0, %v6224_v54  ;;  %v6157_v42 = vadd.f32 %v11663_v28, %v6116_v48  ;;  %v5758_v45 = vadd.f32 %v5664_v25, %v11465_v20  ;;  %v5506_v56 = vpop.f32.mrf.mxu0  ;;  %v5865_v57 = vpop.f32.mrf.mxu1 }
 0x528   : > { %v7068_v58 = vpack.c.bf16 %v6258_v37, %v6258_v37  ;;  %v5665_v31 = vrot.slane %v5506_v56, 2  ;;  %v6024_v24 = vrot.slane %v5865_v57, 2 }
 0x529   : > { %vm6191_vm13 = vcmp.gt.f32.partialorder %v6157_v42, 0.0  ;;  %v6225_v15 = vmul.f32 0.2, %v6157_v42  ;;  %v6117_v40 = vadd.f32 %v6023_v52, %v5758_v45  ;;  %v8534_v51 = vpop.f32.mrf.mxu0  ;;  %v8612_v33 = vpop.f32.mrf.mxu1 }
 0x52a   : > { %6429 = vst.msk [vmem:[%s11674_s16 + $0x14] sm:$0xf] %vm6423_vm7, %v7068_v58  ;;  %v5666_v6 = vsel %vm4211_vm5, %v5663_v8, %v5665_v31  ;;  %v6025_v5 = vsel %vm4211_vm5, %v6022_v7, %v6024_v24 }
 0x52b   : > { %v6259_v16 = vsel %vm6191_vm13, %v6157_v42, %v6225_v15  ;;  %v6158_v20 = vadd.f32 %v11663_v28, %v6117_v40  ;;  %v5759_v61 = vadd.f32 %v5666_v6, %v11476_v43  ;;  %v5511_v3 = vpop.f32.mrf.mxu0  ;;  %v5870_v9 = vpop.f32.mrf.mxu1 }
 0x52c   : > { %v7069_v29 = vpack.c.bf16 %v6259_v16, %v6259_v16  ;;  %v5667_v4 = vrot.slane %v5511_v3, 2  ;;  %v6026_v0 = vrot.slane %v5870_v9, 2 }
 0x52d   : > { %vm6192_vm14 = vcmp.gt.f32.partialorder %v6158_v20, 0.0  ;;  %v6226_v21 = vmul.f32 0.2, %v6158_v20  ;;  %v6118_v17 = vadd.f32 %v6025_v5, %v5759_v61  ;;  %v8537_v30 = vpop.f32.mrf.mxu0  ;;  %v8615_v1 = vpop.f32.mrf.mxu1 }
 0x52e   : > { %6430 = vst.msk [vmem:[%s11674_s16 + $0x18] sm:$0xf] %vm6423_vm7, %v7069_v29  ;;  %v5668_v27 = vsel %vm4211_vm5, %v5665_v31, %v5667_v4  ;;  %v6027_v48 = vsel %vm4211_vm5, %v6024_v24, %v6026_v0 }
 0x52f   : > { %v6260_v46 = vsel %vm6192_vm14, %v6158_v20, %v6226_v21  ;;  %v6159_v43 = vadd.f32 %v11663_v28, %v6118_v17  ;;  %v5760_v8 = vadd.f32 %v5668_v27, %v11483_v50  ;;  %v5514_v26 = vpop.f32.mrf.mxu0  ;;  %v5873_v55 = vpop.f32.mrf.mxu1 }
 0x530   : > { %v7070_v54 = vpack.c.bf16 %v6260_v46, %v6260_v46  ;;  %v5669_v7 = vrot.slane %v5514_v26, 2  ;;  %v6028_v37 = vrot.slane %v5873_v55, 2 }
 0x531   : > { %vm6193_vm15 = vcmp.gt.f32.partialorder %v6159_v43, 0.0  ;;  %v6227_v25 = vmul.f32 0.2, %v6159_v43  ;;  %v6119_v19 = vadd.f32 %v6027_v48, %v5760_v8  ;;  %v8538_v42 = vpop.f32.mrf.mxu0  ;;  %v8616_v56 = vpop.f32.mrf.mxu1 }
 0x532   : > { %6431 = vst.msk [vmem:[%s11674_s16 + $0x1c] sm:$0xf] %vm6423_vm7, %v7070_v54  ;;  %v5670_v45 = vsel %vm4211_vm5, %v5667_v4, %v5669_v7  ;;  %v6029_v15 = vsel %vm4211_vm5, %v6026_v0, %v6028_v37 }
 0x533   : > { %v6261_v58 = vsel %vm6193_vm15, %v6159_v43, %v6227_v25  ;;  %v6160_v50 = vadd.f32 %v11663_v28, %v6119_v19  ;;  %v5761_v52 = vadd.f32 %v5670_v45, %v11494_v49  ;;  %v5519_v31 = vpop.f32.mrf.mxu0  ;;  %v5878_v24 = vpop.f32.mrf.mxu1 }
 0x534   : > { %v7071_v57 = vpack.c.bf16 %v6261_v58, %v6261_v58  ;;  %v5671_v40 = vrot.slane %v5519_v31, 2  ;;  %v6030_v33 = vrot.slane %v5878_v24, 2 }
 0x535   : > { %vm6194_vm0 = vcmp.gt.f32.partialorder %v6160_v50, 0.0  ;;  %v6228_v51 = vmul.f32 0.2, %v6160_v50  ;;  %v6120_v6 = vadd.f32 %v6029_v15, %v5761_v52  ;;  %v8541_v16 = vpop.f32.mrf.mxu0  ;;  %v8619_v61 = vpop.f32.mrf.mxu1 }
 0x536   : > { %6432 = vst.msk [vmem:[%s11674_s16 + $0x20] sm:$0xf] %vm6423_vm7, %v7071_v57  ;;  %v5672_v20 = vsel %vm4211_vm5, %v5669_v7, %v5671_v40  ;;  %v6031_v9 = vsel %vm4211_vm5, %v6028_v37, %v6030_v33 }
 0x537   : > { %v6262_v3 = vsel %vm6194_vm0, %v6160_v50, %v6228_v51  ;;  %v6161_v49 = vadd.f32 %v11663_v28, %v6120_v6  ;;  %v5762_v29 = vadd.f32 %v5672_v20, %v11501_v18  ;;  %v5522_v5 = vpop.f32.mrf.mxu0  ;;  %v5881_v17 = vpop.f32.mrf.mxu1 }
 0x538   : > { %v7072_v4 = vpack.c.bf16 %v6262_v3, %v6262_v3  ;;  %v5673_v21 = vrot.slane %v5522_v5, 2  ;;  %v6032_v27 = vrot.slane %v5881_v17, 2 }
 0x539   : > { %vm6195_vm1 = vcmp.gt.f32.partialorder %v6161_v49, 0.0  ;;  %v6229_v0 = vmul.f32 0.2, %v6161_v49  ;;  %v6121_v30 = vadd.f32 %v6031_v9, %v5762_v29  ;;  %v8542_v1 = vpop.f32.mrf.mxu0  ;;  %v8620_v43 = vpop.f32.mrf.mxu1 }
 0x53a   : > { %6433 = vst.msk [vmem:[%s11674_s16 + $0x24] sm:$0xf] %vm6423_vm7, %v7072_v4  ;;  %v5674_v46 = vsel %vm4211_vm5, %v5671_v40, %v5673_v21  ;;  %v6033_v7 = vsel %vm4211_vm5, %v6030_v33, %v6032_v27 }
 0x53b   : > { %v6263_v8 = vsel %vm6195_vm1, %v6161_v49, %v6229_v0  ;;  %v6162_v18 = vadd.f32 %v11663_v28, %v6121_v30  ;;  %v5763_v26 = vadd.f32 %v5674_v46, %v11512_v41  ;;  %v5527_v54 = vpop.f32.mrf.mxu0  ;;  %v5886_v25 = vpop.f32.mrf.mxu1 }
 0x53c   : > { %v7073_v48 = vpack.c.bf16 %v6263_v8, %v6263_v8  ;;  %v5675_v55 = vrot.slane %v5527_v54, 2  ;;  %v6034_v42 = vrot.slane %v5886_v25, 2 }
 0x53d   : > { %vm6196_vm2 = vcmp.gt.f32.partialorder %v6162_v18, 0.0  ;;  %v6230_v19 = vmul.f32 0.2, %v6162_v18  ;;  %v6122_v37 = vadd.f32 %v6033_v7, %v5763_v26  ;;  %v8545_v45 = vpop.f32.mrf.mxu0  ;;  %v8623_v58 = vpop.f32.mrf.mxu1 }
 0x53e   : > { %6434 = vst.msk [vmem:[%s11674_s16 + $0x28] sm:$0xf] %vm6423_vm7, %v7073_v48  ;;  %v5676_v56 = vsel %vm4211_vm5, %v5673_v21, %v5675_v55  ;;  %v6035_v15 = vsel %vm4211_vm5, %v6032_v27, %v6034_v42 }
 0x53f   : > { %v6264_v50 = vsel %vm6196_vm2, %v6162_v18, %v6230_v19  ;;  %v6163_v41 = vadd.f32 %v11663_v28, %v6122_v37  ;;  %v5764_v52 = vadd.f32 %v5676_v56, %v11519_v47  ;;  %v5530_v31 = vpop.f32.mrf.mxu0  ;;  %v5889_v24 = vpop.f32.mrf.mxu1 }
 0x540   : > { %v7074_v57 = vpack.c.bf16 %v6264_v50, %v6264_v50  ;;  %v5677_v40 = vrot.slane %v5530_v31, 2  ;;  %v6036_v33 = vrot.slane %v5889_v24, 2 }
 0x541   : > { %vm6197_vm3 = vcmp.gt.f32.partialorder %v6163_v41, 0.0  ;;  %v6231_v51 = vmul.f32 0.2, %v6163_v41  ;;  %v6123_v6 = vadd.f32 %v6035_v15, %v5764_v52  ;;  %v8546_v16 = vpop.f32.mrf.mxu0  ;;  %v8624_v61 = vpop.f32.mrf.mxu1 }
 0x542   : > { %6435 = vst.msk [vmem:[%s11674_s16 + $0x2c] sm:$0xf] %vm6423_vm7, %v7074_v57  ;;  %v5678_v20 = vsel %vm4211_vm5, %v5675_v55, %v5677_v40  ;;  %v6037_v4 = vsel %vm4211_vm5, %v6034_v42, %v6036_v33 }
 0x543   : > { %v6265_v3 = vsel %vm6197_vm3, %v6163_v41, %v6231_v51  ;;  %v6164_v47 = vadd.f32 %v11663_v28, %v6123_v6  ;;  %v5765_v49 = vadd.f32 %v5678_v20, %v11530_v23  ;;  %v5535_v29 = vpop.f32.mrf.mxu0  ;;  %v5894_v21 = vpop.f32.mrf.mxu1 }
 0x544   : > { %v7075_v5 = vpack.c.bf16 %v6265_v3, %v6265_v3  ;;  %v5679_v9 = vrot.slane %v5535_v29, 2  ;;  %v6038_v30 = vrot.slane %v5894_v21, 2 }
 0x545   : > { %vm6198_vm4 = vcmp.gt.f32.partialorder %v6164_v47, 0.0  ;;  %v6232_v17 = vmul.f32 0.2, %v6164_v47  ;;  %v6124_v0 = vadd.f32 %v6037_v4, %v5765_v49  ;;  %v8549_v27 = vpop.f32.mrf.mxu0  ;;  %v8627_v46 = vpop.f32.mrf.mxu1 }
 0x546   : > { %6436 = vst.msk [vmem:[%s11674_s16 + $0x30] sm:$0xf] %vm6423_vm7, %v7075_v5  ;;  %v5680_v1 = vsel %vm4211_vm5, %v5677_v40, %v5679_v9  ;;  %v6039_v54 = vsel %vm4211_vm5, %v6036_v33, %v6038_v30 }
 0x547   : > { %v6266_v43 = vsel %vm6198_vm4, %v6164_v47, %v6232_v17  ;;  %v6165_v23 = vadd.f32 %v11663_v28, %v6124_v0  ;;  %v5766_v8 = vadd.f32 %v5680_v1, %v11537_v32  ;;  %v5538_v18 = vpop.f32.mrf.mxu0  ;;  %v5897_v7 = vpop.f32.mrf.mxu1 }
 0x548   : > { %v7076_v26 = vpack.c.bf16 %v6266_v43, %v6266_v43  ;;  %v5681_v48 = vrot.slane %v5538_v18, 2  ;;  %v6040_v19 = vrot.slane %v5897_v7, 2 }
 0x549   : > { %vm6199_vm6 = vcmp.gt.f32.partialorder %v6165_v23, 0.0  ;;  %v6233_v55 = vmul.f32 0.2, %v6165_v23  ;;  %v6125_v25 = vadd.f32 %v6039_v54, %v5766_v8  ;;  %v8550_v37 = vpop.f32.mrf.mxu0  ;;  %v8628_v45 = vpop.f32.mrf.mxu1 }
 0x54a   : > { %6437 = vst.msk [vmem:[%s11674_s16 + $0x34] sm:$0xf] %vm6423_vm7, %v7076_v26  ;;  %v5682_v42 = vsel %vm4211_vm5, %v5679_v9, %v5681_v48  ;;  %v6041_v52 = vsel %vm4211_vm5, %v6038_v30, %v6040_v19 }
 0x54b   : > { %v6267_v56 = vsel %vm6199_vm6, %v6165_v23, %v6233_v55  ;;  %v6166_v32 = vadd.f32 %v11663_v28, %v6125_v25  ;;  %v5767_v58 = vadd.f32 %v5682_v42, %v11548_v36  ;;  %v5543_v50 = vpop.f32.mrf.mxu0  ;;  %v5902_v57 = vpop.f32.mrf.mxu1 }
 0x54c   : > { %v7077_v41 = vpack.c.bf16 %v6267_v56, %v6267_v56  ;;  %v5683_v31 = vrot.slane %v5543_v50, 2  ;;  %v6042_v24 = vrot.slane %v5902_v57, 2 }
 0x54d   : > { %vm6200_vm8 = vcmp.gt.f32.partialorder %v6166_v32, 0.0  ;;  %v6234_v15 = vmul.f32 0.2, %v6166_v32  ;;  %v6126_v40 = vadd.f32 %v6041_v52, %v5767_v58  ;;  %v8553_v51 = vpop.f32.mrf.mxu0  ;;  %v8631_v33 = vpop.f32.mrf.mxu1 }
 0x54e   : > { %6438 = vst.msk [vmem:[%s11674_s16 + $0x38] sm:$0xf] %vm6423_vm7, %v7077_v41  ;;  %v5684_v6 = vsel %vm4211_vm5, %v5681_v48, %v5683_v31  ;;  %v6043_v47 = vsel %vm4211_vm5, %v6040_v19, %v6042_v24 }
 0x54f   : > { %v6268_v16 = vsel %vm6200_vm8, %v6166_v32, %v6234_v15  ;;  %v6167_v36 = vadd.f32 %v11663_v28, %v6126_v40  ;;  %v5768_v20 = vadd.f32 %v5684_v6, %v11555_v38  ;;  %v5546_v61 = vpop.f32.mrf.mxu0  ;;  %v5905_v29 = vpop.f32.mrf.mxu1 }
 0x550   : > { %v7078_v3 = vpack.c.bf16 %v6268_v16, %v6268_v16  ;;  %v5685_v49 = vrot.slane %v5546_v61, 2  ;;  %v6044_v9 = vrot.slane %v5905_v29, 2 }
 0x551   : > { %vm6201_vm9 = vcmp.gt.f32.partialorder %v6167_v36, 0.0  ;;  %v6235_v5 = vmul.f32 0.2, %v6167_v36  ;;  %v6127_v4 = vadd.f32 %v6043_v47, %v5768_v20  ;;  %v8554_v21 = vpop.f32.mrf.mxu0  ;;  %v8632_v0 = vpop.f32.mrf.mxu1 }
 0x552   : > { %6439 = vst.msk [vmem:[%s11674_s16 + $0x3c] sm:$0xf] %vm6423_vm7, %v7078_v3  ;;  %v5686_v17 = vsel %vm4211_vm5, %v5683_v31, %v5685_v49  ;;  %v6045_v43 = vsel %vm4211_vm5, %v6042_v24, %v6044_v9 }
 0x553   : > { %v6269_v30 = vsel %vm6201_vm9, %v6167_v36, %v6235_v5  ;;  %v6168_v38 = vadd.f32 %v11663_v28, %v6127_v4  ;;  %v5769_v27 = vadd.f32 %v5686_v17, %v11566_v62  ;;  %v5551_v1 = vpop.f32.mrf.mxu0  ;;  %v5910_v8 = vpop.f32.mrf.mxu1 }
 0x554   : > { %v7079_v46 = vpack.c.bf16 %v6269_v30, %v6269_v30  ;;  %v5687_v23 = vrot.slane %v5551_v1, 2  ;;  %v6046_v54 = vrot.slane %v5910_v8, 2 }
 0x555   : > { %vm6202_vm10 = vcmp.gt.f32.partialorder %v6168_v38, 0.0  ;;  %v6236_v18 = vmul.f32 0.2, %v6168_v38  ;;  %v6128_v26 = vadd.f32 %v6045_v43, %v5769_v27  ;;  %v8557_v48 = vpop.f32.mrf.mxu0  ;;  %v8635_v55 = vpop.f32.mrf.mxu1 }
 0x556   : > { %6440 = vst.msk [vmem:[%s11674_s16 + $0x40] sm:$0xf] %vm6423_vm7, %v7079_v46  ;;  %v5688_v7 = vsel %vm4211_vm5, %v5685_v49, %v5687_v23  ;;  %v6047_v45 = vsel %vm4211_vm5, %v6044_v9, %v6046_v54 }
 0x557   : > { %v6270_v25 = vsel %vm6202_vm10, %v6168_v38, %v6236_v18  ;;  %v6169_v62 = vadd.f32 %v11663_v28, %v6128_v26  ;;  %v5770_v19 = vadd.f32 %v5688_v7, %v11573_v14  ;;  %v5554_v37 = vpop.f32.mrf.mxu0  ;;  %v5913_v32 = vpop.f32.mrf.mxu1 }
 0x558   : > { %v7080_v42 = vpack.c.bf16 %v6270_v25, %v6270_v25  ;;  %v5689_v56 = vrot.slane %v5554_v37, 2  ;;  %v6048_v41 = vrot.slane %v5913_v32, 2 }
 0x559   : > { %vm6203_vm11 = vcmp.gt.f32.partialorder %v6169_v62, 0.0  ;;  %v6237_v58 = vmul.f32 0.2, %v6169_v62  ;;  %v6129_v50 = vadd.f32 %v6047_v45, %v5770_v19  ;;  %v8558_v52 = vpop.f32.mrf.mxu0  ;;  %v8636_v57 = vpop.f32.mrf.mxu1 }
 0x55a   : > { %6441 = vst.msk [vmem:[%s11674_s16 + $0x44] sm:$0xf] %vm6423_vm7, %v7080_v42  ;;  %v5690_v31 = vsel %vm4211_vm5, %v5687_v23, %v5689_v56  ;;  %v6049_v6 = vsel %vm4211_vm5, %v6046_v54, %v6048_v41 }
 0x55b   : > { %v6271_v15 = vsel %vm6203_vm11, %v6169_v62, %v6237_v58  ;;  %v6170_v14 = vadd.f32 %v11663_v28, %v6129_v50  ;;  %v5771_v40 = vadd.f32 %v5690_v31, %v11584_v60  ;;  %v5559_v24 = vpop.f32.mrf.mxu0  ;;  %v5918_v16 = vpop.f32.mrf.mxu1 }
 0x55c   : > { %v7081_v51 = vpack.c.bf16 %v6271_v15, %v6271_v15  ;;  %v5691_v33 = vrot.slane %v5559_v24, 2  ;;  %v6050_v61 = vrot.slane %v5918_v16, 2 }
 0x55d   : > { %vm6204_vm12 = vcmp.gt.f32.partialorder %v6170_v14, 0.0  ;;  %v6238_v36 = vmul.f32 0.2, %v6170_v14  ;;  %v6130_v20 = vadd.f32 %v6049_v6, %v5771_v40  ;;  %v8561_v3 = vpop.f32.mrf.mxu0  ;;  %v8639_v49 = vpop.f32.mrf.mxu1 }
 0x55e   : > { %6442 = vst.msk [vmem:[%s11674_s16 + $0x48] sm:$0xf] %vm6423_vm7, %v7081_v51  ;;  %v5692_v47 = vsel %vm4211_vm5, %v5689_v56, %v5691_v33  ;;  %v6051_v21 = vsel %vm4211_vm5, %v6048_v41, %v6050_v61 }
 0x55f   : > { %v6272_v29 = vsel %vm6204_vm12, %v6170_v14, %v6238_v36  ;;  %v6171_v60 = vadd.f32 %v11663_v28, %v6130_v20  ;;  %v5772_v5 = vadd.f32 %v5692_v47, %v11591_v35  ;;  %v5562_v4 = vpop.f32.mrf.mxu0  ;;  %v5921_v0 = vpop.f32.mrf.mxu1 }
 0x560   : > { %v7082_v9 = vpack.c.bf16 %v6272_v29, %v6272_v29  ;;  %v5693_v17 = vrot.slane %v5562_v4, 2  ;;  %v6052_v27 = vrot.slane %v5921_v0, 2 }
 0x561   : > { %vm6205_vm13 = vcmp.gt.f32.partialorder %v6171_v60, 0.0  ;;  %v6239_v30 = vmul.f32 0.2, %v6171_v60  ;;  %v6131_v38 = vadd.f32 %v6051_v21, %v5772_v5  ;;  %v8562_v1 = vpop.f32.mrf.mxu0  ;;  %v8640_v43 = vpop.f32.mrf.mxu1 }
 0x562   : > { %6443 = vst.msk [vmem:[%s11674_s16 + $0x4c] sm:$0xf] %vm6423_vm7, %v7082_v9  ;;  %v5694_v46 = vsel %vm4211_vm5, %v5691_v33, %v5693_v17  ;;  %v6053_v54 = vsel %vm4211_vm5, %v6050_v61, %v6052_v27 }
 0x563   : > { %v6273_v23 = vsel %vm6205_vm13, %v6171_v60, %v6239_v30  ;;  %v6172_v35 = vadd.f32 %v11663_v28, %v6131_v38  ;;  %v5773_v8 = vadd.f32 %v5694_v46, %v11600_v53  ;;  %v5567_v18 = vpop.f32.mrf.mxu0  ;;  %v5926_v7 = vpop.f32.mrf.mxu1 }
 0x564   : > { %v7083_v26 = vpack.c.bf16 %v6273_v23, %v6273_v23  ;;  %v5695_v48 = vrot.slane %v5567_v18, 2  ;;  %v6054_v62 = vrot.slane %v5926_v7, 2 }
 0x565   : > { %vm6206_vm14 = vcmp.gt.f32.partialorder %v6172_v35, 0.0  ;;  %v6240_v55 = vmul.f32 0.2, %v6172_v35  ;;  %v6132_v25 = vadd.f32 %v6053_v54, %v5773_v8  ;;  %v8565_v19 = vpop.f32.mrf.mxu0  ;;  %v8643_v42 = vpop.f32.mrf.mxu1 }
 0x566   : > { %6444 = vst.msk [vmem:[%s11674_s16 + $0x50] sm:$0xf] %vm6423_vm7, %v7083_v26  ;;  %v5696_v37 = vsel %vm4211_vm5, %v5693_v17, %v5695_v48  ;;  %v6055_v50 = vsel %vm4211_vm5, %v6052_v27, %v6054_v62 }
 0x567   : > { %v6274_v45 = vsel %vm6206_vm14, %v6172_v35, %v6240_v55  ;;  %v6173_v53 = vadd.f32 %v11663_v28, %v6132_v25  ;;  %v5774_v56 = vadd.f32 %v5696_v37, %v11605_v13  ;;  %v5570_v32 = vpop.f32.mrf.mxu0  ;;  %v5929_v52 = vpop.f32.mrf.mxu1 }
 0x568   : > { %v7084_v58 = vpack.c.bf16 %v6274_v45, %v6274_v45  ;;  %v5697_v41 = vrot.slane %v5570_v32, 2  ;;  %v6056_v15 = vrot.slane %v5929_v52, 2 }
 0x569   : > { %vm6207_vm15 = vcmp.gt.f32.partialorder %v6173_v53, 0.0  ;;  %v6241_v31 = vmul.f32 0.2, %v6173_v53  ;;  %v6133_v57 = vadd.f32 %v6055_v50, %v5774_v56  ;;  %v8566_v14 = vpop.f32.mrf.mxu0  ;;  %v8644_v24 = vpop.f32.mrf.mxu1 }
 0x56a   : > { %6445 = vst.msk [vmem:[%s11674_s16 + $0x54] sm:$0xf] %vm6423_vm7, %v7084_v58  ;;  %v5698_v40 = vsel %vm4211_vm5, %v5695_v48, %v5697_v41  ;;  %v6057_v36 = vsel %vm4211_vm5, %v6054_v62, %v6056_v15 }
 0x56b   : > { %v6275_v51 = vsel %vm6207_vm15, %v6173_v53, %v6241_v31  ;;  %v6174_v13 = vadd.f32 %v11663_v28, %v6133_v57  ;;  %v5775_v6 = vadd.f32 %v5698_v40, %v11610_v11  ;;  %v5575_v33 = vpop.f32.mrf.mxu0  ;;  %v5934_v61 = vpop.f32.mrf.mxu1 }
 0x56c   : > { %v7085_v16 = vpack.c.bf16 %v6275_v51, %v6275_v51  ;;  %v5699_v20 = vrot.slane %v5575_v33, 2  ;;  %v6058_v49 = vrot.slane %v5934_v61, 2 }
 0x56d   : > { %vm6208_vm0 = vcmp.gt.f32.partialorder %v6174_v13, 0.0  ;;  %v6242_v3 = vmul.f32 0.2, %v6174_v13  ;;  %v6134_v47 = vadd.f32 %v6057_v36, %v5775_v6  ;;  %v8569_v29 = vpop.f32.mrf.mxu0  ;;  %v8647_v5 = vpop.f32.mrf.mxu1 }
 0x56e   : > { %6446 = vst.msk [vmem:[%s11674_s16 + $0x58] sm:$0xf] %vm6423_vm7, %v7085_v16  ;;  %v5700_v60 = vsel %vm4211_vm5, %v5697_v41, %v5699_v20  ;;  %v6059_v0 = vsel %vm4211_vm5, %v6056_v15, %v6058_v49 }
 0x56f   : > { %v6276_v4 = vsel %vm6208_vm0, %v6174_v13, %v6242_v3  ;;  %v6175_v11 = vadd.f32 %v11663_v28, %v6134_v47  ;;  %v5776_v9 = vadd.f32 %v5700_v60, %v11615_v2  ;;  %v5578_v21 = vpop.f32.mrf.mxu0  ;;  %v5937_v38 = vpop.f32.mrf.mxu1 }
 0x570   : > { %v7086_v17 = vpack.c.bf16 %v6276_v4, %v6276_v4  ;;  %v5701_v30 = vrot.slane %v5578_v21, 2  ;;  %v6060_v46 = vrot.slane %v5937_v38, 2 }
 0x571   : > { %vm6209_vm1 = vcmp.gt.f32.partialorder %v6175_v11, 0.0  ;;  %v6243_v27 = vmul.f32 0.2, %v6175_v11  ;;  %v6135_v1 = vadd.f32 %v6059_v0, %v5776_v9  ;;  %v8570_v43 = vpop.f32.mrf.mxu0  ;;  %v8648_v35 = vpop.f32.mrf.mxu1 }
 0x572   : > { %6447 = vst.msk [vmem:[%s11674_s16 + $0x5c] sm:$0xf] %vm6423_vm7, %v7086_v17  ;;  %v5702_v23 = vsel %vm4211_vm5, %v5699_v20, %v5701_v30  ;;  %v6061_v48 = vsel %vm4211_vm5, %v6058_v49, %v6060_v46 }
 0x573   : > { %v6277_v8 = vsel %vm6209_vm1, %v6175_v11, %v6243_v27  ;;  %v6176_v2 = vadd.f32 %v11663_v28, %v6135_v1  ;;  %v5777_v18 = vadd.f32 %v5702_v23, %v11620_v10  ;;  %v5583_v26 = vpop.f32.mrf.mxu0  ;;  %v5942_v55 = vpop.f32.mrf.mxu1 }
 0x574   : > { %v7087_v54 = vpack.c.bf16 %v6277_v8, %v6277_v8  ;;  %v5703_v7 = vrot.slane %v5583_v26, 2  ;;  %v6062_v19 = vrot.slane %v5942_v55, 2 }
 0x575   : > { %vm6210_vm2 = vcmp.gt.f32.partialorder %v6176_v2, 0.0  ;;  %v6244_v25 = vmul.f32 0.2, %v6176_v2  ;;  %v6136_v62 = vadd.f32 %v6061_v48, %v5777_v18  ;;  %v8573_v37 = vpop.f32.mrf.mxu0  ;;  %v8651_v45 = vpop.f32.mrf.mxu1 }
 0x576   : > { %6448 = vst.msk [vmem:[%s11674_s16 + $0x60] sm:$0xf] %vm6423_vm7, %v7087_v54  ;;  %v5704_v42 = vsel %vm4211_vm5, %v5701_v30, %v5703_v7  ;;  %v6063_v50 = vsel %vm4211_vm5, %v6060_v46, %v6062_v19 }
 0x577   : > { %v6278_v53 = vsel %vm6210_vm2, %v6176_v2, %v6244_v25  ;;  %v6177_v10 = vadd.f32 %v11663_v28, %v6136_v62  ;;  %v5778_v56 = vadd.f32 %v5704_v42, %v11625_v34  ;;  %v5586_v32 = vpop.f32.mrf.mxu0  ;;  %v5945_v52 = vpop.f32.mrf.mxu1 }
 0x578   : > { %v7088_v58 = vpack.c.bf16 %v6278_v53, %v6278_v53  ;;  %v5705_v41 = vrot.slane %v5586_v32, 2  ;;  %v6064_v15 = vrot.slane %v5945_v52, 2 }
 0x579   : > { %vm6211_vm3 = vcmp.gt.f32.partialorder %v6177_v10, 0.0  ;;  %v6245_v31 = vmul.f32 0.2, %v6177_v10  ;;  %v6137_v57 = vadd.f32 %v6063_v50, %v5778_v56  ;;  %v8574_v14 = vpop.f32.mrf.mxu0  ;;  %v8652_v24 = vpop.f32.mrf.mxu1 }
 0x57a   : > { %6449 = vst.msk [vmem:[%s11674_s16 + $0x64] sm:$0xf] %vm6423_vm7, %v7088_v58  ;;  %v5706_v40 = vsel %vm4211_vm5, %v5703_v7, %v5705_v41  ;;  %v6065_v16 = vsel %vm4211_vm5, %v6062_v19, %v6064_v15 }
 0x57b   : > { %v6279_v51 = vsel %vm6211_vm3, %v6177_v10, %v6245_v31  ;;  %v6178_v34 = vadd.f32 %v11663_v28, %v6137_v57  ;;  %v5779_v13 = vadd.f32 %v5706_v40, %v11630_v44  ;;  %v5591_v6 = vpop.f32.mrf.mxu0  ;;  %v5950_v20 = vpop.f32.mrf.mxu1 }
 0x57c   : > { %v7089_v33 = vpack.c.bf16 %v6279_v51, %v6279_v51  ;;  %v5707_v36 = vrot.slane %v5591_v6, 2  ;;  %v6066_v47 = vrot.slane %v5950_v20, 2 }
 0x57d   : > { %vm6212_vm4 = vcmp.gt.f32.partialorder %v6178_v34, 0.0  ;;  %v6246_v61 = vmul.f32 0.2, %v6178_v34  ;;  %v6138_v3 = vadd.f32 %v6065_v16, %v5779_v13  ;;  %v8577_v49 = vpop.f32.mrf.mxu0  ;;  %v8655_v60 = vpop.f32.mrf.mxu1 }
 0x57e   : > { %6450 = vst.msk [vmem:[%s11674_s16 + $0x68] sm:$0xf] %vm6423_vm7, %v7089_v33  ;;  %v5708_v29 = vsel %vm4211_vm5, %v5705_v41, %v5707_v36  ;;  %v6067_v21 = vsel %vm4211_vm5, %v6064_v15, %v6066_v47 }
 0x57f   : > { %v6280_v5 = vsel %vm6212_vm4, %v6178_v34, %v6246_v61  ;;  %v6179_v44 = vadd.f32 %v11663_v28, %v6138_v3  ;;  %v5780_v4 = vadd.f32 %v5708_v29, %v11635_v59  ;;  %v5594_v11 = vpop.f32.mrf.mxu0  ;;  %v5953_v0 = vpop.f32.mrf.mxu1 }
 0x580   : > { %v7090_v9 = vpack.c.bf16 %v6280_v5, %v6280_v5  ;;  %v5709_v17 = vrot.slane %v5594_v11, 2  ;;  %v6068_v27 = vrot.slane %v5953_v0, 2 }
 0x581   : > { %vm6213_vm6 = vcmp.gt.f32.partialorder %v6179_v44, 0.0  ;;  %v6247_v30 = vmul.f32 0.2, %v6179_v44  ;;  %v6139_v38 = vadd.f32 %v6067_v21, %v5780_v4  ;;  %v8578_v1 = vpop.f32.mrf.mxu0  ;;  %v8656_v43 = vpop.f32.mrf.mxu1 }
 0x582   : > { %6451 = vst.msk [vmem:[%s11674_s16 + $0x6c] sm:$0xf] %vm6423_vm7, %v7090_v9  ;;  %v5710_v46 = vsel %vm4211_vm5, %v5707_v36, %v5709_v17  ;;  %v6069_v18 = vsel %vm4211_vm5, %v6066_v47, %v6068_v27 }
 0x583   : > { %v6281_v23 = vsel %vm6213_vm6, %v6179_v44, %v6247_v30  ;;  %v6180_v59 = vadd.f32 %v11663_v28, %v6139_v38  ;;  %v5781_v35 = vadd.f32 %v5710_v46, %v11640_v12  ;;  %v5599_v8 = vpop.f32.mrf.mxu0  ;;  %v5958_v54 = vpop.f32.mrf.mxu1 }
 0x584   : > { %v7091_v2 = vpack.c.bf16 %v6281_v23, %v6281_v23  ;;  %v5711_v26 = vrot.slane %v5599_v8, 2  ;;  %v6070_v55 = vrot.slane %v5958_v54, 2 }
 0x585   : > { %vm6214_vm8 = vcmp.gt.f32.partialorder %v6180_v59, 0.0  ;;  %v6248_v48 = vmul.f32 0.2, %v6180_v59  ;;  %v6140_v7 = vadd.f32 %v6069_v18, %v5781_v35  ;;  %v8581_v25 = vpop.f32.mrf.mxu0  ;;  %v8659_v19 = vpop.f32.mrf.mxu1 }
 0x586   : > { %6452 = vst.msk [vmem:[%s11674_s16 + $0x70] sm:$0xf] %vm6423_vm7, %v7091_v2  ;;  %v5712_v62 = vsel %vm4211_vm5, %v5709_v17, %v5711_v26  ;;  %v6071_v10 = vsel %vm4211_vm5, %v6068_v27, %v6070_v55 }
 0x587   : > { %v6282_v37 = vsel %vm6214_vm8, %v6180_v59, %v6248_v48  ;;  %v6181_v12 = vadd.f32 %v11663_v28, %v6140_v7  ;;  %v5782_v42 = vadd.f32 %v5712_v62, %v11645_v22  ;;  %v5602_v45 = vpop.f32.mrf.mxu0  ;;  %v5961_v32 = vpop.f32.mrf.mxu1 }
 0x588   : > { %v7092_v53 = vpack.c.bf16 %v6282_v37, %v6282_v37  ;;  %v5713_v56 = vrot.slane %v5602_v45, 2  ;;  %v6072_v41 = vrot.slane %v5961_v32, 2 }
 0x589   : > { %vm6215_vm9 = vcmp.gt.f32.partialorder %v6181_v12, 0.0  ;;  %v6249_v58 = vmul.f32 0.2, %v6181_v12  ;;  %v6141_v50 = vadd.f32 %v6071_v10, %v5782_v42  ;;  %v8582_v52 = vpop.f32.mrf.mxu0  ;;  %v8660_v57 = vpop.f32.mrf.mxu1 }
 0x58a   : > { %6453 = vst.msk [vmem:[%s11674_s16 + $0x74] sm:$0xf] %vm6423_vm7, %v7092_v53  ;;  %v5714_v31 = vsel %vm4211_vm5, %v5711_v26, %v5713_v56  ;;  %v6073_v51 = vsel %vm4211_vm5, %v6070_v55, %v6072_v41 }
 0x58b   : > { %v6283_v15 = vsel %vm6215_vm9, %v6181_v12, %v6249_v58  ;;  %v6182_v22 = vadd.f32 %v11663_v28, %v6141_v50  ;;  %v5783_v14 = vadd.f32 %v5714_v31, %v11650_v39  ;;  %v5607_v40 = vpop.f32.mrf.mxu0  ;;  %v5966_v13 = vpop.f32.mrf.mxu1  ;;  %v8830_v39 = vld [vmem:[%s11878_s2] ss:$0 sm:$0xff] }
 0x58c   : > { %v7093_v24 = vpack.c.bf16 %v6283_v15, %v6283_v15  ;;  %v5715_v34 = vrot.slane %v5607_v40, 2  ;;  %v6074_v16 = vrot.slane %v5966_v13, 2 }
 0x58d   : > { %vm6216_vm10 = vcmp.gt.f32.partialorder %v6182_v22, 0.0  ;;  %v6250_v6 = vmul.f32 0.2, %v6182_v22  ;;  %v6142_v33 = vadd.f32 %v6073_v51, %v5783_v14  ;;  %v8585_v36 = vpop.f32.mrf.mxu0  ;;  %v8663_v61 = vpop.f32.mrf.mxu1 }
 0x58e   : > { %6454 = vst.msk [vmem:[%s11674_s16 + $0x78] sm:$0xf] %vm6423_vm7, %v7093_v24  ;;  %v5716_v20 = vsel %vm4211_vm5, %v5713_v56, %v5715_v34  ;;  %v6075_v60 = vsel %vm4211_vm5, %v6072_v41, %v6074_v16 }
 0x58f   : > { %v6284_v28 = vsel %vm6216_vm10, %v6182_v22, %v6250_v6  ;;  %v6183_v3 = vadd.f32 %v8830_v39, %v6142_v33  ;;  %v5784_v47 = vadd.f32 %v5716_v20, %v11655_v63  ;;  %v5610_v49 = vpop.f32.mrf.mxu0  ;;  %v5969_v5 = vpop.f32.mrf.mxu1 }
 0x590   : > { %v7094_v29 = vpack.c.bf16 %v6284_v28, %v6284_v28 }
 0x591   : > { %vm6217_vm11 = vcmp.gt.f32.partialorder %v6183_v3, 0.0  ;;  %v6251_v44 = vmul.f32 0.2, %v6183_v3  ;;  %v6143_v4 = vadd.f32 %v6075_v60, %v5784_v47  ;;  %v8586_v11 = vpop.f32.mrf.mxu0  ;;  %v8664_v9 = vpop.f32.mrf.mxu1 }
 0x592   : > { %6455 = vst.msk [vmem:[%s11674_s16 + $0x7c] sm:$0xf] %vm6423_vm7, %v7094_v29 }
 0x593   : > { %v6285_v21 = vsel %vm6217_vm11, %v6183_v3, %v6251_v44  ;;  %v6184_v17 = vadd.f32 %v8830_v39, %v6143_v4 }
 0x594   : > { %v7095_v0 = vpack.c.bf16 %v6285_v21, %v6285_v21 }
 0x595   : > { %vm6218_vm12 = vcmp.gt.f32.partialorder %v6184_v17, 0.0  ;;  %v6252_v30 = vmul.f32 0.2, %v6184_v17 }
 0x596   : > { %6456 = vst.msk [vmem:[%s11674_s16 + $0x80] sm:$0xf] %vm6423_vm7, %v7095_v0 }
 0x597   : > { %v6286_v63 = vsel %vm6218_vm12, %v6184_v17, %v6252_v30 }
 0x598   : > { %v7096_v38 = vpack.c.bf16 %v6286_v63, %v6286_v63 }
 0x59a   : > { %6457 = vst.msk [vmem:[%s11674_s16 + $0x84] sm:$0xf] %vm6423_vm7, %v7096_v38 }
 0x59b PF: > { %s14_s15 = sadd.s32 1, %s8837_s15  }
 0x59c   : > { %p11_p4 = scmp.ge.s32.totalorder %s14_s15, 4  }
 0x59e   :  { %13 = sbr.rel (!%p11_p4) target bundleno = 1 (0x1), region = 84 }

</bundles_post_ra>
